<compile_context>
chip_gen: v7x
topology: tpu7x:2x2x1
jax: 0.10.0
libtpu: 0.0.40
codegen_flags: <defaults>
</compile_context>

<pallas_src>
import math

import jax
import jax.numpy as jnp
from jax import lax
from jax.experimental import pallas as pl
from jax.experimental.pallas import tpu as pltpu

EPS = 1e-5
LANE = 128


def _round_up(x, m):
    return (x + m - 1) // m * m


def _vmem_limit(blocks):
    """Honest scoped-VMEM request: double-buffered block bytes + headroom,
    clamped to what every generation (incl. v7x: 64 MiB physical) can grant."""
    est = 0
    for shape, dtype in blocks:
        est += 2 * math.prod(shape) * jnp.dtype(dtype).itemsize
    return int(min(max(est + (8 << 20), 32 << 20), 48 << 20))


# -----------------------------------------------------------------------------
# Kernel 1: conv3x3(stride s, pad 1) [+ fused 1x1-stride-s shortcut conv]
#           + per-image BN partial statistics (sum, sum of squares).
# One grid step == one image.  Input is the phase-decomposed padded image so
# every tap is a unit-stride shifted window (no im2col, no strided loads).
# -----------------------------------------------------------------------------
def _make_conv1_kernel(K, s, Ho, Wo, cinp, coutp, with_shortcut):
    center = (K // 2) * K + (K // 2)   # the 1x1 shortcut == centre tap of the 3x3

    def kernel(*refs):
        if with_shortcut:
            xph_ref, w_ref, ws_ref, h_ref, st_ref, sc_ref, scst_ref = refs
        else:
            xph_ref, w_ref, h_ref, st_ref = refs

        acc = jnp.zeros((Ho * Wo, coutp), jnp.float32)
        sc_acc = None
        for kh in range(K):
            for kw in range(K):
                t = kh * K + kw
                p = (kh % s) * s + (kw % s)          # phase index
                dh, dw = kh // s, kw // s            # offset inside the phase
                slab = xph_ref[0, p, pl.ds(dh, Ho), pl.ds(dw, Wo), :]
                slab = slab.reshape(Ho * Wo, cinp)
                acc = acc + jnp.dot(slab, w_ref[t],
                                    preferred_element_type=jnp.float32)
                if with_shortcut and t == center:
                    sc_acc = jnp.dot(slab, ws_ref[...],
                                     preferred_element_type=jnp.float32)

        h_ref[0] = acc.reshape(Ho, Wo, coutp).astype(h_ref.dtype)
        st_ref[0] = jnp.concatenate(
            [jnp.sum(acc, axis=0, keepdims=True),
             jnp.sum(acc * acc, axis=0, keepdims=True)], axis=0)
        if with_shortcut:
            sc_ref[0] = sc_acc.reshape(Ho, Wo, coutp).astype(sc_ref.dtype)
            scst_ref[0] = jnp.concatenate(
                [jnp.sum(sc_acc, axis=0, keepdims=True),
                 jnp.sum(sc_acc * sc_acc, axis=0, keepdims=True)], axis=0)

    return kernel


# -----------------------------------------------------------------------------
# Kernel 2: [BN1 scale/shift + ReLU fused onto the loaded input] -> conv3x3
#           (stride 1, pad 1) + per-image BN partial statistics.
# The zero-padded border lives in a VMEM scratch that is re-zeroed every step
# (cheap, and safe under megacore grid splitting) so BN's shift never leaks
# into the padding ring.
# -----------------------------------------------------------------------------
def _make_conv2_kernel(K, pad, Ho, Wo, cinp, coutp):
    def kernel(h_ref, scale_ref, shift_ref, w_ref, y_ref, st_ref, pbuf):
        scale = scale_ref[...].reshape(1, 1, cinp)
        shift = shift_ref[...].reshape(1, 1, cinp)
        act = jnp.maximum(h_ref[0].astype(jnp.float32) * scale + shift, 0.0)

        pbuf[...] = jnp.zeros_like(pbuf)
        pbuf[pl.ds(pad, Ho), pl.ds(pad, Wo), :] = act.astype(pbuf.dtype)

        acc = jnp.zeros((Ho * Wo, coutp), jnp.float32)
        for kh in range(K):
            for kw in range(K):
                slab = pbuf[pl.ds(kh, Ho), pl.ds(kw, Wo), :]
                slab = slab.reshape(Ho * Wo, cinp)
                acc = acc + jnp.dot(slab, w_ref[kh * K + kw],
                                    preferred_element_type=jnp.float32)

        y_ref[0] = acc.reshape(Ho, Wo, coutp).astype(y_ref.dtype)
        st_ref[0] = jnp.concatenate(
            [jnp.sum(acc, axis=0, keepdims=True),
             jnp.sum(acc * acc, axis=0, keepdims=True)], axis=0)

    return kernel


# -----------------------------------------------------------------------------
# Kernel 3: fused epilogue  relu( y2*scale2+shift2 + res*scale_sc+shift_sc ).
# Covers the conv shortcut (its BN folded into scale_sc/shift_sc) and the
# identity shortcut (scale_sc=1, shift_sc=0, res = x).
# -----------------------------------------------------------------------------
def _make_epilogue_kernel(coutp):
    def kernel(y_ref, res_ref, s2_ref, b2_ref, ss_ref, bs_ref, o_ref):
        s2 = s2_ref[...].reshape(1, 1, coutp)
        b2 = b2_ref[...].reshape(1, 1, coutp)
        ss = ss_ref[...].reshape(1, 1, coutp)
        bs = bs_ref[...].reshape(1, 1, coutp)
        out = y_ref[0].astype(jnp.float32) * s2 + b2
        out = out + res_ref[0].astype(jnp.float32) * ss + bs
        o_ref[0] = jnp.maximum(out, 0.0).astype(o_ref.dtype)

    return kernel


# --------------------------- JAX glue ----------------------------------------
def _phase_decompose(x_pad, s, Hp, Wp):
    """Zero-padded (N, Hpad, Wpad, C) -> (N, s*s, Hp, Wp, C) phase images so a
    stride-s KxK conv becomes unit-stride shifted-window matmuls in-kernel."""
    if s == 1:
        return x_pad[:, None, :Hp, :Wp, :]
    phases = []
    for a in range(s):
        for b in range(s):
            ph = x_pad[:, a::s, b::s, :][:, :Hp, :Wp, :]
            ph = jnp.pad(ph, ((0, 0), (0, Hp - ph.shape[1]),
                              (0, Wp - ph.shape[2]), (0, 0)))
            phases.append(ph)
    return jnp.stack(phases, axis=1)


def _fold_bn(stats, count, gamma, beta, coutp, eps=EPS):
    """stats: (N, 2, coutp) per-image (sum, sumsq) -> per-channel scale/shift.
    gamma/beta are zero-padded so padded channels stay exactly zero."""
    csum = jnp.sum(stats[:, 0, :], axis=0)
    csq = jnp.sum(stats[:, 1, :], axis=0)
    mean = csum / count
    # TODO(synk): E[x^2]-E[x]^2 can cancel for very large spatial counts; a
    # Welford-style per-image merge would be more robust at full ResNet sizes.
    var = jnp.maximum(csq / count - mean * mean, 0.0)
    g = jnp.pad(gamma.astype(jnp.float32), (0, coutp - gamma.shape[0]))
    b = jnp.pad(beta.astype(jnp.float32), (0, coutp - beta.shape[0]))
    scale = g * lax.rsqrt(var + eps)
    shift = b - mean * scale
    return scale.reshape(1, coutp), shift.reshape(1, coutp)


def basic_block_forward(x_nchw, params, stride):
    """Pallas implementation of BasicBlock.forward (input/output NCHW).
    The PyTorch source's `return nn.ReLU(out + x)` (module construction) is
    implemented with its intended semantics: relu(residual(x) + shortcut(x))."""
    x = jnp.transpose(x_nchw, (0, 2, 3, 1))                   # NCHW -> NHWC
    N, H, W, Cin = x.shape
    Cout = params["w1"].shape[0]
    cinp = _round_up(Cin, LANE)
    coutp = _round_up(Cout, LANE)
    K, pad, s = 3, 1, stride
    Ho = (H + 2 * pad - K) // s + 1
    Wo = (W + 2 * pad - K) // s + 1
    has_sc_conv = "ws" in params

    # ---- conv1 (+ fused 1x1 shortcut conv) -----------------------------------
    # bf16 BEFORE any padding; one combined spatial+channel zero-pad.
    x_bf = x.astype(jnp.bfloat16)
    x_pad = jnp.pad(x_bf, ((0, 0), (pad, pad), (pad, pad), (0, cinp - Cin)))
    Hp, Wp = Ho + (K - 1) // s, Wo + (K - 1) // s
    xph = _phase_decompose(x_pad, s, Hp, Wp)                   # (N, s*s, Hp, Wp, cinp)

    w1 = jnp.transpose(params["w1"], (2, 3, 1, 0)).reshape(K * K, Cin, Cout)
    w1 = jnp.pad(w1, ((0, 0), (0, cinp - Cin), (0, coutp - Cout))).astype(jnp.bfloat16)

    in_specs = [pl.BlockSpec((1, s * s, Hp, Wp, cinp), lambda n: (n, 0, 0, 0, 0)),
                pl.BlockSpec((K * K, cinp, coutp), lambda n: (0, 0, 0))]
    inputs = [xph, w1]
    out_shape = [jax.ShapeDtypeStruct((N, Ho, Wo, coutp), jnp.bfloat16),
                 jax.ShapeDtypeStruct((N, 2, coutp), jnp.float32)]
    out_specs = [pl.BlockSpec((1, Ho, Wo, coutp), lambda n: (n, 0, 0, 0)),
                 pl.BlockSpec((1, 2, coutp), lambda n: (n, 0, 0))]
    blocks = [((1, s * s, Hp, Wp, cinp), jnp.bfloat16),
              ((K * K, cinp, coutp), jnp.bfloat16),
              ((1, Ho, Wo, coutp), jnp.bfloat16),
              ((1, 2, coutp), jnp.float32),
              ((Ho * Wo, coutp), jnp.float32)]                 # in-kernel f32 acc
    if has_sc_conv:
        ws = jnp.pad(params["ws"][:, :, 0, 0].T,
                     ((0, cinp - Cin), (0, coutp - Cout))).astype(jnp.bfloat16)
        inputs.append(ws)
        in_specs.append(pl.BlockSpec((cinp, coutp), lambda n: (0, 0)))
        out_shape += [jax.ShapeDtypeStruct((N, Ho, Wo, coutp), jnp.bfloat16),
                      jax.ShapeDtypeStruct((N, 2, coutp), jnp.float32)]
        out_specs += [pl.BlockSpec((1, Ho, Wo, coutp), lambda n: (n, 0, 0, 0)),
                      pl.BlockSpec((1, 2, coutp), lambda n: (n, 0, 0))]
        blocks += [((cinp, coutp), jnp.bfloat16),
                   ((1, Ho, Wo, coutp), jnp.bfloat16),
                   ((1, 2, coutp), jnp.float32),
                   ((Ho * Wo, coutp), jnp.float32)]

    conv1_out = pl.pallas_call(
        _make_conv1_kernel(K, s, Ho, Wo, cinp, coutp, has_sc_conv),
        out_shape=tuple(out_shape),
        grid_spec=pltpu.PrefetchScalarGridSpec(
            num_scalar_prefetch=0, grid=(N,),
            in_specs=in_specs, out_specs=out_specs),
        compiler_params=pltpu.CompilerParams(
            dimension_semantics=("parallel",),   # v7x: images shard across both TCs
            vmem_limit_bytes=_vmem_limit(blocks)),
    )(*inputs)
    if has_sc_conv:
        h_raw, st1, sc_raw, st_sc = conv1_out
    else:
        h_raw, st1 = conv1_out

    # ---- fold BN1 (and shortcut BN) into per-channel scale/shift --------------
    M1 = N * Ho * Wo
    scale1, shift1 = _fold_bn(st1, M1, params["g1"], params["b1"], coutp)
    if has_sc_conv:
        scale_sc, shift_sc = _fold_bn(st_sc, M1, params["gs"], params["bs"], coutp)
        res = sc_raw
    else:
        scale_sc = jnp.ones((1, coutp), jnp.float32)
        shift_sc = jnp.zeros((1, coutp), jnp.float32)
        res = jnp.pad(x_bf, ((0, 0), (0, 0), (0, 0), (0, coutp - Cout)))

    # ---- conv2 with BN1 + ReLU fused onto its input ---------------------------
    w2 = jnp.transpose(params["w2"], (2, 3, 1, 0)).reshape(K * K, Cout, Cout)
    w2 = jnp.pad(w2, ((0, 0), (0, coutp - Cout), (0, coutp - Cout))).astype(jnp.bfloat16)
    Hp2, Wp2 = Ho + 2 * pad, Wo + 2 * pad
    blocks2 = [((1, Ho, Wo, coutp), jnp.bfloat16), ((1, coutp), jnp.float32),
               ((1, coutp), jnp.float32), ((K * K, coutp, coutp), jnp.bfloat16),
               ((1, Ho, Wo, coutp), jnp.bfloat16), ((1, 2, coutp), jnp.float32),
               ((Hp2, Wp2, coutp), jnp.bfloat16), ((Ho * Wo, coutp), jnp.float32)]
    y2_raw, st2 = pl.pallas_call(
        _make_conv2_kernel(K, pad, Ho, Wo, coutp, coutp),
        out_shape=(jax.ShapeDtypeStruct((N, Ho, Wo, coutp), jnp.bfloat16),
                   jax.ShapeDtypeStruct((N, 2, coutp), jnp.float32)),
        grid_spec=pltpu.PrefetchScalarGridSpec(
            num_scalar_prefetch=0, grid=(N,),
            in_specs=[pl.BlockSpec((1, Ho, Wo, coutp), lambda n: (n, 0, 0, 0)),
                      pl.BlockSpec((1, coutp), lambda n: (0, 0)),
                      pl.BlockSpec((1, coutp), lambda n: (0, 0)),
                      pl.BlockSpec((K * K, coutp, coutp), lambda n: (0, 0, 0))],
            out_specs=[pl.BlockSpec((1, Ho, Wo, coutp), lambda n: (n, 0, 0, 0)),
                       pl.BlockSpec((1, 2, coutp), lambda n: (n, 0, 0))],
            scratch_shapes=[pltpu.VMEM((Hp2, Wp2, coutp), jnp.bfloat16)]),
        compiler_params=pltpu.CompilerParams(
            dimension_semantics=("parallel",),
            vmem_limit_bytes=_vmem_limit(blocks2)),
    )(h_raw, scale1, shift1, w2)

    scale2, shift2 = _fold_bn(st2, M1, params["g2"], params["b2"], coutp)

    # ---- epilogue: BN2 + shortcut BN + residual add + ReLU --------------------
    blocks3 = ([((1, Ho, Wo, coutp), jnp.bfloat16)] * 2
               + [((1, coutp), jnp.float32)] * 4
               + [((1, Ho, Wo, coutp), jnp.float32)])
    out = pl.pallas_call(
        _make_epilogue_kernel(coutp),
        out_shape=jax.ShapeDtypeStruct((N, Ho, Wo, coutp), jnp.float32),
        grid_spec=pltpu.PrefetchScalarGridSpec(
            num_scalar_prefetch=0, grid=(N,),
            in_specs=[pl.BlockSpec((1, Ho, Wo, coutp), lambda n: (n, 0, 0, 0)),
                      pl.BlockSpec((1, Ho, Wo, coutp), lambda n: (n, 0, 0, 0)),
                      pl.BlockSpec((1, coutp), lambda n: (0, 0)),
                      pl.BlockSpec((1, coutp), lambda n: (0, 0)),
                      pl.BlockSpec((1, coutp), lambda n: (0, 0)),
                      pl.BlockSpec((1, coutp), lambda n: (0, 0))],
            out_specs=pl.BlockSpec((1, Ho, Wo, coutp), lambda n: (n, 0, 0, 0))),
        compiler_params=pltpu.CompilerParams(
            dimension_semantics=("parallel",),
            vmem_limit_bytes=_vmem_limit(blocks3)),
    )(y2_raw, res, scale2, shift2, scale_sc, shift_sc)

    out = out[:, :, :, :Cout]
    return jnp.transpose(out, (0, 3, 1, 2))                   # NHWC -> NCHW


# --------------------------- params ------------------------------------------
def init_basic_block_params(key, in_channels, out_channels, stride):
    """Deterministic synthetic params with the shapes implied by BasicBlock.__init__."""
    ks = jax.random.split(key, 8)
    p = {
        "w1": 0.1 * jax.random.normal(ks[0], (out_channels, in_channels, 3, 3), jnp.float32),
        "g1": 1.0 + 0.1 * jax.random.normal(ks[1], (out_channels,), jnp.float32),
        "b1": 0.1 * jax.random.normal(ks[2], (out_channels,), jnp.float32),
        "w2": 0.1 * jax.random.normal(ks[3], (out_channels, out_channels, 3, 3), jnp.float32),
        "g2": 1.0 + 0.1 * jax.random.normal(ks[4], (out_channels,), jnp.float32),
        "b2": 0.1 * jax.random.normal(ks[5], (out_channels,), jnp.float32),
    }
    if stride != 1 or in_channels != out_channels:            # expansion == 1
        p["ws"] = 0.1 * jax.random.normal(ks[6], (out_channels, in_channels, 1, 1), jnp.float32)
        p["gs"] = jnp.ones((out_channels,), jnp.float32)
        p["bs"] = 0.1 * jax.random.normal(ks[7], (out_channels,), jnp.float32)
    return p
    # TODO(synk): BatchNorm running_mean/running_var momentum updates (stateful
    # buffers) are not modelled; only training-mode forward normalization.


# ---------------- pure-JAX reference (mirrors the kernels' precision policy:
# bf16 MXU operands / f32 accumulation, bf16 inter-layer activations, f32 BN) --
def _ref_conv(x_nhwc, w_oihw, stride, padding):
    w_hwio = jnp.transpose(w_oihw, (2, 3, 1, 0)).astype(jnp.bfloat16)
    return lax.conv_general_dilated(
        x_nhwc.astype(jnp.bfloat16), w_hwio, (stride, stride),
        [(padding, padding)] * 2,
        dimension_numbers=("NHWC", "HWIO", "NHWC"),
        preferred_element_type=jnp.float32)


def _ref_bn_fold(y, gamma, beta, eps=EPS):
    mean = y.mean(axis=(0, 1, 2))
    var = jnp.maximum((y * y).mean(axis=(0, 1, 2)) - mean * mean, 0.0)
    scale = gamma * lax.rsqrt(var + eps)
    return scale, beta - mean * scale


def ref_forward(x_nchw, p, stride):
    x = jnp.transpose(x_nchw, (0, 2, 3, 1))
    y1 = _ref_conv(x, p["w1"], stride, 1)
    s1, b1 = _ref_bn_fold(y1, p["g1"], p["b1"])
    h = jnp.maximum(y1.astype(jnp.bfloat16).astype(jnp.float32) * s1 + b1, 0.0)
    y2 = _ref_conv(h, p["w2"], 1, 1)
    s2, b2 = _ref_bn_fold(y2, p["g2"], p["b2"])
    out = y2.astype(jnp.bfloat16).astype(jnp.float32) * s2 + b2
    if "ws" in p:
        ys = _ref_conv(x, p["ws"], stride, 0)
        ss, bs = _ref_bn_fold(ys, p["gs"], p["bs"])
        res = ys.astype(jnp.bfloat16).astype(jnp.float32) * ss + bs
    else:
        res = x.astype(jnp.bfloat16).astype(jnp.float32)
    out = jnp.maximum(out + res, 0.0)
    return jnp.transpose(out, (0, 3, 1, 2))
# ------------------------------------------------------------------------------


if __name__ == "__main__":
    key = jax.random.PRNGKey(0)
    k_x, k_p, k_x2, k_p2 = jax.random.split(key, 4)
    fwd = jax.jit(basic_block_forward, static_argnums=2)

    # Case 1: downsampling block (stride 2) -> phase decomposition + fused 1x1
    # conv shortcut.
    x = jax.random.normal(k_x, (2, 4, 16, 16), jnp.float32)
    params = init_basic_block_params(k_p, 4, 8, 2)
    out = jax.block_until_ready(fwd(x, params, 2))
    ref = ref_forward(x, params, 2)
    assert out.shape == ref.shape == (2, 8, 8, 8)
    err1 = float(jnp.max(jnp.abs(out - ref)))
    assert err1 < 2e-2, f"stride-2 max abs err {err1}"

    # Case 2: identity-shortcut block (stride 1, in_channels == out_channels).
    x2 = jax.random.normal(k_x2, (2, 8, 8, 8), jnp.float32)
    params2 = init_basic_block_params(k_p2, 8, 8, 1)
    out2 = jax.block_until_ready(fwd(x2, params2, 1))
    ref2 = ref_forward(x2, params2, 1)
    assert out2.shape == ref2.shape == (2, 8, 8, 8)
    err2 = float(jnp.max(jnp.abs(out2 - ref2)))
    assert err2 < 2e-2, f"identity max abs err {err2}"

    print("KERNEL_OK")
</pallas_src>

<mosaic_0001>
module attributes {stable_mosaic.version = 11 : i64} {
  func.func @kernel(%arg0: i32, %arg1: memref<1x4x9x9x128xbf16, #tpu.memory_space<vmem>>, %arg2: memref<9x128x128xbf16, #tpu.memory_space<vmem>>, %arg3: memref<128x128xbf16, #tpu.memory_space<vmem>>, %arg4: memref<1x8x8x128xbf16, #tpu.memory_space<vmem>>, %arg5: memref<1x2x128xf32, #tpu.memory_space<vmem>>, %arg6: memref<1x8x8x128xbf16, #tpu.memory_space<vmem>>, %arg7: memref<1x2x128xf32, #tpu.memory_space<vmem>>) attributes {dimension_semantics = [#tpu.dimension_semantics<parallel>], iteration_bounds = array<i64: 2>, scalar_prefetch = 0 : i64, scratch_operands = 0 : i64, tpu.core_type = #tpu.core_type<tc>, window_params = [{transform_indices = @transform_0, window_bounds = array<i64: 1, 4, 9, 9, 128>}, {pipeline_mode = #tpu.pipeline_mode<synchronous>, transform_indices = @transform_1, window_bounds = array<i64: 9, 128, 128>}, {pipeline_mode = #tpu.pipeline_mode<synchronous>, transform_indices = @transform_2, window_bounds = array<i64: 128, 128>}, {transform_indices = @transform_3, window_bounds = array<i64: 1, 8, 8, 128>}, {transform_indices = @transform_4, window_bounds = array<i64: 1, 2, 128>}, {transform_indices = @transform_5, window_bounds = array<i64: 1, 8, 8, 128>}, {transform_indices = @transform_6, window_bounds = array<i64: 1, 2, 128>}]} {
    %cst = arith.constant 0.000000e+00 : f32
    %0 = vector.broadcast %cst : f32 to vector<64x128xf32>
    %c0 = arith.constant 0 : index
    %c0_0 = arith.constant 0 : index
    %c0_1 = arith.constant 0 : index
    %c0_2 = arith.constant 0 : index
    %c0_3 = arith.constant 0 : index
    %1 = vector.load %arg1[%c0, %c0_0, %c0_1, %c0_2, %c0_3] : memref<1x4x9x9x128xbf16, #tpu.memory_space<vmem>>, vector<1x1x8x8x128xbf16>
    %2 = vector.shape_cast %1 : vector<1x1x8x8x128xbf16> to vector<8x8x128xbf16>
    %3 = vector.shape_cast %2 : vector<8x8x128xbf16> to vector<64x128xbf16>
    %c0_4 = arith.constant 0 : index
    %c0_5 = arith.constant 0 : index
    %c0_6 = arith.constant 0 : index
    %4 = vector.load %arg2[%c0_4, %c0_5, %c0_6] : memref<9x128x128xbf16, #tpu.memory_space<vmem>>, vector<1x128x128xbf16>
    %5 = vector.shape_cast %4 : vector<1x128x128xbf16> to vector<128x128xbf16>
    %cst_7 = arith.constant dense<0.000000e+00> : vector<64x128xf32>
    %6 = tpu.matmul %3, %5, %cst_7 {dimension_numbers = #tpu.dot_dimension_numbers<[1], [0], [0], [1], [0, 0, 1, 1], [], []>} : vector<64x128xbf16>, vector<128x128xbf16>, vector<64x128xf32> -> vector<64x128xf32>
    %7 = arith.addf %0, %6 : vector<64x128xf32>
    %c0_8 = arith.constant 0 : index
    %c1 = arith.constant 1 : index
    %c0_9 = arith.constant 0 : index
    %c0_10 = arith.constant 0 : index
    %c0_11 = arith.constant 0 : index
    %8 = vector.load %arg1[%c0_8, %c1, %c0_9, %c0_10, %c0_11] : memref<1x4x9x9x128xbf16, #tpu.memory_space<vmem>>, vector<1x1x8x8x128xbf16>
    %9 = vector.shape_cast %8 : vector<1x1x8x8x128xbf16> to vector<8x8x128xbf16>
    %10 = vector.shape_cast %9 : vector<8x8x128xbf16> to vector<64x128xbf16>
    %c1_12 = arith.constant 1 : index
    %c0_13 = arith.constant 0 : index
    %c0_14 = arith.constant 0 : index
    %11 = vector.load %arg2[%c1_12, %c0_13, %c0_14] : memref<9x128x128xbf16, #tpu.memory_space<vmem>>, vector<1x128x128xbf16>
    %12 = vector.shape_cast %11 : vector<1x128x128xbf16> to vector<128x128xbf16>
    %cst_15 = arith.constant dense<0.000000e+00> : vector<64x128xf32>
    %13 = tpu.matmul %10, %12, %cst_15 {dimension_numbers = #tpu.dot_dimension_numbers<[1], [0], [0], [1], [0, 0, 1, 1], [], []>} : vector<64x128xbf16>, vector<128x128xbf16>, vector<64x128xf32> -> vector<64x128xf32>
    %14 = arith.addf %7, %13 : vector<64x128xf32>
    %c0_16 = arith.constant 0 : index
    %c0_17 = arith.constant 0 : index
    %c0_18 = arith.constant 0 : index
    %c1_19 = arith.constant 1 : index
    %c0_20 = arith.constant 0 : index
    %15 = vector.load %arg1[%c0_16, %c0_17, %c0_18, %c1_19, %c0_20] : memref<1x4x9x9x128xbf16, #tpu.memory_space<vmem>>, vector<1x1x8x8x128xbf16>
    %16 = vector.shape_cast %15 : vector<1x1x8x8x128xbf16> to vector<8x8x128xbf16>
    %17 = vector.shape_cast %16 : vector<8x8x128xbf16> to vector<64x128xbf16>
    %c2 = arith.constant 2 : index
    %c0_21 = arith.constant 0 : index
    %c0_22 = arith.constant 0 : index
    %18 = vector.load %arg2[%c2, %c0_21, %c0_22] : memref<9x128x128xbf16, #tpu.memory_space<vmem>>, vector<1x128x128xbf16>
    %19 = vector.shape_cast %18 : vector<1x128x128xbf16> to vector<128x128xbf16>
    %cst_23 = arith.constant dense<0.000000e+00> : vector<64x128xf32>
    %20 = tpu.matmul %17, %19, %cst_23 {dimension_numbers = #tpu.dot_dimension_numbers<[1], [0], [0], [1], [0, 0, 1, 1], [], []>} : vector<64x128xbf16>, vector<128x128xbf16>, vector<64x128xf32> -> vector<64x128xf32>
    %21 = arith.addf %14, %20 : vector<64x128xf32>
    %c0_24 = arith.constant 0 : index
    %c2_25 = arith.constant 2 : index
    %c0_26 = arith.constant 0 : index
    %c0_27 = arith.constant 0 : index
    %c0_28 = arith.constant 0 : index
    %22 = vector.load %arg1[%c0_24, %c2_25, %c0_26, %c0_27, %c0_28] : memref<1x4x9x9x128xbf16, #tpu.memory_space<vmem>>, vector<1x1x8x8x128xbf16>
    %23 = vector.shape_cast %22 : vector<1x1x8x8x128xbf16> to vector<8x8x128xbf16>
    %24 = vector.shape_cast %23 : vector<8x8x128xbf16> to vector<64x128xbf16>
    %c3 = arith.constant 3 : index
    %c0_29 = arith.constant 0 : index
    %c0_30 = arith.constant 0 : index
    %25 = vector.load %arg2[%c3, %c0_29, %c0_30] : memref<9x128x128xbf16, #tpu.memory_space<vmem>>, vector<1x128x128xbf16>
    %26 = vector.shape_cast %25 : vector<1x128x128xbf16> to vector<128x128xbf16>
    %cst_31 = arith.constant dense<0.000000e+00> : vector<64x128xf32>
    %27 = tpu.matmul %24, %26, %cst_31 {dimension_numbers = #tpu.dot_dimension_numbers<[1], [0], [0], [1], [0, 0, 1, 1], [], []>} : vector<64x128xbf16>, vector<128x128xbf16>, vector<64x128xf32> -> vector<64x128xf32>
    %28 = arith.addf %21, %27 : vector<64x128xf32>
    %c0_32 = arith.constant 0 : index
    %c3_33 = arith.constant 3 : index
    %c0_34 = arith.constant 0 : index
    %c0_35 = arith.constant 0 : index
    %c0_36 = arith.constant 0 : index
    %29 = vector.load %arg1[%c0_32, %c3_33, %c0_34, %c0_35, %c0_36] : memref<1x4x9x9x128xbf16, #tpu.memory_space<vmem>>, vector<1x1x8x8x128xbf16>
    %30 = vector.shape_cast %29 : vector<1x1x8x8x128xbf16> to vector<8x8x128xbf16>
    %31 = vector.shape_cast %30 : vector<8x8x128xbf16> to vector<64x128xbf16>
    %c4 = arith.constant 4 : index
    %c0_37 = arith.constant 0 : index
    %c0_38 = arith.constant 0 : index
    %32 = vector.load %arg2[%c4, %c0_37, %c0_38] : memref<9x128x128xbf16, #tpu.memory_space<vmem>>, vector<1x128x128xbf16>
    %33 = vector.shape_cast %32 : vector<1x128x128xbf16> to vector<128x128xbf16>
    %cst_39 = arith.constant dense<0.000000e+00> : vector<64x128xf32>
    %34 = tpu.matmul %31, %33, %cst_39 {dimension_numbers = #tpu.dot_dimension_numbers<[1], [0], [0], [1], [0, 0, 1, 1], [], []>} : vector<64x128xbf16>, vector<128x128xbf16>, vector<64x128xf32> -> vector<64x128xf32>
    %35 = arith.addf %28, %34 : vector<64x128xf32>
    %c0_40 = arith.constant 0 : index
    %c0_41 = arith.constant 0 : index
    %36 = vector.load %arg3[%c0_40, %c0_41] : memref<128x128xbf16, #tpu.memory_space<vmem>>, vector<128x128xbf16>
    %cst_42 = arith.constant dense<0.000000e+00> : vector<64x128xf32>
    %37 = tpu.matmul %31, %36, %cst_42 {dimension_numbers = #tpu.dot_dimension_numbers<[1], [0], [0], [1], [0, 0, 1, 1], [], []>} : vector<64x128xbf16>, vector<128x128xbf16>, vector<64x128xf32> -> vector<64x128xf32>
    %c0_43 = arith.constant 0 : index
    %c2_44 = arith.constant 2 : index
    %c0_45 = arith.constant 0 : index
    %c1_46 = arith.constant 1 : index
    %c0_47 = arith.constant 0 : index
    %38 = vector.load %arg1[%c0_43, %c2_44, %c0_45, %c1_46, %c0_47] : memref<1x4x9x9x128xbf16, #tpu.memory_space<vmem>>, vector<1x1x8x8x128xbf16>
    %39 = vector.shape_cast %38 : vector<1x1x8x8x128xbf16> to vector<8x8x128xbf16>
    %40 = vector.shape_cast %39 : vector<8x8x128xbf16> to vector<64x128xbf16>
    %c5 = arith.constant 5 : index
    %c0_48 = arith.constant 0 : index
    %c0_49 = arith.constant 0 : index
    %41 = vector.load %arg2[%c5, %c0_48, %c0_49] : memref<9x128x128xbf16, #tpu.memory_space<vmem>>, vector<1x128x128xbf16>
    %42 = vector.shape_cast %41 : vector<1x128x128xbf16> to vector<128x128xbf16>
    %cst_50 = arith.constant dense<0.000000e+00> : vector<64x128xf32>
    %43 = tpu.matmul %40, %42, %cst_50 {dimension_numbers = #tpu.dot_dimension_numbers<[1], [0], [0], [1], [0, 0, 1, 1], [], []>} : vector<64x128xbf16>, vector<128x128xbf16>, vector<64x128xf32> -> vector<64x128xf32>
    %44 = arith.addf %35, %43 : vector<64x128xf32>
    %c0_51 = arith.constant 0 : index
    %c0_52 = arith.constant 0 : index
    %c1_53 = arith.constant 1 : index
    %c0_54 = arith.constant 0 : index
    %c0_55 = arith.constant 0 : index
    %45 = vector.load %arg1[%c0_51, %c0_52, %c1_53, %c0_54, %c0_55] : memref<1x4x9x9x128xbf16, #tpu.memory_space<vmem>>, vector<1x1x8x8x128xbf16>
    %46 = vector.shape_cast %45 : vector<1x1x8x8x128xbf16> to vector<8x8x128xbf16>
    %47 = vector.shape_cast %46 : vector<8x8x128xbf16> to vector<64x128xbf16>
    %c6 = arith.constant 6 : index
    %c0_56 = arith.constant 0 : index
    %c0_57 = arith.constant 0 : index
    %48 = vector.load %arg2[%c6, %c0_56, %c0_57] : memref<9x128x128xbf16, #tpu.memory_space<vmem>>, vector<1x128x128xbf16>
    %49 = vector.shape_cast %48 : vector<1x128x128xbf16> to vector<128x128xbf16>
    %cst_58 = arith.constant dense<0.000000e+00> : vector<64x128xf32>
    %50 = tpu.matmul %47, %49, %cst_58 {dimension_numbers = #tpu.dot_dimension_numbers<[1], [0], [0], [1], [0, 0, 1, 1], [], []>} : vector<64x128xbf16>, vector<128x128xbf16>, vector<64x128xf32> -> vector<64x128xf32>
    %51 = arith.addf %44, %50 : vector<64x128xf32>
    %c0_59 = arith.constant 0 : index
    %c1_60 = arith.constant 1 : index
    %c1_61 = arith.constant 1 : index
    %c0_62 = arith.constant 0 : index
    %c0_63 = arith.constant 0 : index
    %52 = vector.load %arg1[%c0_59, %c1_60, %c1_61, %c0_62, %c0_63] : memref<1x4x9x9x128xbf16, #tpu.memory_space<vmem>>, vector<1x1x8x8x128xbf16>
    %53 = vector.shape_cast %52 : vector<1x1x8x8x128xbf16> to vector<8x8x128xbf16>
    %54 = vector.shape_cast %53 : vector<8x8x128xbf16> to vector<64x128xbf16>
    %c7 = arith.constant 7 : index
    %c0_64 = arith.constant 0 : index
    %c0_65 = arith.constant 0 : index
    %55 = vector.load %arg2[%c7, %c0_64, %c0_65] : memref<9x128x128xbf16, #tpu.memory_space<vmem>>, vector<1x128x128xbf16>
    %56 = vector.shape_cast %55 : vector<1x128x128xbf16> to vector<128x128xbf16>
    %cst_66 = arith.constant dense<0.000000e+00> : vector<64x128xf32>
    %57 = tpu.matmul %54, %56, %cst_66 {dimension_numbers = #tpu.dot_dimension_numbers<[1], [0], [0], [1], [0, 0, 1, 1], [], []>} : vector<64x128xbf16>, vector<128x128xbf16>, vector<64x128xf32> -> vector<64x128xf32>
    %58 = arith.addf %51, %57 : vector<64x128xf32>
    %c0_67 = arith.constant 0 : index
    %c0_68 = arith.constant 0 : index
    %c1_69 = arith.constant 1 : index
    %c1_70 = arith.constant 1 : index
    %c0_71 = arith.constant 0 : index
    %59 = vector.load %arg1[%c0_67, %c0_68, %c1_69, %c1_70, %c0_71] : memref<1x4x9x9x128xbf16, #tpu.memory_space<vmem>>, vector<1x1x8x8x128xbf16>
    %60 = vector.shape_cast %59 : vector<1x1x8x8x128xbf16> to vector<8x8x128xbf16>
    %61 = vector.shape_cast %60 : vector<8x8x128xbf16> to vector<64x128xbf16>
    %c8 = arith.constant 8 : index
    %c0_72 = arith.constant 0 : index
    %c0_73 = arith.constant 0 : index
    %62 = vector.load %arg2[%c8, %c0_72, %c0_73] : memref<9x128x128xbf16, #tpu.memory_space<vmem>>, vector<1x128x128xbf16>
    %63 = vector.shape_cast %62 : vector<1x128x128xbf16> to vector<128x128xbf16>
    %cst_74 = arith.constant dense<0.000000e+00> : vector<64x128xf32>
    %64 = tpu.matmul %61, %63, %cst_74 {dimension_numbers = #tpu.dot_dimension_numbers<[1], [0], [0], [1], [0, 0, 1, 1], [], []>} : vector<64x128xbf16>, vector<128x128xbf16>, vector<64x128xf32> -> vector<64x128xf32>
    %65 = arith.addf %58, %64 : vector<64x128xf32>
    %66 = vector.shape_cast %65 : vector<64x128xf32> to vector<8x8x128xf32>
    %67 = arith.truncf %66 : vector<8x8x128xf32> to vector<8x8x128xbf16>
    %c0_75 = arith.constant 0 : index
    %c0_76 = arith.constant 0 : index
    %c0_77 = arith.constant 0 : index
    %c0_78 = arith.constant 0 : index
    %68 = vector.load %arg4[%c0_75, %c0_76, %c0_77, %c0_78] : memref<1x8x8x128xbf16, #tpu.memory_space<vmem>>, vector<1x8x8x128xbf16>
    %69 = vector.shape_cast %68 : vector<1x8x8x128xbf16> to vector<8x8x128xbf16>
    %70 = vector.shape_cast %67 : vector<8x8x128xbf16> to vector<1x8x8x128xbf16>
    tpu.vector_store %arg4[%c0_75, %c0_76, %c0_77, %c0_78], %70 {strides = array<i32>} : memref<1x8x8x128xbf16, #tpu.memory_space<vmem>>, vector<1x8x8x128xbf16>,
    %cst_79 = arith.constant dense<0.000000e+00> : vector<128xf32>
    %71 = vector.multi_reduction <add>, %65, %cst_79 [0] : vector<64x128xf32> to vector<128xf32>
    %72 = vector.shape_cast %71 : vector<128xf32> to vector<1x128xf32>
    %73 = arith.mulf %65, %65 : vector<64x128xf32>
    %cst_80 = arith.constant dense<0.000000e+00> : vector<128xf32>
    %74 = vector.multi_reduction <add>, %73, %cst_80 [0] : vector<64x128xf32> to vector<128xf32>
    %75 = vector.shape_cast %74 : vector<128xf32> to vector<1x128xf32>
    %76 = tpu.concatenate %72, %75 in 0 : vector<1x128xf32>, vector<1x128xf32> -> vector<2x128xf32>
    %c0_81 = arith.constant 0 : index
    %c0_82 = arith.constant 0 : index
    %c0_83 = arith.constant 0 : index
    %77 = vector.load %arg5[%c0_81, %c0_82, %c0_83] : memref<1x2x128xf32, #tpu.memory_space<vmem>>, vector<1x2x128xf32>
    %78 = vector.shape_cast %77 : vector<1x2x128xf32> to vector<2x128xf32>
    %79 = vector.shape_cast %76 : vector<2x128xf32> to vector<1x2x128xf32>
    tpu.vector_store %arg5[%c0_81, %c0_82, %c0_83], %79 {strides = array<i32>} : memref<1x2x128xf32, #tpu.memory_space<vmem>>, vector<1x2x128xf32>,
    %80 = vector.shape_cast %37 : vector<64x128xf32> to vector<8x8x128xf32>
    %81 = arith.truncf %80 : vector<8x8x128xf32> to vector<8x8x128xbf16>
    %c0_84 = arith.constant 0 : index
    %c0_85 = arith.constant 0 : index
    %c0_86 = arith.constant 0 : index
    %c0_87 = arith.constant 0 : index
    %82 = vector.load %arg6[%c0_84, %c0_85, %c0_86, %c0_87] : memref<1x8x8x128xbf16, #tpu.memory_space<vmem>>, vector<1x8x8x128xbf16>
    %83 = vector.shape_cast %82 : vector<1x8x8x128xbf16> to vector<8x8x128xbf16>
    %84 = vector.shape_cast %81 : vector<8x8x128xbf16> to vector<1x8x8x128xbf16>
    tpu.vector_store %arg6[%c0_84, %c0_85, %c0_86, %c0_87], %84 {strides = array<i32>} : memref<1x8x8x128xbf16, #tpu.memory_space<vmem>>, vector<1x8x8x128xbf16>,
    %cst_88 = arith.constant dense<0.000000e+00> : vector<128xf32>
    %85 = vector.multi_reduction <add>, %37, %cst_88 [0] : vector<64x128xf32> to vector<128xf32>
    %86 = vector.shape_cast %85 : vector<128xf32> to vector<1x128xf32>
    %87 = arith.mulf %37, %37 : vector<64x128xf32>
    %cst_89 = arith.constant dense<0.000000e+00> : vector<128xf32>
    %88 = vector.multi_reduction <add>, %87, %cst_89 [0] : vector<64x128xf32> to vector<128xf32>
    %89 = vector.shape_cast %88 : vector<128xf32> to vector<1x128xf32>
    %90 = tpu.concatenate %86, %89 in 0 : vector<1x128xf32>, vector<1x128xf32> -> vector<2x128xf32>
    %c0_90 = arith.constant 0 : index
    %c0_91 = arith.constant 0 : index
    %c0_92 = arith.constant 0 : index
    %91 = vector.load %arg7[%c0_90, %c0_91, %c0_92] : memref<1x2x128xf32, #tpu.memory_space<vmem>>, vector<1x2x128xf32>
    %92 = vector.shape_cast %91 : vector<1x2x128xf32> to vector<2x128xf32>
    %93 = vector.shape_cast %90 : vector<2x128xf32> to vector<1x2x128xf32>
    tpu.vector_store %arg7[%c0_90, %c0_91, %c0_92], %93 {strides = array<i32>} : memref<1x2x128xf32, #tpu.memory_space<vmem>>, vector<1x2x128xf32>,
    return
  }
  func.func @transform_0(%arg0: i32) -> (i32, i32, i32, i32, i32) {
    %c0_i32 = arith.constant 0 : i32
    %c0_i32_0 = arith.constant 0 : i32
    %c0_i32_1 = arith.constant 0 : i32
    %c0_i32_2 = arith.constant 0 : i32
    %c0_i32_3 = arith.constant 0 : i32
    return %arg0, %c0_i32, %c0_i32_0, %c0_i32_1, %c0_i32_2 : i32, i32, i32, i32, i32
  }
  func.func @transform_1(%arg0: i32) -> (i32, i32, i32) {
    %c0_i32 = arith.constant 0 : i32
    %c0_i32_0 = arith.constant 0 : i32
    %c0_i32_1 = arith.constant 0 : i32
    %c0_i32_2 = arith.constant 0 : i32
    return %c0_i32, %c0_i32_0, %c0_i32_1 : i32, i32, i32
  }
  func.func @transform_2(%arg0: i32) -> (i32, i32) {
    %c0_i32 = arith.constant 0 : i32
    %c0_i32_0 = arith.constant 0 : i32
    %c0_i32_1 = arith.constant 0 : i32
    return %c0_i32, %c0_i32_0 : i32, i32
  }
  func.func @transform_3(%arg0: i32) -> (i32, i32, i32, i32) {
    %c0_i32 = arith.constant 0 : i32
    %c0_i32_0 = arith.constant 0 : i32
    %c0_i32_1 = arith.constant 0 : i32
    %c0_i32_2 = arith.constant 0 : i32
    return %arg0, %c0_i32, %c0_i32_0, %c0_i32_1 : i32, i32, i32, i32
  }
  func.func @transform_4(%arg0: i32) -> (i32, i32, i32) {
    %c0_i32 = arith.constant 0 : i32
    %c0_i32_0 = arith.constant 0 : i32
    %c0_i32_1 = arith.constant 0 : i32
    return %arg0, %c0_i32, %c0_i32_0 : i32, i32, i32
  }
  func.func @transform_5(%arg0: i32) -> (i32, i32, i32, i32) {
    %c0_i32 = arith.constant 0 : i32
    %c0_i32_0 = arith.constant 0 : i32
    %c0_i32_1 = arith.constant 0 : i32
    %c0_i32_2 = arith.constant 0 : i32
    return %arg0, %c0_i32, %c0_i32_0, %c0_i32_1 : i32, i32, i32, i32
  }
  func.func @transform_6(%arg0: i32) -> (i32, i32, i32) {
    %c0_i32 = arith.constant 0 : i32
    %c0_i32_0 = arith.constant 0 : i32
    %c0_i32_1 = arith.constant 0 : i32
    return %arg0, %c0_i32, %c0_i32_0 : i32, i32, i32
  }
}

module attributes {stable_mosaic.version = 11 : i64} {
  func.func @kernel(%arg0: i32, %arg1: memref<1x8x8x128xbf16, #tpu.memory_space<vmem>>, %arg2: memref<1x8x8x128xbf16, #tpu.memory_space<vmem>>, %arg3: memref<1x128xf32, #tpu.memory_space<vmem>>, %arg4: memref<1x128xf32, #tpu.memory_space<vmem>>, %arg5: memref<1x128xf32, #tpu.memory_space<vmem>>, %arg6: memref<1x128xf32, #tpu.memory_space<vmem>>, %arg7: memref<1x8x8x128xf32, #tpu.memory_space<vmem>>) attributes {dimension_semantics = [#tpu.dimension_semantics<parallel>], iteration_bounds = array<i64: 2>, scalar_prefetch = 0 : i64, scratch_operands = 0 : i64, tpu.core_type = #tpu.core_type<tc>, window_params = [{transform_indices = @transform_0, window_bounds = array<i64: 1, 8, 8, 128>}, {transform_indices = @transform_1, window_bounds = array<i64: 1, 8, 8, 128>}, {pipeline_mode = #tpu.pipeline_mode<synchronous>, transform_indices = @transform_2, window_bounds = array<i64: 1, 128>}, {pipeline_mode = #tpu.pipeline_mode<synchronous>, transform_indices = @transform_3, window_bounds = array<i64: 1, 128>}, {pipeline_mode = #tpu.pipeline_mode<synchronous>, transform_indices = @transform_4, window_bounds = array<i64: 1, 128>}, {pipeline_mode = #tpu.pipeline_mode<synchronous>, transform_indices = @transform_5, window_bounds = array<i64: 1, 128>}, {transform_indices = @transform_6, window_bounds = array<i64: 1, 8, 8, 128>}]} {
    %c0 = arith.constant 0 : index
    %c0_0 = arith.constant 0 : index
    %0 = vector.load %arg3[%c0, %c0_0] : memref<1x128xf32, #tpu.memory_space<vmem>>, vector<1x128xf32>
    %1 = vector.shape_cast %0 : vector<1x128xf32> to vector<1x1x128xf32>
    %c0_1 = arith.constant 0 : index
    %c0_2 = arith.constant 0 : index
    %2 = vector.load %arg4[%c0_1, %c0_2] : memref<1x128xf32, #tpu.memory_space<vmem>>, vector<1x128xf32>
    %3 = vector.shape_cast %2 : vector<1x128xf32> to vector<1x1x128xf32>
    %c0_3 = arith.constant 0 : index
    %c0_4 = arith.constant 0 : index
    %4 = vector.load %arg5[%c0_3, %c0_4] : memref<1x128xf32, #tpu.memory_space<vmem>>, vector<1x128xf32>
    %5 = vector.shape_cast %4 : vector<1x128xf32> to vector<1x1x128xf32>
    %c0_5 = arith.constant 0 : index
    %c0_6 = arith.constant 0 : index
    %6 = vector.load %arg6[%c0_5, %c0_6] : memref<1x128xf32, #tpu.memory_space<vmem>>, vector<1x128xf32>
    %7 = vector.shape_cast %6 : vector<1x128xf32> to vector<1x1x128xf32>
    %c0_7 = arith.constant 0 : index
    %c0_8 = arith.constant 0 : index
    %c0_9 = arith.constant 0 : index
    %c0_10 = arith.constant 0 : index
    %8 = vector.load %arg1[%c0_7, %c0_8, %c0_9, %c0_10] : memref<1x8x8x128xbf16, #tpu.memory_space<vmem>>, vector<1x8x8x128xbf16>
    %9 = vector.shape_cast %8 : vector<1x8x8x128xbf16> to vector<8x8x128xbf16>
    %10 = arith.extf %9 : vector<8x8x128xbf16> to vector<8x8x128xf32>
    %11 = vector.broadcast %1 : vector<1x1x128xf32> to vector<8x8x128xf32>
    %12 = arith.mulf %10, %11 : vector<8x8x128xf32>
    %13 = vector.broadcast %3 : vector<1x1x128xf32> to vector<8x8x128xf32>
    %14 = arith.addf %12, %13 : vector<8x8x128xf32>
    %c0_11 = arith.constant 0 : index
    %c0_12 = arith.constant 0 : index
    %c0_13 = arith.constant 0 : index
    %c0_14 = arith.constant 0 : index
    %15 = vector.load %arg2[%c0_11, %c0_12, %c0_13, %c0_14] : memref<1x8x8x128xbf16, #tpu.memory_space<vmem>>, vector<1x8x8x128xbf16>
    %16 = vector.shape_cast %15 : vector<1x8x8x128xbf16> to vector<8x8x128xbf16>
    %17 = arith.extf %16 : vector<8x8x128xbf16> to vector<8x8x128xf32>
    %18 = vector.broadcast %5 : vector<1x1x128xf32> to vector<8x8x128xf32>
    %19 = arith.mulf %17, %18 : vector<8x8x128xf32>
    %20 = arith.addf %14, %19 : vector<8x8x128xf32>
    %21 = vector.broadcast %7 : vector<1x1x128xf32> to vector<8x8x128xf32>
    %22 = arith.addf %20, %21 : vector<8x8x128xf32>
    %cst = arith.constant 0.000000e+00 : f32
    %23 = vector.broadcast %cst : f32 to vector<8x8x128xf32>
    %24 = arith.maximumf %22, %23 : vector<8x8x128xf32>
    %c0_15 = arith.constant 0 : index
    %c0_16 = arith.constant 0 : index
    %c0_17 = arith.constant 0 : index
    %c0_18 = arith.constant 0 : index
    %25 = vector.load %arg7[%c0_15, %c0_16, %c0_17, %c0_18] : memref<1x8x8x128xf32, #tpu.memory_space<vmem>>, vector<1x8x8x128xf32>
    %26 = vector.shape_cast %25 : vector<1x8x8x128xf32> to vector<8x8x128xf32>
    %27 = vector.shape_cast %24 : vector<8x8x128xf32> to vector<1x8x8x128xf32>
    tpu.vector_store %arg7[%c0_15, %c0_16, %c0_17, %c0_18], %27 {strides = array<i32>} : memref<1x8x8x128xf32, #tpu.memory_space<vmem>>, vector<1x8x8x128xf32>,
    return
  }
  func.func @transform_0(%arg0: i32) -> (i32, i32, i32, i32) {
    %c0_i32 = arith.constant 0 : i32
    %c0_i32_0 = arith.constant 0 : i32
    %c0_i32_1 = arith.constant 0 : i32
    %c0_i32_2 = arith.constant 0 : i32
    return %arg0, %c0_i32, %c0_i32_0, %c0_i32_1 : i32, i32, i32, i32
  }
  func.func @transform_1(%arg0: i32) -> (i32, i32, i32, i32) {
    %c0_i32 = arith.constant 0 : i32
    %c0_i32_0 = arith.constant 0 : i32
    %c0_i32_1 = arith.constant 0 : i32
    %c0_i32_2 = arith.constant 0 : i32
    return %arg0, %c0_i32, %c0_i32_0, %c0_i32_1 : i32, i32, i32, i32
  }
  func.func @transform_2(%arg0: i32) -> (i32, i32) {
    %c0_i32 = arith.constant 0 : i32
    %c0_i32_0 = arith.constant 0 : i32
    %c0_i32_1 = arith.constant 0 : i32
    return %c0_i32, %c0_i32_0 : i32, i32
  }
  func.func @transform_3(%arg0: i32) -> (i32, i32) {
    %c0_i32 = arith.constant 0 : i32
    %c0_i32_0 = arith.constant 0 : i32
    %c0_i32_1 = arith.constant 0 : i32
    return %c0_i32, %c0_i32_0 : i32, i32
  }
  func.func @transform_4(%arg0: i32) -> (i32, i32) {
    %c0_i32 = arith.constant 0 : i32
    %c0_i32_0 = arith.constant 0 : i32
    %c0_i32_1 = arith.constant 0 : i32
    return %c0_i32, %c0_i32_0 : i32, i32
  }
  func.func @transform_5(%arg0: i32) -> (i32, i32) {
    %c0_i32 = arith.constant 0 : i32
    %c0_i32_0 = arith.constant 0 : i32
    %c0_i32_1 = arith.constant 0 : i32
    return %c0_i32, %c0_i32_0 : i32, i32
  }
  func.func @transform_6(%arg0: i32) -> (i32, i32, i32, i32) {
    %c0_i32 = arith.constant 0 : i32
    %c0_i32_0 = arith.constant 0 : i32
    %c0_i32_1 = arith.constant 0 : i32
    %c0_i32_2 = arith.constant 0 : i32
    return %arg0, %c0_i32, %c0_i32_0, %c0_i32_1 : i32, i32, i32, i32
  }
}

module attributes {stable_mosaic.version = 11 : i64} {
  func.func @kernel(%arg0: i32, %arg1: memref<1x8x8x128xbf16, #tpu.memory_space<vmem>>, %arg2: memref<1x128xf32, #tpu.memory_space<vmem>>, %arg3: memref<1x128xf32, #tpu.memory_space<vmem>>, %arg4: memref<9x128x128xbf16, #tpu.memory_space<vmem>>, %arg5: memref<1x8x8x128xbf16, #tpu.memory_space<vmem>>, %arg6: memref<1x2x128xf32, #tpu.memory_space<vmem>>, %arg7: memref<10x10x128xbf16, #tpu.memory_space<vmem>>) attributes {dimension_semantics = [#tpu.dimension_semantics<parallel>], iteration_bounds = array<i64: 2>, scalar_prefetch = 0 : i64, scratch_operands = 1 : i64, tpu.core_type = #tpu.core_type<tc>, window_params = [{transform_indices = @transform_0, window_bounds = array<i64: 1, 8, 8, 128>}, {pipeline_mode = #tpu.pipeline_mode<synchronous>, transform_indices = @transform_1, window_bounds = array<i64: 1, 128>}, {pipeline_mode = #tpu.pipeline_mode<synchronous>, transform_indices = @transform_2, window_bounds = array<i64: 1, 128>}, {pipeline_mode = #tpu.pipeline_mode<synchronous>, transform_indices = @transform_3, window_bounds = array<i64: 9, 128, 128>}, {transform_indices = @transform_4, window_bounds = array<i64: 1, 8, 8, 128>}, {transform_indices = @transform_5, window_bounds = array<i64: 1, 2, 128>}]} {
    %c0 = arith.constant 0 : index
    %c0_0 = arith.constant 0 : index
    %0 = vector.load %arg2[%c0, %c0_0] : memref<1x128xf32, #tpu.memory_space<vmem>>, vector<1x128xf32>
    %1 = vector.shape_cast %0 : vector<1x128xf32> to vector<1x1x128xf32>
    %c0_1 = arith.constant 0 : index
    %c0_2 = arith.constant 0 : index
    %2 = vector.load %arg3[%c0_1, %c0_2] : memref<1x128xf32, #tpu.memory_space<vmem>>, vector<1x128xf32>
    %3 = vector.shape_cast %2 : vector<1x128xf32> to vector<1x1x128xf32>
    %c0_3 = arith.constant 0 : index
    %c0_4 = arith.constant 0 : index
    %c0_5 = arith.constant 0 : index
    %c0_6 = arith.constant 0 : index
    %4 = vector.load %arg1[%c0_3, %c0_4, %c0_5, %c0_6] : memref<1x8x8x128xbf16, #tpu.memory_space<vmem>>, vector<1x8x8x128xbf16>
    %5 = vector.shape_cast %4 : vector<1x8x8x128xbf16> to vector<8x8x128xbf16>
    %6 = arith.extf %5 : vector<8x8x128xbf16> to vector<8x8x128xf32>
    %7 = vector.broadcast %1 : vector<1x1x128xf32> to vector<8x8x128xf32>
    %8 = arith.mulf %6, %7 : vector<8x8x128xf32>
    %9 = vector.broadcast %3 : vector<1x1x128xf32> to vector<8x8x128xf32>
    %10 = arith.addf %8, %9 : vector<8x8x128xf32>
    %cst = arith.constant 0.000000e+00 : f32
    %11 = vector.broadcast %cst : f32 to vector<8x8x128xf32>
    %12 = arith.maximumf %10, %11 : vector<8x8x128xf32>
    %cst_7 = arith.constant 0.000000e+00 : bf16
    %13 = vector.broadcast %cst_7 : bf16 to vector<10x10x128xbf16>
    %c0_8 = arith.constant 0 : index
    %c0_9 = arith.constant 0 : index
    %c0_10 = arith.constant 0 : index
    %14 = vector.load %arg7[%c0_8, %c0_9, %c0_10] : memref<10x10x128xbf16, #tpu.memory_space<vmem>>, vector<10x10x128xbf16>
    tpu.vector_store %arg7[%c0_8, %c0_9, %c0_10], %13 {strides = array<i32>} : memref<10x10x128xbf16, #tpu.memory_space<vmem>>, vector<10x10x128xbf16>,
    %15 = arith.truncf %12 : vector<8x8x128xf32> to vector<8x8x128xbf16>
    %c1 = arith.constant 1 : index
    %c1_11 = arith.constant 1 : index
    %c0_12 = arith.constant 0 : index
    %16 = vector.load %arg7[%c1, %c1_11, %c0_12] : memref<10x10x128xbf16, #tpu.memory_space<vmem>>, vector<8x8x128xbf16>
    tpu.vector_store %arg7[%c1, %c1_11, %c0_12], %15 {strides = array<i32>} : memref<10x10x128xbf16, #tpu.memory_space<vmem>>, vector<8x8x128xbf16>,
    %cst_13 = arith.constant 0.000000e+00 : f32
    %17 = vector.broadcast %cst_13 : f32 to vector<64x128xf32>
    %c0_14 = arith.constant 0 : index
    %c0_15 = arith.constant 0 : index
    %c0_16 = arith.constant 0 : index
    %18 = vector.load %arg7[%c0_14, %c0_15, %c0_16] : memref<10x10x128xbf16, #tpu.memory_space<vmem>>, vector<8x8x128xbf16>
    %19 = vector.shape_cast %18 : vector<8x8x128xbf16> to vector<64x128xbf16>
    %c0_17 = arith.constant 0 : index
    %c0_18 = arith.constant 0 : index
    %c0_19 = arith.constant 0 : index
    %20 = vector.load %arg4[%c0_17, %c0_18, %c0_19] : memref<9x128x128xbf16, #tpu.memory_space<vmem>>, vector<1x128x128xbf16>
    %21 = vector.shape_cast %20 : vector<1x128x128xbf16> to vector<128x128xbf16>
    %cst_20 = arith.constant dense<0.000000e+00> : vector<64x128xf32>
    %22 = tpu.matmul %19, %21, %cst_20 {dimension_numbers = #tpu.dot_dimension_numbers<[1], [0], [0], [1], [0, 0, 1, 1], [], []>} : vector<64x128xbf16>, vector<128x128xbf16>, vector<64x128xf32> -> vector<64x128xf32>
    %23 = arith.addf %17, %22 : vector<64x128xf32>
    %c0_21 = arith.constant 0 : index
    %c1_22 = arith.constant 1 : index
    %c0_23 = arith.constant 0 : index
    %24 = vector.load %arg7[%c0_21, %c1_22, %c0_23] : memref<10x10x128xbf16, #tpu.memory_space<vmem>>, vector<8x8x128xbf16>
    %25 = vector.shape_cast %24 : vector<8x8x128xbf16> to vector<64x128xbf16>
    %c1_24 = arith.constant 1 : index
    %c0_25 = arith.constant 0 : index
    %c0_26 = arith.constant 0 : index
    %26 = vector.load %arg4[%c1_24, %c0_25, %c0_26] : memref<9x128x128xbf16, #tpu.memory_space<vmem>>, vector<1x128x128xbf16>
    %27 = vector.shape_cast %26 : vector<1x128x128xbf16> to vector<128x128xbf16>
    %cst_27 = arith.constant dense<0.000000e+00> : vector<64x128xf32>
    %28 = tpu.matmul %25, %27, %cst_27 {dimension_numbers = #tpu.dot_dimension_numbers<[1], [0], [0], [1], [0, 0, 1, 1], [], []>} : vector<64x128xbf16>, vector<128x128xbf16>, vector<64x128xf32> -> vector<64x128xf32>
    %29 = arith.addf %23, %28 : vector<64x128xf32>
    %c0_28 = arith.constant 0 : index
    %c2 = arith.constant 2 : index
    %c0_29 = arith.constant 0 : index
    %30 = vector.load %arg7[%c0_28, %c2, %c0_29] : memref<10x10x128xbf16, #tpu.memory_space<vmem>>, vector<8x8x128xbf16>
    %31 = vector.shape_cast %30 : vector<8x8x128xbf16> to vector<64x128xbf16>
    %c2_30 = arith.constant 2 : index
    %c0_31 = arith.constant 0 : index
    %c0_32 = arith.constant 0 : index
    %32 = vector.load %arg4[%c2_30, %c0_31, %c0_32] : memref<9x128x128xbf16, #tpu.memory_space<vmem>>, vector<1x128x128xbf16>
    %33 = vector.shape_cast %32 : vector<1x128x128xbf16> to vector<128x128xbf16>
    %cst_33 = arith.constant dense<0.000000e+00> : vector<64x128xf32>
    %34 = tpu.matmul %31, %33, %cst_33 {dimension_numbers = #tpu.dot_dimension_numbers<[1], [0], [0], [1], [0, 0, 1, 1], [], []>} : vector<64x128xbf16>, vector<128x128xbf16>, vector<64x128xf32> -> vector<64x128xf32>
    %35 = arith.addf %29, %34 : vector<64x128xf32>
    %c1_34 = arith.constant 1 : index
    %c0_35 = arith.constant 0 : index
    %c0_36 = arith.constant 0 : index
    %36 = vector.load %arg7[%c1_34, %c0_35, %c0_36] : memref<10x10x128xbf16, #tpu.memory_space<vmem>>, vector<8x8x128xbf16>
    %37 = vector.shape_cast %36 : vector<8x8x128xbf16> to vector<64x128xbf16>
    %c3 = arith.constant 3 : index
    %c0_37 = arith.constant 0 : index
    %c0_38 = arith.constant 0 : index
    %38 = vector.load %arg4[%c3, %c0_37, %c0_38] : memref<9x128x128xbf16, #tpu.memory_space<vmem>>, vector<1x128x128xbf16>
    %39 = vector.shape_cast %38 : vector<1x128x128xbf16> to vector<128x128xbf16>
    %cst_39 = arith.constant dense<0.000000e+00> : vector<64x128xf32>
    %40 = tpu.matmul %37, %39, %cst_39 {dimension_numbers = #tpu.dot_dimension_numbers<[1], [0], [0], [1], [0, 0, 1, 1], [], []>} : vector<64x128xbf16>, vector<128x128xbf16>, vector<64x128xf32> -> vector<64x128xf32>
    %41 = arith.addf %35, %40 : vector<64x128xf32>
    %c1_40 = arith.constant 1 : index
    %c1_41 = arith.constant 1 : index
    %c0_42 = arith.constant 0 : index
    %42 = vector.load %arg7[%c1_40, %c1_41, %c0_42] : memref<10x10x128xbf16, #tpu.memory_space<vmem>>, vector<8x8x128xbf16>
    %43 = vector.shape_cast %42 : vector<8x8x128xbf16> to vector<64x128xbf16>
    %c4 = arith.constant 4 : index
    %c0_43 = arith.constant 0 : index
    %c0_44 = arith.constant 0 : index
    %44 = vector.load %arg4[%c4, %c0_43, %c0_44] : memref<9x128x128xbf16, #tpu.memory_space<vmem>>, vector<1x128x128xbf16>
    %45 = vector.shape_cast %44 : vector<1x128x128xbf16> to vector<128x128xbf16>
    %cst_45 = arith.constant dense<0.000000e+00> : vector<64x128xf32>
    %46 = tpu.matmul %43, %45, %cst_45 {dimension_numbers = #tpu.dot_dimension_numbers<[1], [0], [0], [1], [0, 0, 1, 1], [], []>} : vector<64x128xbf16>, vector<128x128xbf16>, vector<64x128xf32> -> vector<64x128xf32>
    %47 = arith.addf %41, %46 : vector<64x128xf32>
    %c1_46 = arith.constant 1 : index
    %c2_47 = arith.constant 2 : index
    %c0_48 = arith.constant 0 : index
    %48 = vector.load %arg7[%c1_46, %c2_47, %c0_48] : memref<10x10x128xbf16, #tpu.memory_space<vmem>>, vector<8x8x128xbf16>
    %49 = vector.shape_cast %48 : vector<8x8x128xbf16> to vector<64x128xbf16>
    %c5 = arith.constant 5 : index
    %c0_49 = arith.constant 0 : index
    %c0_50 = arith.constant 0 : index
    %50 = vector.load %arg4[%c5, %c0_49, %c0_50] : memref<9x128x128xbf16, #tpu.memory_space<vmem>>, vector<1x128x128xbf16>
    %51 = vector.shape_cast %50 : vector<1x128x128xbf16> to vector<128x128xbf16>
    %cst_51 = arith.constant dense<0.000000e+00> : vector<64x128xf32>
    %52 = tpu.matmul %49, %51, %cst_51 {dimension_numbers = #tpu.dot_dimension_numbers<[1], [0], [0], [1], [0, 0, 1, 1], [], []>} : vector<64x128xbf16>, vector<128x128xbf16>, vector<64x128xf32> -> vector<64x128xf32>
    %53 = arith.addf %47, %52 : vector<64x128xf32>
    %c2_52 = arith.constant 2 : index
    %c0_53 = arith.constant 0 : index
    %c0_54 = arith.constant 0 : index
    %54 = vector.load %arg7[%c2_52, %c0_53, %c0_54] : memref<10x10x128xbf16, #tpu.memory_space<vmem>>, vector<8x8x128xbf16>
    %55 = vector.shape_cast %54 : vector<8x8x128xbf16> to vector<64x128xbf16>
    %c6 = arith.constant 6 : index
    %c0_55 = arith.constant 0 : index
    %c0_56 = arith.constant 0 : index
    %56 = vector.load %arg4[%c6, %c0_55, %c0_56] : memref<9x128x128xbf16, #tpu.memory_space<vmem>>, vector<1x128x128xbf16>
    %57 = vector.shape_cast %56 : vector<1x128x128xbf16> to vector<128x128xbf16>
    %cst_57 = arith.constant dense<0.000000e+00> : vector<64x128xf32>
    %58 = tpu.matmul %55, %57, %cst_57 {dimension_numbers = #tpu.dot_dimension_numbers<[1], [0], [0], [1], [0, 0, 1, 1], [], []>} : vector<64x128xbf16>, vector<128x128xbf16>, vector<64x128xf32> -> vector<64x128xf32>
    %59 = arith.addf %53, %58 : vector<64x128xf32>
    %c2_58 = arith.constant 2 : index
    %c1_59 = arith.constant 1 : index
    %c0_60 = arith.constant 0 : index
    %60 = vector.load %arg7[%c2_58, %c1_59, %c0_60] : memref<10x10x128xbf16, #tpu.memory_space<vmem>>, vector<8x8x128xbf16>
    %61 = vector.shape_cast %60 : vector<8x8x128xbf16> to vector<64x128xbf16>
    %c7 = arith.constant 7 : index
    %c0_61 = arith.constant 0 : index
    %c0_62 = arith.constant 0 : index
    %62 = vector.load %arg4[%c7, %c0_61, %c0_62] : memref<9x128x128xbf16, #tpu.memory_space<vmem>>, vector<1x128x128xbf16>
    %63 = vector.shape_cast %62 : vector<1x128x128xbf16> to vector<128x128xbf16>
    %cst_63 = arith.constant dense<0.000000e+00> : vector<64x128xf32>
    %64 = tpu.matmul %61, %63, %cst_63 {dimension_numbers = #tpu.dot_dimension_numbers<[1], [0], [0], [1], [0, 0, 1, 1], [], []>} : vector<64x128xbf16>, vector<128x128xbf16>, vector<64x128xf32> -> vector<64x128xf32>
    %65 = arith.addf %59, %64 : vector<64x128xf32>
    %c2_64 = arith.constant 2 : index
    %c2_65 = arith.constant 2 : index
    %c0_66 = arith.constant 0 : index
    %66 = vector.load %arg7[%c2_64, %c2_65, %c0_66] : memref<10x10x128xbf16, #tpu.memory_space<vmem>>, vector<8x8x128xbf16>
    %67 = vector.shape_cast %66 : vector<8x8x128xbf16> to vector<64x128xbf16>
    %c8 = arith.constant 8 : index
    %c0_67 = arith.constant 0 : index
    %c0_68 = arith.constant 0 : index
    %68 = vector.load %arg4[%c8, %c0_67, %c0_68] : memref<9x128x128xbf16, #tpu.memory_space<vmem>>, vector<1x128x128xbf16>
    %69 = vector.shape_cast %68 : vector<1x128x128xbf16> to vector<128x128xbf16>
    %cst_69 = arith.constant dense<0.000000e+00> : vector<64x128xf32>
    %70 = tpu.matmul %67, %69, %cst_69 {dimension_numbers = #tpu.dot_dimension_numbers<[1], [0], [0], [1], [0, 0, 1, 1], [], []>} : vector<64x128xbf16>, vector<128x128xbf16>, vector<64x128xf32> -> vector<64x128xf32>
    %71 = arith.addf %65, %70 : vector<64x128xf32>
    %72 = vector.shape_cast %71 : vector<64x128xf32> to vector<8x8x128xf32>
    %73 = arith.truncf %72 : vector<8x8x128xf32> to vector<8x8x128xbf16>
    %c0_70 = arith.constant 0 : index
    %c0_71 = arith.constant 0 : index
    %c0_72 = arith.constant 0 : index
    %c0_73 = arith.constant 0 : index
    %74 = vector.load %arg5[%c0_70, %c0_71, %c0_72, %c0_73] : memref<1x8x8x128xbf16, #tpu.memory_space<vmem>>, vector<1x8x8x128xbf16>
    %75 = vector.shape_cast %74 : vector<1x8x8x128xbf16> to vector<8x8x128xbf16>
    %76 = vector.shape_cast %73 : vector<8x8x128xbf16> to vector<1x8x8x128xbf16>
    tpu.vector_store %arg5[%c0_70, %c0_71, %c0_72, %c0_73], %76 {strides = array<i32>} : memref<1x8x8x128xbf16, #tpu.memory_space<vmem>>, vector<1x8x8x128xbf16>,
    %cst_74 = arith.constant dense<0.000000e+00> : vector<128xf32>
    %77 = vector.multi_reduction <add>, %71, %cst_74 [0] : vector<64x128xf32> to vector<128xf32>
    %78 = vector.shape_cast %77 : vector<128xf32> to vector<1x128xf32>
    %79 = arith.mulf %71, %71 : vector<64x128xf32>
    %cst_75 = arith.constant dense<0.000000e+00> : vector<128xf32>
    %80 = vector.multi_reduction <add>, %79, %cst_75 [0] : vector<64x128xf32> to vector<128xf32>
    %81 = vector.shape_cast %80 : vector<128xf32> to vector<1x128xf32>
    %82 = tpu.concatenate %78, %81 in 0 : vector<1x128xf32>, vector<1x128xf32> -> vector<2x128xf32>
    %c0_76 = arith.constant 0 : index
    %c0_77 = arith.constant 0 : index
    %c0_78 = arith.constant 0 : index
    %83 = vector.load %arg6[%c0_76, %c0_77, %c0_78] : memref<1x2x128xf32, #tpu.memory_space<vmem>>, vector<1x2x128xf32>
    %84 = vector.shape_cast %83 : vector<1x2x128xf32> to vector<2x128xf32>
    %85 = vector.shape_cast %82 : vector<2x128xf32> to vector<1x2x128xf32>
    tpu.vector_store %arg6[%c0_76, %c0_77, %c0_78], %85 {strides = array<i32>} : memref<1x2x128xf32, #tpu.memory_space<vmem>>, vector<1x2x128xf32>,
    return
  }
  func.func @transform_0(%arg0: i32) -> (i32, i32, i32, i32) {
    %c0_i32 = arith.constant 0 : i32
    %c0_i32_0 = arith.constant 0 : i32
    %c0_i32_1 = arith.constant 0 : i32
    %c0_i32_2 = arith.constant 0 : i32
    return %arg0, %c0_i32, %c0_i32_0, %c0_i32_1 : i32, i32, i32, i32
  }
  func.func @transform_1(%arg0: i32) -> (i32, i32) {
    %c0_i32 = arith.constant 0 : i32
    %c0_i32_0 = arith.constant 0 : i32
    %c0_i32_1 = arith.constant 0 : i32
    return %c0_i32, %c0_i32_0 : i32, i32
  }
  func.func @transform_2(%arg0: i32) -> (i32, i32) {
    %c0_i32 = arith.constant 0 : i32
    %c0_i32_0 = arith.constant 0 : i32
    %c0_i32_1 = arith.constant 0 : i32
    return %c0_i32, %c0_i32_0 : i32, i32
  }
  func.func @transform_3(%arg0: i32) -> (i32, i32, i32) {
    %c0_i32 = arith.constant 0 : i32
    %c0_i32_0 = arith.constant 0 : i32
    %c0_i32_1 = arith.constant 0 : i32
    %c0_i32_2 = arith.constant 0 : i32
    return %c0_i32, %c0_i32_0, %c0_i32_1 : i32, i32, i32
  }
  func.func @transform_4(%arg0: i32) -> (i32, i32, i32, i32) {
    %c0_i32 = arith.constant 0 : i32
    %c0_i32_0 = arith.constant 0 : i32
    %c0_i32_1 = arith.constant 0 : i32
    %c0_i32_2 = arith.constant 0 : i32
    return %arg0, %c0_i32, %c0_i32_0, %c0_i32_1 : i32, i32, i32, i32
  }
  func.func @transform_5(%arg0: i32) -> (i32, i32, i32) {
    %c0_i32 = arith.constant 0 : i32
    %c0_i32_0 = arith.constant 0 : i32
    %c0_i32_1 = arith.constant 0 : i32
    return %arg0, %c0_i32, %c0_i32_0 : i32, i32, i32
  }
}

</mosaic_0001>

<bundles_post_ra>
// kernel: basic_block_forward.5
= control target key start
LH: loop header
LB: loop body
LE: loop exit
PB: predicated region body
PF: predicated region fallthrough
CT: control target
= control target key end

     0   :  { %s564_s21 = smov 0   ;;  %s652_s0 = inlined_call_operand.vmem [shape: bf16[2,8,8,128], index: 0, kind: input, shape index: {}]   ;;  %s653_s1 = inlined_call_operand.vmem [shape: bf16[2,8,8,128], index: 1, kind: input, shape index: {}]   ;;  %s654_s2 = inlined_call_operand.vmem [shape: f32[1,128], index: 2, kind: input, shape index: {}]   ;;  %s655_s3 = inlined_call_operand.vmem [shape: f32[1,128], index: 3, kind: input, shape index: {}]   ;;  %s656_s4 = inlined_call_operand.vmem [shape: f32[1,128], index: 4, kind: input, shape index: {}]   ;;  %s657_s5 = inlined_call_operand.vmem [shape: f32[1,128], index: 5, kind: input, shape index: {}]   ;;  %s658_s6 = inlined_call_operand.vmem [shape: f32[2,8,8,128], index: 6, kind: output, shape index: {}]  }
   0x1 LB: > { %s455_s22 = sadd.s32 4294967295, %s527_s21   ;;  %p459_p0 = scmp.ge.s32.totalorder %s527_s21, 1  ;;  %s527_s21 = sphi %s564_s21, %s16_s21  }
   0x2   : > { %p222_p1 = scmp.lt.s32.totalorder %s527_s21, 3 }
   0x4   : > { %p223_p2 = pnand %p459_p0, %p222_p1 }
   0x5   : > { %p257_p3 = scmp.lt.s32.totalorder (!%p223_p2), %s455_s22, 1  ;;  %v588_v0 = vld [vmem:[%s654_s2] ss:$0 sm:$0xff] (!%p223_p2) }
   0x6   : > { %226 = sbr.rel (%p223_p2) target bundleno = 42 (0x2a), region = 44  ;;  %v593_v1 = vld [vmem:[%s656_s4] ss:$0 sm:$0xff] (!%p223_p2) }
   0x7   : > { %v602_v10 = vld [vmem:[%s655_s3] ss:$0 sm:$0xff] (!%p223_p2) }
   0x8   : > { %v469_v29 = vld [vmem:[%s657_s5] ss:$0 sm:$0xff] (!%p223_p2) }
   0xd   : > { %s660_s22 = smov (!%p257_p3, %s455_s22), 1 }
   0xe   : > { %s472_s23 = sshll.u32 %s660_s22, 5  ;;  %s474_s14 = sshll.u32 %s660_s22, 6 }
   0xf   : > { %s578_s26 = scalar_lea.vmem %s652_s0, %s472_s23  ;;  %s583_s29 = scalar_lea.vmem %s653_s1, %s472_s23 }
  0x10   : > { %v476_v2 = vld [vmem:[%s578_s26] sm:$0xff]   ;;  %v507_v4 = vld [vmem:[%s578_s26 + $0x8] sm:$0xff]   ;;  %v508_v15 = vld [vmem:[%s578_s26 + $0x10] sm:$0xff]   ;;  %s632_s17 = scalar_lea.vmem %s658_s6, %s474_s14 }
  0x11   : > { %v492_v3 = vld [vmem:[%s583_s29] sm:$0xff]   ;;  %v477_v5 = vunpack.c.l.bf16 %v476_v2  ;;  %v478_v7 = vunpack.c.h.bf16 %v476_v2  ;;  %v510_v9 = vld [vmem:[%s583_s29 + $0x8] sm:$0xff]   ;;  %v481_v11 = vunpack.c.l.bf16 %v507_v4  ;;  %v482_v13 = vunpack.c.h.bf16 %v507_v4  ;;  %v511_v16 = vld [vmem:[%s583_s29 + $0x10] sm:$0xff]  }
  0x12   : > { %v493_v6 = vunpack.c.l.bf16 %v492_v3  ;;  %v494_v8 = vunpack.c.h.bf16 %v492_v3  ;;  %v497_v12 = vunpack.c.l.bf16 %v510_v9  ;;  %v498_v14 = vunpack.c.h.bf16 %v510_v9  ;;  %v509_v34 = vld [vmem:[%s578_s26 + $0x18] sm:$0xff]  }
  0x13   : > { %v298_v17 = vmul.f32 %v477_v5, %v588_v0  ;;  %v299_v19 = vmul.f32 %v478_v7, %v588_v0  ;;  %v300_v21 = vmul.f32 %v481_v11, %v588_v0  ;;  %v301_v23 = vmul.f32 %v482_v13, %v588_v0  ;;  %v512_v39 = vld [vmem:[%s583_s29 + $0x18] sm:$0xff]  }
  0x14   : > { %v342_v18 = vmul.f32 %v493_v6, %v593_v1  ;;  %v343_v20 = vmul.f32 %v494_v8, %v593_v1  ;;  %v344_v22 = vmul.f32 %v497_v12, %v593_v1  ;;  %v345_v24 = vmul.f32 %v498_v14, %v593_v1 }
  0x15   : > { %v312_v25 = vadd.f32 %v602_v10, %v298_v17  ;;  %v313_v26 = vadd.f32 %v602_v10, %v299_v19  ;;  %v485_v27 = vunpack.c.l.bf16 %v508_v15  ;;  %v501_v28 = vunpack.c.l.bf16 %v511_v16 }
  0x16   : > { %v314_v30 = vadd.f32 %v602_v10, %v300_v21  ;;  %v315_v31 = vadd.f32 %v602_v10, %v301_v23  ;;  %v486_v32 = vunpack.c.h.bf16 %v508_v15  ;;  %v502_v33 = vunpack.c.h.bf16 %v511_v16 }
  0x17   : > { %v350_v35 = vadd.f32 %v342_v18, %v312_v25  ;;  %v351_v36 = vadd.f32 %v343_v20, %v313_v26  ;;  %v302_v37 = vmul.f32 %v485_v27, %v588_v0  ;;  %v346_v38 = vmul.f32 %v501_v28, %v593_v1 }
  0x18   : > { %v352_v40 = vadd.f32 %v344_v22, %v314_v30  ;;  %v353_v41 = vadd.f32 %v345_v24, %v315_v31  ;;  %v303_v42 = vmul.f32 %v486_v32, %v588_v0  ;;  %v347_v43 = vmul.f32 %v502_v33, %v593_v1 }
  0x19   : > { %v364_v44 = vadd.f32 %v469_v29, %v350_v35  ;;  %v365_v45 = vadd.f32 %v469_v29, %v351_v36  ;;  %v316_v46 = vadd.f32 %v602_v10, %v302_v37  ;;  %v489_v47 = vunpack.c.l.bf16 %v509_v34 }
  0x1a   : > { %v366_v48 = vadd.f32 %v469_v29, %v352_v40  ;;  %v367_v49 = vadd.f32 %v469_v29, %v353_v41  ;;  %v317_v50 = vadd.f32 %v602_v10, %v303_v42  ;;  %v505_v51 = vunpack.c.l.bf16 %v512_v39 }
  0x1b   : > { %v372_v52 = vmax.f32 %v364_v44, 0.0  ;;  %v373_v53 = vmax.f32 %v365_v45, 0.0  ;;  %v354_v54 = vadd.f32 %v346_v38, %v316_v46  ;;  %v304_v55 = vmul.f32 %v489_v47, %v588_v0 }
  0x1c   : > { %v374_v56 = vmax.f32 %v366_v48, 0.0  ;;  %v375_v57 = vmax.f32 %v367_v49, 0.0  ;;  %v355_v58 = vadd.f32 %v347_v43, %v317_v50  ;;  %v348_v59 = vmul.f32 %v505_v51, %v593_v1 }
  0x1d   : > { %380 = vst [vmem:[%s632_s17] sm:$0xff] %v372_v52  ;;  %381 = vst [vmem:[%s632_s17 + $0x8] sm:$0xff] %v373_v53  ;;  %v368_v60 = vadd.f32 %v469_v29, %v354_v54  ;;  %v318_v61 = vadd.f32 %v602_v10, %v304_v55  ;;  %v490_v62 = vunpack.c.h.bf16 %v509_v34  ;;  %v506_v63 = vunpack.c.h.bf16 %v512_v39 }
  0x1e   : > { %382 = vst [vmem:[%s632_s17 + $0x10] sm:$0xff] %v374_v56  ;;  %383 = vst [vmem:[%s632_s17 + $0x18] sm:$0xff] %v375_v57  ;;  %v369_v2 = vadd.f32 %v469_v29, %v355_v58 }
  0x1f   : > { %v376_v3 = vmax.f32 %v368_v60, 0.0  ;;  %v356_v4 = vadd.f32 %v348_v59, %v318_v61  ;;  %v305_v5 = vmul.f32 %v490_v62, %v588_v0  ;;  %v349_v6 = vmul.f32 %v506_v63, %v593_v1 }
  0x20   : > { %v377_v7 = vmax.f32 %v369_v2, 0.0 }
  0x21   : > { %384 = vst [vmem:[%s632_s17 + $0x20] sm:$0xff] %v376_v3  ;;  %v370_v8 = vadd.f32 %v469_v29, %v356_v4  ;;  %v319_v9 = vadd.f32 %v602_v10, %v305_v5 }
  0x22   : > { %385 = vst [vmem:[%s632_s17 + $0x28] sm:$0xff] %v377_v7 }
  0x23   : > { %v378_v11 = vmax.f32 %v370_v8, 0.0  ;;  %v357_v12 = vadd.f32 %v349_v6, %v319_v9 }
  0x25   : > { %386 = vst [vmem:[%s632_s17 + $0x30] sm:$0xff] %v378_v11  ;;  %v371_v13 = vadd.f32 %v469_v29, %v357_v12 }
  0x27   : > { %v379_v14 = vmax.f32 %v371_v13, 0.0 }
  0x29   : > { %387 = vst [vmem:[%s632_s17 + $0x38] sm:$0xff] %v379_v14 }
  0x2a PF: > { %s16_s21 = sadd.s32 1, %s527_s21  }
  0x2b   : > { %p13_p4 = scmp.ge.s32.totalorder %s16_s21, 4  }
  0x2d   :  { %15 = sbr.rel (!%p13_p4) target bundleno = 1 (0x1), region = 77 }

// kernel: basic_block_forward.3
= control target key start
LH: loop header
LB: loop body
LE: loop exit
PB: predicated region body
PF: predicated region fallthrough
CT: control target
= control target key end

     0   :  { %s3489_s21 = smov 0   ;;  %s3907_s0 = inlined_call_operand.vmem [shape: bf16[2,4,9,9,128], index: 0, kind: input, shape index: {}]   ;;  %s3908_s1 = inlined_call_operand.vmem [shape: bf16[9,128,128], index: 1, kind: input, shape index: {}]   ;;  %s3909_s2 = inlined_call_operand.vmem [shape: bf16[128,128], index: 2, kind: input, shape index: {}]   ;;  %s3910_s3 = inlined_call_operand.vmem [shape: bf16[2,8,8,128], index: 3, kind: output, shape index: {0}]   ;;  %s3911_s4 = inlined_call_operand.vmem [shape: f32[2,2,128], index: 4, kind: output, shape index: {1}]   ;;  %s3912_s5 = inlined_call_operand.vmem [shape: bf16[2,8,8,128], index: 5, kind: output, shape index: {2}]   ;;  %s3913_s6 = inlined_call_operand.vmem [shape: f32[2,2,128], index: 6, kind: output, shape index: {3}]  }
   0x1 LB: > { %s2527_s22 = sadd.s32 4294967295, %s3452_s21   ;;  %p2531_p0 = scmp.ge.s32.totalorder %s3452_s21, 1  ;;  %s3452_s21 = sphi %s3489_s21, %s17_s21  }
   0x2   : > { %p219_p1 = scmp.lt.s32.totalorder %s3452_s21, 3 }
   0x4   : > { %p220_p2 = pnand %p2531_p0, %p219_p1 }
   0x5   : > { %v3338_v0 = vld [vmem:[%s3908_s1 + $0x40] sm:$0xff] (!%p220_p2)   ;;  %p262_p3 = scmp.lt.s32.totalorder (!%p220_p2), %s2527_s22, 1  ;;  %v3340_v2 = vld [vmem:[%s3908_s1 + $0x48] sm:$0xff] (!%p220_p2)   ;;  %v3342_v4 = vld [vmem:[%s3908_s1 + $0x50] sm:$0xff] (!%p220_p2)   ;;  %vm626_vm0 = vsmask.f32 (!%p220_p2), 3328 }
   0x6   : > { %223 = sbr.rel (%p220_p2) target bundleno = 415 (0x19f), region = 32  ;;  %v3339_v1 = vld [vmem:[%s3908_s1 + $0x100] sm:$0xff] (!%p220_p2)   ;;  %3025 = vmatprep.subr.bf16.mxu1 (!%p220_p2), %v3338_v0  ;;  %v3341_v3 = vld [vmem:[%s3908_s1 + $0x108] sm:$0xff] (!%p220_p2)   ;;  %v3343_v5 = vld [vmem:[%s3908_s1 + $0x110] sm:$0xff] (!%p220_p2)   ;;  %vm627_vm1 = vsmask.f32 (!%p220_p2), 7440 }
   0x7   : > { %3121 = vmatprep.subr.bf16.mxu0 (!%p220_p2), %v3339_v1  ;;  %3026 = vmatpush3.bf16.msra.mxu1 (!%p220_p2), %v3338_v0  ;;  %v3344_v6 = vld [vmem:[%s3908_s1 + $0x58] sm:$0xff] (!%p220_p2)   ;;  %v3346_v8 = vld [vmem:[%s3908_s1 + $0x60] sm:$0xff] (!%p220_p2)   ;;  %v3348_v10 = vld [vmem:[%s3908_s1 + $0x68] sm:$0xff] (!%p220_p2)   ;;  %vm2322_vm3 = vcmask (!%p220_p2), 1040384  }
   0x8   : > { %3122 = vmatpush3.bf16.msra.mxu0 (!%p220_p2), %v3339_v1  ;;  %3027 = vmatprep.subr.bf16.mxu1 (!%p220_p2), %v3340_v2  ;;  %v3345_v7 = vld [vmem:[%s3908_s1 + $0x118] sm:$0xff] (!%p220_p2)   ;;  %v3347_v9 = vld [vmem:[%s3908_s1 + $0x120] sm:$0xff] (!%p220_p2)   ;;  %v3349_v12 = vld [vmem:[%s3908_s1 + $0x128] sm:$0xff] (!%p220_p2)  }
   0x9   : > { %3123 = vmatprep.subr.bf16.mxu0 (!%p220_p2), %v3341_v3  ;;  %v3350_v14 = vld [vmem:[%s3908_s1 + $0x70] sm:$0xff] (!%p220_p2)   ;;  %v3352_v16 = vld [vmem:[%s3908_s1 + $0x78] sm:$0xff] (!%p220_p2)   ;;  %v3355_v18 = vld [vmem:[%s3908_s1] sm:$0xff] (!%p220_p2)  }
   0xa   : > { %v3351_v15 = vld [vmem:[%s3908_s1 + $0x130] sm:$0xff] (!%p220_p2)   ;;  %v3353_v17 = vld [vmem:[%s3908_s1 + $0x138] sm:$0xff] (!%p220_p2)   ;;  %v3357_v19 = vld [vmem:[%s3908_s1 + $0x140] sm:$0xff] (!%p220_p2)  }
   0xb   : > { %3028 = vmatpush3.bf16.msra.mxu1 (!%p220_p2), %v3340_v2  ;;  %v3360_v22 = vld [vmem:[%s3908_s1 + $0x8] sm:$0xff] (!%p220_p2)   ;;  %v3362_v26 = vld [vmem:[%s3908_s1 + $0x10] sm:$0xff] (!%p220_p2)   ;;  %v3364_v28 = vld [vmem:[%s3908_s1 + $0x18] sm:$0xff] (!%p220_p2)  }
   0xc   : > { %3124 = vmatpush3.bf16.msra.mxu0 (!%p220_p2), %v3341_v3  ;;  %3029 = vmatprep.subr.bf16.mxu1 (!%p220_p2), %v3342_v4  ;;  %v3361_v23 = vld [vmem:[%s3908_s1 + $0x148] sm:$0xff] (!%p220_p2)   ;;  %v3363_v27 = vld [vmem:[%s3908_s1 + $0x150] sm:$0xff] (!%p220_p2)   ;;  %v3365_v31 = vld [vmem:[%s3908_s1 + $0x158] sm:$0xff] (!%p220_p2)  }
   0xd   : > { %s3917_s22 = smov (!%p262_p3, %s2527_s22), 1  ;;  %3125 = vmatprep.subr.bf16.mxu0 %v3343_v5  ;;  %v3366_v38 = vld [vmem:[%s3908_s1 + $0x20] sm:$0xff]   ;;  %v3368_v47 = vld [vmem:[%s3908_s1 + $0x28] sm:$0xff]   ;;  %vm3604_vm2 = vmor %vm626_vm0, %vm627_vm1 }
   0xe   : > { %s3329_s15 = smul.u32 288, %s3917_s22  ;;  %v3367_v43 = vld [vmem:[%s3908_s1 + $0x160] sm:$0xff]   ;;  %v3369_v50 = vld [vmem:[%s3908_s1 + $0x168] sm:$0xff]   ;;  %v3371_v2 = vld [vmem:[%s3908_s1 + $0x30] sm:$0xff]   ;;  %s2535_s23 = sshll.u32 %s3917_s22, 1 }
   0xf   : > { %3030 = vmatpush3.bf16.msra.mxu1 %v3342_v4  ;;  %s284_s27 = scalar_lea.vmem %s3913_s6, %s2535_s23  ;;  %s275_s30 = scalar_lea.vmem %s3911_s4, %s2535_s23 }
  0x10   : > { %3126 = vmatpush3.bf16.msra.mxu0 %v3343_v5  ;;  %3031 = vmatprep.subr.bf16.mxu1 %v3344_v6  ;;  %s3533_s24 = scalar_lea.vmem %s3907_s0, %s3329_s15  ;;  %s2857_s15 = sshll.u32 %s3917_s22, 5 }
  0x11   : > { %3127 = vmatprep.subr.bf16.mxu0 %v3345_v7  ;;  %v3354_v11 = vld [vmem:[%s3533_s24 + $0x48] ss:$8 sps:$4 sm:$0xff]   ;;  %v3356_v13 = vld [vmem:[%s3533_s24 + $0xd8] ss:$8 sps:$4 sm:$0xff]   ;;  %v2696_v34 = vld [vmem:[%s3533_s24 + $0x94] sm:$0x1]  ;;  %s3887_s20 = scalar_lea.vmem %s3910_s3, %s2857_s15 }
  0x12   : > { %3041 = vmatprep.mubr.bf16.mxu1 %v3354_v11  ;;  %3137 = vmatprep.mubr.bf16.mxu0 %v3356_v13  ;;  %v3358_v20 = vld [vmem:[%s3533_s24 + $0x58] ss:$8 sps:$4 sm:$0xff]   ;;  %v3359_v21 = vld [vmem:[%s3533_s24 + $0xe8] ss:$8 sps:$4 sm:$0xff]   ;;  %v2698_v39 = vld [vmem:[%s3533_s24 + $0x9c] sm:$0x1] }
  0x13   : > { %3032 = vmatpush3.bf16.msra.mxu1 %v3344_v6  ;;  %v3370_v24 = vld [vmem:[%s3533_s24 + $0x68] ss:$8 sps:$4 sm:$0xff]   ;;  %v3372_v25 = vld [vmem:[%s3533_s24 + $0xf8] ss:$8 sps:$4 sm:$0xff]   ;;  %v1392_v40 = vshll.u32 %v2696_v34, 16  ;;  %v1406_v46 = vshll.u32 %v2698_v39, 16 }
  0x14   : > { %3128 = vmatpush3.bf16.msra.mxu0 %v3345_v7  ;;  %3033 = vmatprep.subr.bf16.mxu1 %v3346_v8  ;;  %v3374_v29 = vld [vmem:[%s3533_s24 + $0x78] ss:$8 sps:$4 sm:$0xff]   ;;  %v3375_v30 = vld [vmem:[%s3533_s24 + $0x108] ss:$8 sps:$4 sm:$0xff]   ;;  %v2700_v57 = vld [vmem:[%s3533_s24 + $0xa4] sm:$0x1] }
  0x15   : > { %3129 = vmatprep.subr.bf16.mxu0 %v3347_v9  ;;  %v3378_v32 = vld [vmem:[%s3533_s24] ss:$8 sps:$4 sm:$0xff]   ;;  %v2695_v33 = vld [vmem:[%s3533_s24 + $0x90] sm:$0xf]  ;;  %v2697_v35 = vld [vmem:[%s3533_s24 + $0x98] sm:$0xf] }
  0x16   : > { %v1383_v36 = vshrl.u32 %v2695_v33, 16  ;;  %v1386_v37 = vshll.u32 %v2695_v33, 16  ;;  %v1397_v41 = vshrl.u32 %v2697_v35, 16  ;;  %v1400_v42 = vshll.u32 %v2697_v35, 16  ;;  %v2699_v56 = vld [vmem:[%s3533_s24 + $0xa0] sm:$0xf] }
  0x17   : > { %3034 = vmatpush3.bf16.msra.mxu1 %v3346_v8  ;;  %v1394_v52 = vrot.slane %v1392_v40, 5  ;;  %v1408_v55 = vrot.slane %v1406_v46, 5  ;;  %v2701_v59 = vld [vmem:[%s3533_s24 + $0xa8] sm:$0xf]  ;;  %v2702_v60 = vld [vmem:[%s3533_s24 + $0xac] sm:$0x1] }
  0x18   : > { %3130 = vmatpush3.bf16.msra.mxu0 %v3347_v9  ;;  %3035 = vmatprep.subr.bf16.mxu1 %v3348_v10  ;;  %v1385_v44 = vrot.slane %v1383_v36, 4  ;;  %v1388_v45 = vrot.slane %v1386_v37, 5  ;;  %v1399_v48 = vrot.slane %v1397_v41, 4  ;;  %v1402_v49 = vrot.slane %v1400_v42, 5  ;;  %v3373_v6 = vld [vmem:[%s3908_s1 + $0x170] sm:$0xff]  }
  0x19   : > { %3131 = vmatprep.subr.bf16.mxu0 %v3349_v12  ;;  %v1411_v61 = vshrl.u32 %v2699_v56, 16  ;;  %v1414_v63 = vshll.u32 %v2699_v56, 16  ;;  %v1420_v0 = vshll.u32 %v2700_v57, 16  ;;  %v1425_v1 = vshrl.u32 %v2701_v59, 16  ;;  %v3392_v37 = vld [vmem:[%s3533_s24 + $0x20] ss:$8 sps:$4 sm:$0xff]  }
  0x1a   : > { %v1389_v51 = vor.u32 %v1388_v45, %v1385_v44  ;;  %v1403_v54 = vor.u32 %v1402_v49, %v1399_v48  ;;  %v1428_v5 = vshll.u32 %v2701_v59, 16  ;;  %v3395_v48 = vld [vmem:[%s3533_s24 + $0x30] ss:$8 sps:$4 sm:$0xff]   ;;  %v2707_v49 = vld [vmem:[%s3533_s24 + $0xc0] sm:$0xf] }
  0x1b   : > { %3036 = vmatpush3.bf16.msra.mxu1 %v3348_v10  ;;  %v1413_v4 = vrot.slane %v1411_v61, 4  ;;  %v1416_v8 = vrot.slane %v1414_v63, 5  ;;  %v1427_v9 = vrot.slane %v1425_v1, 4  ;;  %v1434_v10 = vshll.u32 %v2702_v60, 16  ;;  %v3386_v59 = vld [vmem:[%s3908_s1 + $0x98] sm:$0xff]  }
  0x1c   : > { %3132 = vmatpush3.bf16.msra.mxu0 %v3349_v12  ;;  %3037 = vmatprep.subr.bf16.mxu1 %v3350_v14  ;;  %v1390_v58 = vrot.slane %v1389_v51, 4  ;;  %v1404_v62 = vrot.slane %v1403_v54, 4  ;;  %v1422_v12 = vrot.slane %v1420_v0, 5  ;;  %v1430_v13 = vrot.slane %v1428_v5, 5  ;;  %v2709_v51 = vld [vmem:[%s3533_s24 + $0xc8] sm:$0xf] }
  0x1d   : > { %3133 = vmatprep.subr.bf16.mxu0 %v3351_v15  ;;  %v1467_v56 = vshrl.u32 %v2707_v49, 16  ;;  %v1470_v57 = vshll.u32 %v2707_v49, 16  ;;  %v1481_v61 = vshrl.u32 %v2709_v51, 16 }
  0x1e   : > { %v1395_v3 = vsel %vm3604_vm2, %v1390_v58, %v1394_v52  ;;  %v1409_v7 = vsel %vm3604_vm2, %v1404_v62, %v1408_v55  ;;  %v3385_v52 = vld [vmem:[%s3908_s1 + $0x190] sm:$0xff]   ;;  %v2710_v55 = vld [vmem:[%s3533_s24 + $0xcc] sm:$0x1]  ;;  %v1484_v62 = vshll.u32 %v2709_v51, 16 }
  0x1f   : > { %3038 = vmatpush3.bf16.msra.mxu1 %v3350_v14  ;;  %v2727_v11 = vcombine.low %v1395_v3, %v1409_v7  ;;  %v3376_v14 = vld [vmem:[%s3908_s1 + $0x38] sm:$0xff]   ;;  %v1490_v63 = vshll.u32 %v2710_v55, 16  ;;  %v1469_v1 = vrot.slane %v1467_v56, 4 }
  0x20   : > { %3134 = vmatpush3.bf16.msra.mxu0 %v3351_v15  ;;  %3039 = vmatprep.subr.bf16.mxu1 %v3352_v16  ;;  %v1417_v15 = vor.u32 %v1416_v8, %v1413_v4  ;;  %v3387_v4 = vld [vmem:[%s3908_s1 + $0x198] sm:$0xff]   ;;  %v1486_v7 = vrot.slane %v1484_v62, 5 }
  0x21   : > { %3135 = vmatprep.subr.bf16.mxu0 %v3353_v17  ;;  %v1492_v8 = vrot.slane %v1490_v63, 5 }
  0x23   : > { %3040 = vmatpush3.bf16.msra.mxu1 %v3352_v16  ;;  %v1431_v16 = vor.u32 %v1430_v13, %v1427_v9  ;;  %v3388_v13 = vld [vmem:[%s3908_s1 + $0xa0] sm:$0xff]  }
  0x24   : > { %3136 = vmatpush3.bf16.msra.mxu0 %v3353_v17  ;;  %3049 = vmatprep.subr.bf16.mxu1 %v3355_v18  ;;  %v1418_v17 = vrot.slane %v1417_v15, 4 }
  0x25   : > { %3169 = vmatprep.subr.bf16.mxu0 %v3357_v19 }
  0x26   : > { %3042 = vmatmul.mubr.bf16.vlgmr.msra.gmra.mrb[0].mxu1 %v3358_v20  ;;  %v1432_v20 = vrot.slane %v1431_v16, 4  ;;  %v612_v16 = vld [vmem:[%s3533_s24 + $0x8] sm:$0xf] }
  0x27   : > { %3050 = vmatpush3.bf16.msra.mxu1 %v3355_v18  ;;  %3138 = vmatmul.mubr.bf16.vlgmr.msra.gmra.mrb[0].mxu0 %v3359_v21  ;;  %v1436_v18 = vrot.slane %v1434_v10, 5  ;;  %v3379_v21 = vld [vmem:[%s3908_s1 + $0x80] sm:$0xff]  }
  0x28   : > { %3170 = vmatpush3.bf16.msra.mxu0 %v3357_v19  ;;  %3051 = vmatprep.subr.bf16.mxu1 %v3360_v22  ;;  %v3377_v19 = vld [vmem:[%s3908_s1 + $0x178] sm:$0xff]  }
  0x29   : > { %3171 = vmatprep.subr.bf16.mxu0 %v3361_v23  ;;  %3045 = vmatprep.mubr.bf16.mxu1 %v3370_v24  ;;  %v3380_v24 = vld [vmem:[%s3908_s1 + $0x180] sm:$0xff]  }
  0x2a   : > { %3141 = vmatprep.mubr.bf16.mxu0 %v3372_v25  ;;  %v3381_v25 = vld [vmem:[%s3533_s24 + $0x10] ss:$8 sps:$4 sm:$0xff]  }
  0x2b   : > { %3052 = vmatpush3.bf16.msra.mxu1 %v3360_v22  ;;  %v1423_v22 = vsel %vm3604_vm2, %v1418_v17, %v1422_v12  ;;  %v611_v12 = vld [vmem:[%s3533_s24 + $0x4] sm:$0x1]  ;;  %v613_v17 = vld [vmem:[%s3533_s24 + $0xc] sm:$0x1] }
  0x2c   : > { %3172 = vmatpush3.bf16.msra.mxu0 %v3361_v23  ;;  %3053 = vmatprep.subr.bf16.mxu1 %v3362_v26  ;;  %v1437_v23 = vsel %vm3604_vm2, %v1432_v20, %v1436_v18 }
  0x2d   : > { %3173 = vmatprep.subr.bf16.mxu0 %v3363_v27 }
  0x2e   : > { %3046 = vmatmul.mubr.bf16.gmra.mrb[4].mxu1 %v3374_v29  ;;  %v3383_v29 = vld [vmem:[%s3908_s1 + $0x188] sm:$0xff]  }
  0x2f   : > { %3054 = vmatpush3.bf16.msra.mxu1 %v3362_v26  ;;  %3142 = vmatmul.mubr.bf16.gmra.mrb[4].mxu0 %v3375_v30  ;;  %v3382_v26 = vld [vmem:[%s3908_s1 + $0x88] sm:$0xff]   ;;  %v2704_v30 = vld [vmem:[%s3533_s24 + $0xb4] sm:$0x1] }
  0x30   : > { %3174 = vmatpush3.bf16.msra.mxu0 %v3363_v27  ;;  %3055 = vmatprep.subr.bf16.mxu1 %v3364_v28  ;;  %v2703_v27 = vld [vmem:[%s3533_s24 + $0xb0] sm:$0xf]  ;;  %v1448_v35 = vshll.u32 %v2704_v30, 16 }
  0x31   : > { %3175 = vmatprep.subr.bf16.mxu0 %v3365_v31  ;;  %3065 = vmatprep.mubr.bf16.mxu1 %v3378_v32  ;;  %v2706_v32 = vld [vmem:[%s3533_s24 + $0xbc] sm:$0x1]  ;;  %v1439_v33 = vshrl.u32 %v2703_v27, 16  ;;  %v1442_v34 = vshll.u32 %v2703_v27, 16  ;;  %v653_v27 = vshll.u32 %v613_v17, 16 }
  0x32   : > { %3185 = vmatprep.mubr.bf16.mxu0 %v2727_v11  ;;  %v1462_v39 = vshll.u32 %v2706_v32, 16  ;;  %v1450_v44 = vrot.slane %v1448_v35, 5  ;;  %v610_v11 = vld [vmem:[%s3533_s24] sm:$0xf]  ;;  %v3390_v32 = vld [vmem:[%s3908_s1 + $0xa8] sm:$0xff]  }
  0x33   : > { %3056 = vmatpush3.bf16.msra.mxu1 %v3364_v28  ;;  %v2728_v28 = vcombine.low %v1423_v22, %v1437_v23  ;;  %v1441_v40 = vrot.slane %v1439_v33, 4  ;;  %v1444_v41 = vrot.slane %v1442_v34, 5  ;;  %v630_v18 = vshrl.u32 %v610_v11, 16  ;;  %v621_v17 = vld [vmem:[%s3533_s24 + $0x2c] sm:$0x1] }
  0x34   : > { %3176 = vmatpush3.bf16.msra.mxu0 %v3365_v31  ;;  %3057 = vmatprep.subr.bf16.mxu1 %v3366_v38  ;;  %v2705_v31 = vld [vmem:[%s3533_s24 + $0xb8] sm:$0xf]  ;;  %v1464_v46 = vrot.slane %v1462_v39, 5  ;;  %v644_v22 = vshrl.u32 %v612_v16, 16  ;;  %v647_v23 = vshll.u32 %v612_v16, 16 }
  0x35   : > { %3177 = vmatprep.subr.bf16.mxu0 %v3367_v43  ;;  %v1453_v36 = vshrl.u32 %v2705_v31, 16  ;;  %v620_v16 = vld [vmem:[%s3533_s24 + $0x28] sm:$0xf] }
  0x36   : > { %v646_v30 = vrot.slane %v644_v22, 4  ;;  %v700_v22 = vshrl.u32 %v620_v16, 16 }
  0x37   : > { %3058 = vmatpush3.bf16.msra.mxu1 %v3366_v38  ;;  %v1456_v38 = vshll.u32 %v2705_v31, 16  ;;  %v1455_v42 = vrot.slane %v1453_v36, 4  ;;  %v649_v31 = vrot.slane %v647_v23, 5  ;;  %v655_v36 = vrot.slane %v653_v27, 5  ;;  %v622_v23 = vld [vmem:[%s3533_s24 + $0x30] sm:$0xf] }
  0x38   : > { %3178 = vmatpush3.bf16.msra.mxu0 %v3367_v43  ;;  %3059 = vmatprep.subr.bf16.mxu1 %v3368_v47  ;;  %v3384_v43 = vld [vmem:[%s3908_s1 + $0x90] sm:$0xff]   ;;  %v624_v27 = vld [vmem:[%s3533_s24 + $0x38] sm:$0xf] }
  0x39   : > { %3179 = vmatprep.subr.bf16.mxu0 %v3369_v50  ;;  %v1458_v45 = vrot.slane %v1456_v38, 5  ;;  %v3391_v38 = vld [vmem:[%s3908_s1 + $0x1a8] sm:$0xff]  }
  0x3b   : > { %3060 = vmatpush3.bf16.msra.mxu1 %v3368_v47  ;;  %v1445_v47 = vor.u32 %v1444_v41, %v1441_v40  ;;  %v1459_v54 = vor.u32 %v1458_v45, %v1455_v42  ;;  %v650_v40 = vor.u32 %v649_v31, %v646_v30  ;;  %v614_v41 = vld [vmem:[%s3533_s24 + $0x10] sm:$0xf]  ;;  %v702_v31 = vrot.slane %v700_v22, 4  ;;  %v2811_v22 = vld [vmem:[%s3533_s24 + $0x8] sm:$0xf] }
  0x3c   : > { %3180 = vmatpush3.bf16.msra.mxu0 %v3369_v50  ;;  %3061 = vmatprep.subr.bf16.mxu1 %v3371_v2  ;;  %v2708_v50 = vld [vmem:[%s3533_s24 + $0xc4] sm:$0x1]  ;;  %v658_v45 = vshrl.u32 %v614_v41, 16 }
  0x3d   : > { %3181 = vmatprep.subr.bf16.mxu0 %v3373_v6  ;;  %v1476_v58 = vshll.u32 %v2708_v50, 16  ;;  %v1446_v60 = vrot.slane %v1445_v47, 4  ;;  %v1460_v0 = vrot.slane %v1459_v54, 4  ;;  %v617_v47 = vld [vmem:[%s3533_s24 + $0x1c] sm:$0x1] }
  0x3f   : > { %3062 = vmatpush3.bf16.msra.mxu1 %v3371_v2  ;;  %v1472_v2 = vrot.slane %v1470_v57, 5  ;;  %v1478_v3 = vrot.slane %v1476_v58, 5  ;;  %v1451_v5 = vsel %vm3604_vm2, %v1446_v60, %v1450_v44  ;;  %v1465_v9 = vsel %vm3604_vm2, %v1460_v0, %v1464_v46  ;;  %v616_v44 = vld [vmem:[%s3533_s24 + $0x18] sm:$0xf]  ;;  %v3394_v60 = vld [vmem:[%s3908_s1 + $0x1b0] sm:$0xff]  }
  0x40   : > { %3182 = vmatpush3.bf16.msra.mxu0 %v3373_v6  ;;  %3063 = vmatprep.subr.bf16.mxu1 %v3376_v14  ;;  %v1483_v6 = vrot.slane %v1481_v61, 4  ;;  %v651_v46 = vrot.slane %v650_v40, 4  ;;  %v672_v50 = vshrl.u32 %v616_v44, 16  ;;  %v675_v54 = vshll.u32 %v616_v44, 16 }
  0x41   : > { %3183 = vmatprep.subr.bf16.mxu0 %v3377_v19  ;;  %v1473_v10 = vor.u32 %v1472_v2, %v1469_v1  ;;  %v681_v58 = vshll.u32 %v617_v47, 16  ;;  %v728_v40 = vshrl.u32 %v624_v27, 16 }
  0x42   : > { %v1487_v15 = vor.u32 %v1486_v7, %v1483_v6  ;;  %v656_v55 = vsel %vm3604_vm2, %v651_v46, %v655_v36  ;;  %v674_v57 = vrot.slane %v672_v50, 4  ;;  %v677_v63 = vrot.slane %v675_v54, 5  ;;  %v3397_v6 = vld [vmem:[%s3908_s1 + $0x1b8] sm:$0xff]   ;;  %v3398_v7 = vld [vmem:[%s3908_s1 + $0xc0] sm:$0xff]  }
  0x43   : > { %3064 = vmatpush3.bf16.msra.mxu1 %v3376_v14  ;;  %v2729_v14 = vcombine.low %v1451_v5, %v1465_v9  ;;  %v1474_v20 = vrot.slane %v1473_v10, 4  ;;  %v3400_v10 = vld [vmem:[%s3908_s1 + $0x1c0] sm:$0xff]   ;;  %v717_v36 = vshll.u32 %v622_v23, 16 }
  0x44   : > { %3184 = vmatpush3.bf16.msra.mxu0 %v3377_v19  ;;  %3073 = vmatprep.subr.bf16.mxu1 %v3379_v21  ;;  %v633_v19 = vshll.u32 %v610_v11, 16  ;;  %v678_v1 = vor.u32 %v677_v63, %v674_v57  ;;  %v3401_v11 = vld [vmem:[%s3533_s24 + $0x18] ss:$8 sps:$4 sm:$0xff]  }
  0x45   : > { %3193 = vmatprep.subr.bf16.mxu0 %v3380_v24 }
  0x46   : > { %3066 = vmatmul.mubr.bf16.vlgmr.msra.gmra.mrb[0].mxu1 %v3381_v25  ;;  %v632_v25 = vrot.slane %v630_v18, 4  ;;  %v679_v5 = vrot.slane %v678_v1, 4  ;;  %v3403_v18 = vld [vmem:[%s3908_s1 + $0x1c8] sm:$0xff]  }
  0x47   : > { %3074 = vmatpush3.bf16.msra.mxu1 %v3379_v21  ;;  %3186 = vmatmul.mubr.bf16.vlgmr.msra.gmra.mrb[0].mxu0 %v2728_v28  ;;  %v639_v21 = vshll.u32 %v611_v12, 16  ;;  %v3389_v28 = vld [vmem:[%s3908_s1 + $0x1a0] sm:$0xff]  }
  0x48   : > { %3194 = vmatpush3.bf16.msra.mxu0 %v3380_v24  ;;  %3075 = vmatprep.subr.bf16.mxu1 %v3382_v26  ;;  %v1488_v24 = vrot.slane %v1487_v15, 4  ;;  %v618_v12 = vld [vmem:[%s3533_s24 + $0x20] sm:$0xf]  ;;  %v619_v15 = vld [vmem:[%s3533_s24 + $0x24] sm:$0x1] }
  0x49   : > { %3195 = vmatprep.subr.bf16.mxu0 %v3383_v29  ;;  %3069 = vmatprep.mubr.bf16.mxu1 %v3392_v37  ;;  %v641_v35 = vrot.slane %v639_v21, 5  ;;  %v3399_v37 = vld [vmem:[%s3533_s24 + $0x8] ss:$8 sps:$4 sm:$0xff]   ;;  %v695_v21 = vshll.u32 %v619_v15, 16  ;;  %v3420_v15 = vld [vmem:[%s3909_s2] sm:$0xff]  }
  0x4a   : > { %3189 = vmatprep.mubr.bf16.mxu0 %v2729_v14  ;;  %v1493_v33 = vsel %vm3604_vm2, %v1488_v24, %v1492_v8  ;;  %v3402_v14 = vld [vmem:[%s3908_s1 + $0xc8] sm:$0xff]   ;;  %v703_v24 = vshll.u32 %v620_v16, 16  ;;  %v3422_v16 = vld [vmem:[%s3908_s1 + $0x200] sm:$0xff]  }
  0x4b   : > { %3076 = vmatpush3.bf16.msra.mxu1 %v3382_v26  ;;  %v635_v26 = vrot.slane %v633_v19, 5  ;;  %v686_v19 = vshrl.u32 %v618_v12, 16  ;;  %v697_v30 = vrot.slane %v695_v21, 5  ;;  %v3436_v21 = vld [vmem:[%s3533_s24 + $0x70] ss:$8 sps:$4 sm:$0xff]  }
  0x4c   : > { %3196 = vmatpush3.bf16.msra.mxu0 %v3383_v29  ;;  %3077 = vmatprep.subr.bf16.mxu1 %v3384_v43  ;;  %v1479_v29 = vsel %vm3604_vm2, %v1474_v20, %v1478_v3  ;;  %v683_v3 = vrot.slane %v681_v58, 5  ;;  %v689_v20 = vshll.u32 %v618_v12, 16  ;;  %v3406_v58 = vld [vmem:[%s3908_s1 + $0xd8] sm:$0xff]  }
  0x4d   : > { %3197 = vmatprep.subr.bf16.mxu0 %v3385_v52  ;;  %v636_v34 = vor.u32 %v635_v26, %v632_v25  ;;  %v2730_v39 = vcombine.low %v1479_v29, %v1493_v33  ;;  %v709_v25 = vshll.u32 %v621_v17, 16  ;;  %v623_v26 = vld [vmem:[%s3533_s24 + $0x34] sm:$0x1]  ;;  %v705_v33 = vrot.slane %v703_v24, 5  ;;  %v3416_v12 = vld [vmem:[%s3908_s1 + $0xf8] sm:$0xff]  }
  0x4e   : > { %3070 = vmatmul.mubr.bf16.gmra.mrb[4].mxu1 %v3395_v48  ;;  %v661_v48 = vshll.u32 %v614_v41, 16  ;;  %v684_v9 = vsel %vm3604_vm2, %v679_v5, %v683_v3  ;;  %v691_v29 = vrot.slane %v689_v20, 5  ;;  %v731_v41 = vshll.u32 %v624_v27, 16  ;;  %v3418_v3 = vld [vmem:[%s3533_s24 + $0x90] ss:$8 sps:$4 sm:$0xff]  }
  0x4f   : > { %3078 = vmatpush3.bf16.msra.mxu1 %v3384_v43  ;;  %v637_v42 = vrot.slane %v636_v34, 4  ;;  %v615_v43 = vld [vmem:[%s3533_s24 + $0x14] sm:$0x1]  ;;  %3190 = vmatmul.mubr.bf16.gmra.mrb[4].mxu0 %v2730_v39  ;;  %v711_v34 = vrot.slane %v709_v25, 5  ;;  %v723_v39 = vshll.u32 %v623_v26, 16  ;;  %v2007_v26 = vshrl.u32 %v2811_v22, 16 }
  0x50   : > { %3198 = vmatpush3.bf16.msra.mxu0 %v3385_v52  ;;  %3079 = vmatprep.subr.bf16.mxu1 %v3386_v59  ;;  %v667_v49 = vshll.u32 %v615_v43, 16  ;;  %v660_v52 = vrot.slane %v658_v45, 4  ;;  %v663_v56 = vrot.slane %v661_v48, 5  ;;  %v706_v43 = vor.u32 %v705_v33, %v702_v31  ;;  %v3423_v17 = vld [vmem:[%s3533_s24 + $0x60] ss:$8 sps:$4 sm:$0xff]   ;;  %v3429_v33 = vld [vmem:[%s3908_s1 + $0x210] sm:$0xff]  }
  0x51   : > { %3199 = vmatprep.subr.bf16.mxu0 %v3387_v4  ;;  %v642_v51 = vsel %vm3604_vm2, %v637_v42, %v641_v35  ;;  %3209 = vmatprep.mubr.bf16.mxu0 %v3399_v37  ;;  %v714_v35 = vshrl.u32 %v622_v23, 16  ;;  %v3404_v37 = vld [vmem:[%s3908_s1 + $0xd0] sm:$0xff]   ;;  %v719_v45 = vrot.slane %v717_v36, 5  ;;  %v725_v48 = vrot.slane %v723_v39, 5  ;;  %v2812_v23 = vld [vmem:[%s3533_s24 + $0xc] sm:$0x1] }
  0x52   : > { %v2603_v61 = vcombine.low %v642_v51, %v656_v55  ;;  %v669_v62 = vrot.slane %v667_v49, 5  ;;  %v664_v0 = vor.u32 %v663_v56, %v660_v52  ;;  %v3405_v42 = vld [vmem:[%s3908_s1 + $0x1d0] sm:$0xff]   ;;  %v730_v49 = vrot.slane %v728_v40, 4  ;;  %v3427_v36 = vld [vmem:[%s3533_s24 + $0xc0] ss:$8 sps:$4 sm:$0xff]  }
  0x53   : > { %3080 = vmatpush3.bf16.msra.mxu1 %v3386_v59  ;;  %v3393_v59 = vld [vmem:[%s3908_s1 + $0xb0] sm:$0xff]   ;;  %v716_v44 = vrot.slane %v714_v35, 4  ;;  %v733_v50 = vrot.slane %v731_v41, 5  ;;  %v707_v51 = vrot.slane %v706_v43, 4  ;;  %v2010_v27 = vshll.u32 %v2811_v22, 16  ;;  %v3430_v43 = vld [vmem:[%s3909_s2 + $0x18] sm:$0xff]  }
  0x54   : > { %3200 = vmatpush3.bf16.msra.mxu0 %v3387_v4  ;;  %3081 = vmatprep.subr.bf16.mxu1 %v3388_v13  ;;  %v665_v2 = vrot.slane %v664_v0, 4  ;;  %v3396_v4 = vld [vmem:[%s3908_s1 + $0xb8] sm:$0xff]   ;;  %v3413_v55 = vld [vmem:[%s3533_s24 + $0x28] ss:$8 sps:$4 sm:$0xff]   ;;  %v2814_v25 = vld [vmem:[%s3533_s24 + $0x14] sm:$0x1] }
  0x55   : > { %3201 = vmatprep.subr.bf16.mxu0 %v3389_v28  ;;  %3089 = vmatprep.mubr.bf16.mxu1 %v2603_v61  ;;  %v720_v52 = vor.u32 %v719_v45, %v716_v44  ;;  %v734_v57 = vor.u32 %v733_v50, %v730_v49  ;;  %v3415_v61 = vld [vmem:[%s3533_s24 + $0x38] ss:$8 sps:$4 sm:$0xff]   ;;  %v2813_v24 = vld [vmem:[%s3533_s24 + $0x10] sm:$0xf]  ;;  %v2012_v35 = vrot.slane %v2010_v27, 5 }
  0x56   : > { %v670_v8 = vsel %vm3604_vm2, %v665_v2, %v669_v62  ;;  %v3407_v62 = vld [vmem:[%s3908_s1 + $0x1d8] sm:$0xff]   ;;  %v2024_v31 = vshll.u32 %v2813_v24, 16  ;;  %v3438_v39 = vld [vmem:[%s3533_s24 + $0x80] ss:$8 sps:$4 sm:$0xff]  }
  0x57   : > { %3082 = vmatpush3.bf16.msra.mxu1 %v3388_v13  ;;  %v2604_v13 = vcombine.low %v670_v8, %v684_v9  ;;  %v735_v0 = vrot.slane %v734_v57, 4  ;;  %v3410_v8 = vld [vmem:[%s3908_s1 + $0xe8] sm:$0xff]   ;;  %v3426_v20 = vld [vmem:[%s3533_s24 + $0xb0] ss:$8 sps:$4 sm:$0xff]  }
  0x58   : > { %3202 = vmatpush3.bf16.msra.mxu0 %v3389_v28  ;;  %3083 = vmatprep.subr.bf16.mxu1 %v3390_v32  ;;  %v688_v28 = vrot.slane %v686_v19, 4  ;;  %v3411_v9 = vld [vmem:[%s3908_s1 + $0x1e8] sm:$0xff]  }
  0x59   : > { %3203 = vmatprep.subr.bf16.mxu0 %v3391_v38  ;;  %v3425_v19 = vld [vmem:[%s3908_s1 + $0x208] sm:$0xff]  }
  0x5b   : > { %3084 = vmatpush3.bf16.msra.mxu1 %v3390_v32  ;;  %v625_v32 = vld [vmem:[%s3533_s24 + $0x3c] sm:$0x1] }
  0x5c   : > { %3204 = vmatpush3.bf16.msra.mxu0 %v3391_v38  ;;  %3085 = vmatprep.subr.bf16.mxu1 %v3393_v59  ;;  %v692_v38 = vor.u32 %v691_v29, %v688_v28  ;;  %v737_v46 = vshll.u32 %v625_v32, 16  ;;  %v3428_v28 = vld [vmem:[%s3909_s2 + $0x10] sm:$0xff]   ;;  %v2016_v29 = vshll.u32 %v2812_v23, 16  ;;  %v2030_v32 = vshll.u32 %v2814_v25, 16 }
  0x5d   : > { %3205 = vmatprep.subr.bf16.mxu0 %v3394_v60  ;;  %v3437_v23 = vld [vmem:[%s3909_s2 + $0x30] sm:$0xff]  }
  0x5e   : > { %v693_v47 = vrot.slane %v692_v38, 4  ;;  %v739_v54 = vrot.slane %v737_v46, 5  ;;  %v2026_v38 = vrot.slane %v2024_v31, 5  ;;  %v2018_v41 = vrot.slane %v2016_v29, 5  ;;  %v2817_v46 = vld [vmem:[%s3533_s24 + $0x20] sm:$0xf] }
  0x5f   : > { %3086 = vmatpush3.bf16.msra.mxu1 %v3393_v59  ;;  %v712_v59 = vsel %vm3604_vm2, %v707_v51, %v711_v34  ;;  %v2009_v34 = vrot.slane %v2007_v26, 4  ;;  %v2032_v45 = vrot.slane %v2030_v32, 5  ;;  %v2819_v51 = vld [vmem:[%s3533_s24 + $0x28] sm:$0xf]  ;;  %v2052_v57 = vshll.u32 %v2817_v46, 16 }
  0x60   : > { %3206 = vmatpush3.bf16.msra.mxu0 %v3394_v60  ;;  %3087 = vmatprep.subr.bf16.mxu1 %v3396_v4  ;;  %v698_v56 = vsel %vm3604_vm2, %v693_v47, %v697_v30  ;;  %v721_v60 = vrot.slane %v720_v52, 4  ;;  %v740_v2 = vsel %vm3604_vm2, %v735_v0, %v739_v54  ;;  %v2021_v30 = vshrl.u32 %v2813_v24, 16  ;;  %v3431_v47 = vld [vmem:[%s3908_s1 + $0x218] sm:$0xff]   ;;  %v2821_v52 = vld [vmem:[%s3533_s24 + $0x30] sm:$0xf] }
  0x61   : > { %3207 = vmatprep.subr.bf16.mxu0 %v3397_v6  ;;  %v2605_v63 = vcombine.low %v698_v56, %v712_v59  ;;  %v2013_v40 = vor.u32 %v2012_v35, %v2009_v34  ;;  %v2049_v56 = vshrl.u32 %v2817_v46, 16  ;;  %v2066_v0 = vshll.u32 %v2819_v51, 16  ;;  %v3441_v34 = vld [vmem:[%s3908_s1 + $0x238] sm:$0xff]  }
  0x62   : > { %v726_v1 = vsel %vm3604_vm2, %v721_v60, %v725_v48  ;;  %v3433_v60 = vld [vmem:[%s3908_s1 + $0x220] sm:$0xff]  }
  0x63   : > { %3088 = vmatpush3.bf16.msra.mxu1 %v3396_v4  ;;  %v3408_v4 = vld [vmem:[%s3908_s1 + $0xe0] sm:$0xff]   ;;  %v2606_v5 = vcombine.low %v726_v1, %v740_v2  ;;  %v2014_v48 = vrot.slane %v2013_v40, 4  ;;  %v2077_v1 = vshrl.u32 %v2821_v52, 16  ;;  %v2080_v2 = vshll.u32 %v2821_v52, 16 }
  0x64   : > { %3208 = vmatpush3.bf16.msra.mxu0 %v3397_v6  ;;  %3097 = vmatprep.subr.bf16.mxu1 %v3398_v7  ;;  %v3409_v6 = vld [vmem:[%s3908_s1 + $0x1e0] sm:$0xff]  }
  0x65   : > { %3217 = vmatprep.subr.bf16.mxu0 %v3400_v10  ;;  %v2019_v54 = vsel %vm3604_vm2, %v2014_v48, %v2018_v41  ;;  %v2826_v48 = vld [vmem:[%s3533_s24 + $0x44] sm:$0x1] }
  0x66   : > { %3090 = vmatmul.mubr.bf16.vlgmr.msra.gmra.mrb[0].mxu1 %v2604_v13  ;;  %v3417_v13 = vld [vmem:[%s3908_s1 + $0x1f8] sm:$0xff]  }
  0x67   : > { %3098 = vmatpush3.bf16.msra.mxu1 %v3398_v7  ;;  %3210 = vmatmul.mubr.bf16.vlgmr.msra.gmra.mrb[0].mxu0 %v3401_v11  ;;  %v3421_v7 = vld [vmem:[%s3533_s24 + $0x50] ss:$8 sps:$4 sm:$0xff]  }
  0x68   : > { %3218 = vmatpush3.bf16.msra.mxu0 %v3400_v10  ;;  %3099 = vmatprep.subr.bf16.mxu1 %v3402_v14  ;;  %v3412_v10 = vld [vmem:[%s3908_s1 + $0xf0] sm:$0xff]  }
  0x69   : > { %3219 = vmatprep.subr.bf16.mxu0 %v3403_v18  ;;  %3213 = vmatprep.mubr.bf16.mxu0 %v3413_v55  ;;  %v3414_v11 = vld [vmem:[%s3908_s1 + $0x1f0] sm:$0xff]  }
  0x6a   : > { %3093 = vmatprep.mubr.bf16.mxu1 %v2605_v63  ;;  %v2063_v63 = vshrl.u32 %v2819_v51, 16 }
  0x6b   : > { %3100 = vmatpush3.bf16.msra.mxu1 %v3402_v14  ;;  %v3419_v14 = vld [vmem:[%s3533_s24 + $0xa0] ss:$8 sps:$4 sm:$0xff]  }
  0x6c   : > { %3220 = vmatpush3.bf16.msra.mxu0 %v3403_v18  ;;  %3101 = vmatprep.subr.bf16.mxu1 %v3404_v37  ;;  %v3424_v18 = vld [vmem:[%s3909_s2 + $0x8] sm:$0xff]  }
  0x6d   : > { %3221 = vmatprep.subr.bf16.mxu0 %v3405_v42 }
  0x6e   : > { %3094 = vmatmul.mubr.bf16.gmra.mrb[4].mxu1 %v2606_v5 }
  0x6f   : > { %3102 = vmatpush3.bf16.msra.mxu1 %v3404_v37  ;;  %3214 = vmatmul.mubr.bf16.gmra.mrb[4].mxu0 %v3415_v61  ;;  %v2023_v37 = vrot.slane %v2021_v30, 4  ;;  %v3442_v61 = vld [vmem:[%s3533_s24 + $0xd8] ss:$8 sps:$4 sm:$0xff]  }
  0x70   : > { %3222 = vmatpush3.bf16.msra.mxu0 %v3405_v42  ;;  %3103 = vmatprep.subr.bf16.mxu1 %v3406_v58  ;;  %v2815_v42 = vld [vmem:[%s3533_s24 + $0x18] sm:$0xf] }
  0x71   : > { %3223 = vmatprep.subr.bf16.mxu0 %v3407_v62  ;;  %3113 = vmatprep.mubr.bf16.mxu1 %v3418_v3  ;;  %v2027_v44 = vor.u32 %v2026_v38, %v2023_v37  ;;  %v2035_v50 = vshrl.u32 %v2815_v42, 16  ;;  %v2038_v55 = vshll.u32 %v2815_v42, 16  ;;  %v3434_v3 = vld [vmem:[%s3909_s2 + $0x28] sm:$0xff]  }
  0x72   : > { %3233 = vmatprep.mubr.bf16.mxu0 %v3421_v7  ;;  %v2051_v7 = vrot.slane %v2049_v56, 4 }
  0x73   : > { %3104 = vmatpush3.bf16.msra.mxu1 %v3406_v58  ;;  %v2028_v49 = vrot.slane %v2027_v44, 4  ;;  %v3432_v58 = vld [vmem:[%s3909_s2 + $0x20] sm:$0xff]   ;;  %v2037_v5 = vrot.slane %v2035_v50, 4 }
  0x74   : > { %3224 = vmatpush3.bf16.msra.mxu0 %v3407_v62  ;;  %3105 = vmatprep.subr.bf16.mxu1 %v3408_v4 }
  0x75   : > { %3225 = vmatprep.subr.bf16.mxu0 %v3409_v6  ;;  %v2033_v59 = vsel %vm3604_vm2, %v2028_v49, %v2032_v45 }
  0x76   : > { %v2843_v62 = vcombine.low %v2019_v54, %v2033_v59 }
  0x77   : > { %3106 = vmatpush3.bf16.msra.mxu1 %v3408_v4  ;;  %v3435_v4 = vld [vmem:[%s3908_s1 + $0x228] sm:$0xff]  }
  0x78   : > { %3226 = vmatpush3.bf16.msra.mxu0 %v3409_v6  ;;  %3107 = vmatprep.subr.bf16.mxu1 %v3410_v8  ;;  %v2040_v6 = vrot.slane %v2038_v55, 5  ;;  %v2114_v55 = vshll.u32 %v2826_v48, 16 }
  0x79   : > { %3227 = vmatprep.subr.bf16.mxu0 %v3411_v9 }
  0x7b   : > { %3108 = vmatpush3.bf16.msra.mxu1 %v3410_v8  ;;  %v2054_v8 = vrot.slane %v2052_v57, 5 }
  0x7c   : > { %3228 = vmatpush3.bf16.msra.mxu0 %v3411_v9  ;;  %3109 = vmatprep.subr.bf16.mxu1 %v3412_v10  ;;  %v2816_v9 = vld [vmem:[%s3533_s24 + $0x1c] sm:$0x1] }
  0x7d   : > { %3229 = vmatprep.subr.bf16.mxu0 %v3414_v11 }
  0x7f   : > { %3110 = vmatpush3.bf16.msra.mxu1 %v3412_v10  ;;  %v2818_v10 = vld [vmem:[%s3533_s24 + $0x24] sm:$0x1] }
  0x80   : > { %3230 = vmatpush3.bf16.msra.mxu0 %v3414_v11  ;;  %3111 = vmatprep.subr.bf16.mxu1 %v3416_v12  ;;  %v2823_v11 = vld [vmem:[%s3533_s24 + $0x38] sm:$0xf]  ;;  %v2058_v22 = vshll.u32 %v2818_v10, 16 }
  0x81   : > { %3231 = vmatprep.subr.bf16.mxu0 %v3417_v13  ;;  %v2091_v24 = vshrl.u32 %v2823_v11, 16  ;;  %v2094_v25 = vshll.u32 %v2823_v11, 16 }
  0x82   : > { %v2060_v38 = vrot.slane %v2058_v22, 5 }
  0x83   : > { %3112 = vmatpush3.bf16.msra.mxu1 %v3416_v12  ;;  %v2065_v12 = vrot.slane %v2063_v63, 4  ;;  %v2093_v40 = vrot.slane %v2091_v24, 4  ;;  %v2096_v41 = vrot.slane %v2094_v25, 5  ;;  %v2116_v63 = vrot.slane %v2114_v55, 5 }
  0x84   : > { %3232 = vmatpush3.bf16.msra.mxu0 %v3417_v13  ;;  %3145 = vmatprep.subr.bf16.mxu1 %v3420_v15  ;;  %v2068_v13 = vrot.slane %v2066_v0, 5  ;;  %v3443_v0 = vld [vmem:[%s3533_s24 + $0xe8] ss:$8 sps:$4 sm:$0xff]  }
  0x85   : > { %3241 = vmatprep.subr.bf16.mxu0 %v3422_v16  ;;  %v2097_v52 = vor.u32 %v2096_v41, %v2093_v40 }
  0x86   : > { %3114 = vmatmul.mubr.bf16.vlgmr.msra.gmra.mrb[0].mxu1 %v3419_v14  ;;  %v2079_v14 = vrot.slane %v2077_v1, 4  ;;  %v2069_v29 = vor.u32 %v2068_v13, %v2065_v12  ;;  %v3444_v1 = vld [vmem:[%s3533_s24 + $0xf8] ss:$8 sps:$4 sm:$0xff]  }
  0x87   : > { %3146 = vmatpush3.bf16.msra.mxu1 %v3420_v15  ;;  %3234 = vmatmul.mubr.bf16.vlgmr.msra.gmra.mrb[0].mxu0 %v3423_v17  ;;  %v2082_v15 = vrot.slane %v2080_v2, 5  ;;  %v2820_v17 = vld [vmem:[%s3533_s24 + $0x2c] sm:$0x1] }
  0x88   : > { %3242 = vmatpush3.bf16.msra.mxu0 %v3422_v16  ;;  %3147 = vmatprep.subr.bf16.mxu1 %v3424_v18  ;;  %v2825_v16 = vld [vmem:[%s3533_s24 + $0x40] sm:$0xf]  ;;  %v2072_v30 = vshll.u32 %v2820_v17, 16  ;;  %v2070_v44 = vrot.slane %v2069_v29, 4 }
  0x89   : > { %3243 = vmatprep.subr.bf16.mxu0 %v3425_v19  ;;  %3117 = vmatprep.mubr.bf16.mxu1 %v3426_v20  ;;  %v2044_v20 = vshll.u32 %v2816_v9, 16  ;;  %v2105_v26 = vshrl.u32 %v2825_v16, 16  ;;  %v2108_v27 = vshll.u32 %v2825_v16, 16  ;;  %v2083_v31 = vor.u32 %v2082_v15, %v2079_v14 }
  0x8a   : > { %3237 = vmatprep.mubr.bf16.mxu0 %v3436_v21  ;;  %v2055_v21 = vor.u32 %v2054_v8, %v2051_v7  ;;  %v2074_v45 = vrot.slane %v2072_v30, 5 }
  0x8b   : > { %3148 = vmatpush3.bf16.msra.mxu1 %v3424_v18  ;;  %v2822_v18 = vld [vmem:[%s3533_s24 + $0x34] sm:$0x1]  ;;  %v2107_v42 = vrot.slane %v2105_v26, 4  ;;  %v2084_v46 = vrot.slane %v2083_v31, 4 }
  0x8c   : > { %3244 = vmatpush3.bf16.msra.mxu0 %v3425_v19  ;;  %3149 = vmatprep.subr.bf16.mxu1 %v3428_v28  ;;  %v2041_v19 = vor.u32 %v2040_v6, %v2037_v5  ;;  %v2086_v32 = vshll.u32 %v2822_v18, 16  ;;  %v2056_v37 = vrot.slane %v2055_v21, 4  ;;  %v2075_v56 = vsel %vm3604_vm2, %v2070_v44, %v2074_v45  ;;  %v3445_v5 = vld [vmem:[%s3533_s24 + $0x108] ss:$8 sps:$4 sm:$0xff]  }
  0x8d   : > { %3245 = vmatprep.subr.bf16.mxu0 %v3429_v33 }
  0x8e   : > { %3118 = vmatmul.mubr.bf16.gmra.mrb[4].mxu1 %v3427_v36  ;;  %v2042_v35 = vrot.slane %v2041_v19, 4  ;;  %v2046_v36 = vrot.slane %v2044_v20, 5  ;;  %v2061_v51 = vsel %vm3604_vm2, %v2056_v37, %v2060_v38 }
  0x8f   : > { %3150 = vmatpush3.bf16.msra.mxu1 %v3428_v28  ;;  %3238 = vmatmul.mubr.bf16.gmra.mrb[4].mxu0 %v3438_v39  ;;  %v3439_v28 = vld [vmem:[%s3908_s1 + $0x230] sm:$0xff]   ;;  %v2824_v39 = vld [vmem:[%s3533_s24 + $0x3c] sm:$0x1]  ;;  %s3881_s24 = scalar_lea.vmem %s3912_s5, %s2857_s15 }
  0x90   : > { %3246 = vmatpush3.bf16.msra.mxu0 %v3429_v33  ;;  %3151 = vmatprep.subr.bf16.mxu1 %v3430_v43  ;;  %v3440_v33 = vld [vmem:[%s3909_s2 + $0x38] sm:$0xff]   ;;  %v2047_v49 = vsel %vm3604_vm2, %v2042_v35, %v2046_v36  ;;  %v2100_v50 = vshll.u32 %v2824_v39, 16 }
  0x91   : > { %3247 = vmatprep.subr.bf16.mxu0 %v3431_v47  ;;  %3161 = vmatprep.mubr.bf16.mxu1 %v3442_v61  ;;  %v2098_v61 = vrot.slane %v2097_v52, 4 }
  0x92   : > { %3257 = vmatprep.mubr.bf16.mxu0 %v2843_v62  ;;  %v2102_v59 = vrot.slane %v2100_v50, 5 }
  0x93   : > { %3152 = vmatpush3.bf16.msra.mxu1 %v3430_v43  ;;  %v2110_v43 = vrot.slane %v2108_v27, 5 }
  0x94   : > { %3248 = vmatpush3.bf16.msra.mxu0 %v3431_v47  ;;  %3153 = vmatprep.subr.bf16.mxu1 %v3432_v58  ;;  %v2088_v47 = vrot.slane %v2086_v32, 5  ;;  %v2103_v2 = vsel %vm3604_vm2, %v2098_v61, %v2102_v59 }
  0x95   : > { %3249 = vmatprep.subr.bf16.mxu0 %v3433_v60  ;;  %v2111_v54 = vor.u32 %v2110_v43, %v2107_v42 }
  0x96   : > { %v2089_v57 = vsel %vm3604_vm2, %v2084_v46, %v2088_v47 }
  0x97   : > { %3154 = vmatpush3.bf16.msra.mxu1 %v3432_v58  ;;  %v2844_v58 = vcombine.low %v2047_v49, %v2061_v51  ;;  %v2112_v62 = vrot.slane %v2111_v54, 4 }
  0x98   : > { %3250 = vmatpush3.bf16.msra.mxu0 %v3433_v60  ;;  %3155 = vmatprep.subr.bf16.mxu1 %v3434_v3  ;;  %v2845_v60 = vcombine.low %v2075_v56, %v2089_v57 }
  0x99   : > { %3251 = vmatprep.subr.bf16.mxu0 %v3435_v4 }
  0x9b   : > { %3156 = vmatpush3.bf16.msra.mxu1 %v3434_v3  ;;  %v2117_v3 = vsel %vm3604_vm2, %v2112_v62, %v2116_v63 }
  0x9c   : > { %3252 = vmatpush3.bf16.msra.mxu0 %v3435_v4  ;;  %3157 = vmatprep.subr.bf16.mxu1 %v3437_v23  ;;  %v2846_v4 = vcombine.low %v2103_v2, %v2117_v3 }
  0x9d   : > { %3253 = vmatprep.subr.bf16.mxu0 %v3439_v28 }
  0x9f   : > { %3158 = vmatpush3.bf16.msra.mxu1 %v3437_v23 }
  0xa0   : > { %3254 = vmatpush3.bf16.msra.mxu0 %v3439_v28  ;;  %3159 = vmatprep.subr.bf16.mxu1 %v3440_v33 }
  0xa1   : > { %3255 = vmatprep.subr.bf16.mxu0 %v3441_v34 }
  0xa3   : > { %3160 = vmatpush3.bf16.msra.mxu1 %v3440_v33 }
  0xa4   : > { %3256 = vmatpush3.bf16.msra.mxu0 %v3441_v34 }
  0xa6   : > { %3162 = vmatmul.mubr.bf16.vlgmr.msra.gmra.mrb[8].mxu1 %v3443_v0 }
  0xa7   : > { %3258 = vmatmul.mubr.bf16.vlgmr.msra.gmra.mrb[0].mxu0 %v2844_v58  ;;  %3165 = vmatprep.mubr.bf16.mxu1 %v3444_v1 }
  0xa8   : > { %3261 = vmatprep.mubr.bf16.mxu0 %v2845_v60 }
  0xae   : > { %3166 = vmatmul.mubr.bf16.gmra.mrb[12].mxu1 %v3445_v5 }
  0xaf   : > { %3262 = vmatmul.mubr.bf16.gmra.mrb[4].mxu0 %v2846_v4 }
 0x159   : > { %v3115_v6 = vpop.f32.mrb[0].mxu1 }
 0x15a   : > { %v1027_v7 = vpop.f32.mrb[1].mxu1 }
 0x15b   : > { %v3116_v8 = vpop.f32.mrb[2].mxu1 }
 0x15c   : > { %v1030_v9 = vpop.f32.mrb[3].mxu1 }
 0x161   : > { %v3119_v10 = vpop.f32.mrb[4].mxu1 }
 0x162   : > { %v1043_v11 = vpop.f32.mrb[5].mxu1 }
 0x163   : > { %v3120_v12 = vpop.f32.mrb[6].mxu1 }
 0x164   : > { %v3875_v13 = vpop.f32.mrb[7].mxu1 }
 0x179   : > { %v3163_v14 = vpop.f32.mrb[8].mxu1 }
 0x17a   : > { %v3259_v15 = vpop.f32.mrb[0].mxu0  ;;  %v1335_v16 = vpop.f32.mrb[9].mxu1  ;;  %v2356_v30 = vmul.f32 %v3163_v14, %v3163_v14 }
 0x17b   : > { %v3265_v17 = vadd.f32 %v3259_v15, %v3115_v6  ;;  %v2233_v53 = vpop.f32.mrb[1].mxu0  ;;  %v3164_v18 = vpop.f32.mrb[10].mxu1  ;;  %v2354_v19 = vmul.f32 %v1335_v16, %v1335_v16 }
 0x17c   : > { %v3266_v20 = vadd.f32 %v2233_v53, %v1027_v7  ;;  %v2887_v21 = vpack.c.bf16 %v3164_v18, %v3163_v14  ;;  %v3260_v22 = vpop.f32.mrb[2].mxu0  ;;  %v1338_v23 = vpop.f32.mrb[11].mxu1  ;;  %v2357_v38 = vmul.f32 %v3164_v18, %v3164_v18 }
 0x17d   : > { %v3267_v24 = vadd.f32 %v3260_v22, %v3116_v8  ;;  %v2882_v25 = vpack.c.bf16 %v1338_v23, %v1335_v16  ;;  %v2341_v26 = vadd.f32 %v1338_v23, %v1335_v16  ;;  %v2236_v27 = vpop.f32.mrb[3].mxu0  ;;  %v2355_v28 = vmul.f32 %v1338_v23, %v1338_v23 }
 0x17e   : > { %2902 = vst [vmem:[%s3881_s24 + $0x8] sm:$0xff] %v2887_v21   ;;  %v3268_v29 = vadd.f32 %v2236_v27, %v1030_v9  ;;  %v2301_v31 = vmul.f32 %v3266_v20, %v3266_v20  ;;  %v2303_v41 = vmul.f32 %v3265_v17, %v3265_v17 }
 0x17f   : > { %v2867_v32 = vpack.c.bf16 %v3267_v24, %v3265_v17  ;;  %2883 = vst [vmem:[%s3881_s24] sm:$0xff] %v2882_v25   ;;  %v2342_v33 = vadd.f32 %v3163_v14, %v2341_v26  ;;  %v2362_v34 = vadd.f32 %v2355_v28, %v2354_v19  ;;  %v2304_v47 = vmul.f32 %v3267_v24, %v3267_v24 }
 0x180   : > { %v2862_v35 = vpack.c.bf16 %v3268_v29, %v3266_v20  ;;  %v2288_v36 = vadd.f32 %v3268_v29, %v3266_v20  ;;  %v2302_v37 = vmul.f32 %v3268_v29, %v3268_v29 }
 0x181   : > { %2899 = vst [vmem:[%s3887_s20 + $0x8] sm:$0xff] %v2867_v32   ;;  %v3167_v39 = vpop.f32.mrb[12].mxu1  ;;  %v2343_v40 = vadd.f32 %v3164_v18, %v2342_v33  ;;  %v2363_v42 = vadd.f32 %v2362_v34, %v2356_v30 }
 0x182   : > { %2863 = vst [vmem:[%s3887_s20] sm:$0xff] %v2862_v35   ;;  %v2289_v43 = vadd.f32 %v3265_v17, %v2288_v36  ;;  %v2309_v44 = vadd.f32 %v2302_v37, %v2301_v31  ;;  %v3263_v45 = vpop.f32.mrb[4].mxu0  ;;  %v1351_v46 = vpop.f32.mrb[13].mxu1  ;;  %v2360_v9 = vmul.f32 %v3167_v39, %v3167_v39 }
 0x183   : > { %v3269_v48 = vadd.f32 %v3263_v45, %v3119_v10  ;;  %v2344_v49 = vadd.f32 %v2343_v40, %v1351_v46  ;;  %v2358_v50 = vmul.f32 %v1351_v46, %v1351_v46  ;;  %v2249_v51 = vpop.f32.mrb[5].mxu0  ;;  %v3168_v52 = vpop.f32.mrb[14].mxu1  ;;  %v2364_v55 = vadd.f32 %v2363_v42, %v2357_v38 }
 0x184   : > { %v2310_v54 = vadd.f32 %v2309_v44, %v2303_v41  ;;  %v3270_v56 = vadd.f32 %v2249_v51, %v1043_v11  ;;  %v2290_v57 = vadd.f32 %v3267_v24, %v2289_v43  ;;  %v3264_v58 = vpop.f32.mrb[6].mxu0  ;;  %v1354_v59 = vpop.f32.mrb[15].mxu1  ;;  %v2897_v60 = vpack.c.bf16 %v3168_v52, %v3167_v39 }
 0x185   : > { %v3271_v61 = vadd.f32 %v3264_v58, %v3120_v12  ;;  %v2252_v62 = vpop.f32.mrb[7].mxu0  ;;  %v2365_v63 = vadd.f32 %v2364_v55, %v2358_v50  ;;  %v2892_v4 = vpack.c.bf16 %v1354_v59, %v1351_v46  ;;  %v2345_v5 = vadd.f32 %v2344_v49, %v1354_v59 }
 0x186   : > { %v2291_v0 = vadd.f32 %v3270_v56, %v2290_v57  ;;  %v2305_v1 = vmul.f32 %v3270_v56, %v3270_v56  ;;  %v2311_v2 = vadd.f32 %v2310_v54, %v2304_v47  ;;  %2904 = vst [vmem:[%s3881_s24 + $0x18] sm:$0xff] %v2897_v60   ;;  %v2359_v7 = vmul.f32 %v1354_v59, %v1354_v59 }
 0x187   : > { %v2877_v3 = vpack.c.bf16 %v3271_v61, %v3269_v48  ;;  %v3272_v8 = vadd.f32 %v2252_v62, %v3875_v13  ;;  %2903 = vst [vmem:[%s3881_s24 + $0x10] sm:$0xff] %v2892_v4   ;;  %v2346_v10 = vadd.f32 %v3167_v39, %v2345_v5  ;;  %v2307_v16 = vmul.f32 %v3269_v48, %v3269_v48 }
 0x188   : > { %v2312_v6 = vadd.f32 %v2311_v2, %v2305_v1  ;;  %v2366_v11 = vadd.f32 %v2365_v63, %v2359_v7  ;;  %v2361_v53 = vmul.f32 %v3168_v52, %v3168_v52  ;;  %v2308_v22 = vmul.f32 %v3271_v61, %v3271_v61 }
 0x189   : > { %2901 = vst [vmem:[%s3887_s20 + $0x18] sm:$0xff] %v2877_v3   ;;  %v2872_v12 = vpack.c.bf16 %v3272_v8, %v3270_v56  ;;  %v2292_v14 = vadd.f32 %v3272_v8, %v2291_v0  ;;  %v2306_v15 = vmul.f32 %v3272_v8, %v3272_v8  ;;  %v2347_v17 = vadd.f32 %v3168_v52, %v2346_v10 }
 0x18a   : > { %v2367_v18 = vadd.f32 %v2366_v11, %v2360_v9 }
 0x18b   : > { %2900 = vst [vmem:[%s3887_s20 + $0x10] sm:$0xff] %v2872_v12   ;;  %v2293_v19 = vadd.f32 %v3269_v48, %v2292_v14  ;;  %v2313_v20 = vadd.f32 %v2312_v6, %v2306_v15  ;;  %v2348_v21 = vrot.slane %v2347_v17, 4 }
 0x18c   : > { %v2368_v23 = vadd.f32 %v2367_v18, %v2361_v53 }
 0x18d   : > { %v2294_v24 = vadd.f32 %v3271_v61, %v2293_v19  ;;  %v2314_v13 = vadd.f32 %v2313_v20, %v2307_v16  ;;  %v2349_v25 = vadd.f32 %v2348_v21, %v2347_v17 }
 0x18e   : > { %v2369_v26 = vrot.slane %v2368_v23, 4 }
 0x18f   : > { %v2295_v27 = vrot.slane %v2294_v24, 4  ;;  %v2315_v28 = vadd.f32 %v2314_v13, %v2308_v22  ;;  %v2350_v29 = vrot.slane %v2349_v25, 2 }
 0x190   : > { %v2370_v30 = vadd.f32 %v2369_v26, %v2368_v23 }
 0x191   : > { %v2296_v31 = vadd.f32 %v2295_v27, %v2294_v24  ;;  %v2316_v32 = vrot.slane %v2315_v28, 4  ;;  %v2351_v33 = vadd.f32 %v2350_v29, %v2349_v25 }
 0x192   : > { %v2371_v34 = vrot.slane %v2370_v30, 2 }
 0x193   : > { %v2297_v35 = vrot.slane %v2296_v31, 2  ;;  %v2317_v36 = vadd.f32 %v2316_v32, %v2315_v28  ;;  %v2352_v37 = vrot.slane %v2351_v33, 1 }
 0x194   : > { %v2372_v38 = vadd.f32 %v2371_v34, %v2370_v30 }
 0x195   : > { %v2298_v39 = vadd.f32 %v2297_v35, %v2296_v31  ;;  %v2318_v40 = vrot.slane %v2317_v36, 2  ;;  %v2353_v44 = vadd.f32 %v2352_v37, %v2351_v33 }
 0x196   : > { %v2373_v41 = vrot.slane %v2372_v38, 1 }
 0x197   : > { %v2299_v42 = vrot.slane %v2298_v39, 1  ;;  %v2319_v43 = vadd.f32 %v2318_v40, %v2317_v36 }
 0x198   : > { %v2374_v45 = vadd.f32 %v2373_v41, %v2372_v38 }
 0x199   : > { %v2320_v46 = vrot.slane %v2319_v43, 1  ;;  %v2300_v48 = vadd.f32 %v2299_v42, %v2298_v39 }
 0x19a   : > { %v2375_v47 = vsel %vm2322_vm3, %v2353_v44, %v2374_v45 }
 0x19b   : > { %v2321_v49 = vadd.f32 %v2320_v46, %v2319_v43  ;;  %2376 = vst [vmem:[%s284_s27] sm:$0x3] %v2375_v47 }
 0x19d   : > { %v2323_v50 = vsel %vm2322_vm3, %v2300_v48, %v2321_v49 }
 0x19e   : > { %2324 = vst [vmem:[%s275_s30] sm:$0x3] %v2323_v50 }
 0x19f PF: > { %s17_s21 = sadd.s32 1, %s3452_s21  }
 0x1a0   : > { %p14_p4 = scmp.ge.s32.totalorder %s17_s21, 4  }
 0x1a2   :  { %16 = sbr.rel (!%p14_p4) target bundleno = 1 (0x1), region = 111 }

// kernel: basic_block_forward.4
= control target key start
LH: loop header
LB: loop body
LE: loop exit
PB: predicated region body
PF: predicated region fallthrough
CT: control target
= control target key end

     0   :  { %s3455_s18 = smov 0   ;;  %s4101_s0 = inlined_call_operand.vmem [shape: bf16[2,8,8,128], index: 0, kind: input, shape index: {}]   ;;  %s4102_s1 = inlined_call_operand.vmem [shape: f32[1,128], index: 1, kind: input, shape index: {}]   ;;  %s4103_s2 = inlined_call_operand.vmem [shape: f32[1,128], index: 2, kind: input, shape index: {}]   ;;  %s4104_s3 = inlined_call_operand.vmem [shape: bf16[9,128,128], index: 3, kind: input, shape index: {}]   ;;  %s4105_s4 = inlined_call_operand.vmem [shape: bf16[2,8,8,128], index: 4, kind: output, shape index: {0}]   ;;  %s4106_s5 = inlined_call_operand.vmem [shape: f32[2,2,128], index: 5, kind: output, shape index: {1}]  }
   0x1 LB: > { %s2585_s19 = sadd.s32 4294967295, %s3422_s18   ;;  %p2589_p0 = scmp.ge.s32.totalorder %s3422_s18, 1  ;;  %s3422_s18 = sphi %s3455_s18, %s16_s18  }
   0x2   : > { %p190_p1 = scmp.lt.s32.totalorder %s3422_s18, 3 }
   0x4   : > { %p191_p2 = pnand %p2589_p0, %p190_p1 }
   0x5   : > { %v3332_v0 = vld [vmem:[%s4104_s3 + $0x40] sm:$0xff] (!%p191_p2)   ;;  %v3334_v2 = vld [vmem:[%s4104_s3 + $0x48] sm:$0xff] (!%p191_p2)   ;;  %p3474_p3 = scmp.lt.s32.totalorder (!%p191_p2), %s2585_s19, 1  ;;  %v3424_v3 = vmov (!%p191_p2), 0   ;;  %v3336_v5 = vld [vmem:[%s4104_s3 + $0x50] sm:$0xff] (!%p191_p2)   ;;  %vm424_vm0 = vcmask (!%p191_p2), 1043456  }
   0x6   : > { %194 = sbr.rel (%p191_p2) target bundleno = 454 (0x1c6), region = 36  ;;  %v3333_v1 = vld [vmem:[%s4104_s3 + $0x100] sm:$0xff] (!%p191_p2)   ;;  %3027 = vmatprep.subr.bf16.mxu1 (!%p191_p2), %v3332_v0  ;;  %291 = vst [vmem:[#allocation2] sm:$0xf] (!%p191_p2), %v3424_v3  ;;  %292 = vst [vmem:[#allocation2 + $0x4] sm:$0x1] (!%p191_p2), %v3424_v3 }
   0x7   : > { %293 = vst [vmem:[#allocation2 + $0x8] sm:$0xf] (!%p191_p2), %v3424_v3  ;;  %294 = vst [vmem:[#allocation2 + $0xc] sm:$0x1] (!%p191_p2), %v3424_v3  ;;  %3123 = vmatprep.subr.bf16.mxu0 (!%p191_p2), %v3333_v1  ;;  %3028 = vmatpush3.bf16.msra.mxu1 (!%p191_p2), %v3332_v0  ;;  %v3335_v4 = vld [vmem:[%s4104_s3 + $0x108] sm:$0xff] (!%p191_p2)   ;;  %v3337_v6 = vld [vmem:[%s4104_s3 + $0x110] sm:$0xff] (!%p191_p2)  }
   0x8   : > { %295 = vst [vmem:[#allocation2 + $0x10] sm:$0xf] (!%p191_p2), %v3424_v3  ;;  %296 = vst [vmem:[#allocation2 + $0x14] sm:$0x1] (!%p191_p2), %v3424_v3  ;;  %3124 = vmatpush3.bf16.msra.mxu0 (!%p191_p2), %v3333_v1  ;;  %3029 = vmatprep.subr.bf16.mxu1 (!%p191_p2), %v3334_v2  ;;  %v3338_v7 = vld [vmem:[%s4104_s3 + $0x58] sm:$0xff] (!%p191_p2)   ;;  %v3340_v9 = vld [vmem:[%s4104_s3 + $0x60] sm:$0xff] (!%p191_p2)  }
   0x9   : > { %297 = vst [vmem:[#allocation2 + $0x18] sm:$0xf] (!%p191_p2), %v3424_v3  ;;  %298 = vst [vmem:[#allocation2 + $0x1c] sm:$0x1] (!%p191_p2), %v3424_v3  ;;  %3125 = vmatprep.subr.bf16.mxu0 (!%p191_p2), %v3335_v4  ;;  %v3339_v8 = vld [vmem:[%s4104_s3 + $0x118] sm:$0xff] (!%p191_p2)   ;;  %v3341_v10 = vld [vmem:[%s4104_s3 + $0x120] sm:$0xff] (!%p191_p2)  }
   0xa   : > { %299 = vst [vmem:[#allocation2 + $0x20] sm:$0xf] (!%p191_p2), %v3424_v3  ;;  %300 = vst [vmem:[#allocation2 + $0x24] sm:$0x1] (!%p191_p2), %v3424_v3  ;;  %v3342_v11 = vld [vmem:[%s4104_s3 + $0x68] sm:$0xff] (!%p191_p2)   ;;  %v3344_v20 = vld [vmem:[%s4104_s3 + $0x70] sm:$0xff] (!%p191_p2)  }
   0xb   : > { %301 = vst [vmem:[#allocation2 + $0x28] sm:$0xf] (!%p191_p2), %v3424_v3  ;;  %302 = vst [vmem:[#allocation2 + $0x2c] sm:$0x1] (!%p191_p2), %v3424_v3  ;;  %3030 = vmatpush3.bf16.msra.mxu1 (!%p191_p2), %v3334_v2  ;;  %v3519_v12 = vld [vmem:[%s4102_s1] ss:$0 sm:$0xff] (!%p191_p2) }
   0xc   : > { %303 = vst [vmem:[#allocation2 + $0x30] sm:$0xf] (!%p191_p2), %v3424_v3  ;;  %304 = vst [vmem:[#allocation2 + $0x34] sm:$0x1] (!%p191_p2), %v3424_v3  ;;  %3126 = vmatpush3.bf16.msra.mxu0 (!%p191_p2), %v3335_v4  ;;  %3031 = vmatprep.subr.bf16.mxu1 (!%p191_p2), %v3336_v5  ;;  %v3343_v14 = vld [vmem:[%s4104_s3 + $0x128] sm:$0xff] (!%p191_p2)   ;;  %v3345_v23 = vld [vmem:[%s4104_s3 + $0x130] sm:$0xff] (!%p191_p2)  }
   0xd   : > { %305 = vst [vmem:[#allocation2 + $0x38] sm:$0xf] %v3424_v3  ;;  %306 = vst [vmem:[#allocation2 + $0x3c] sm:$0x1] %v3424_v3  ;;  %s4117_s19 = smov (!%p3474_p3, %s2585_s19), 1  ;;  %3127 = vmatprep.subr.bf16.mxu0 %v3337_v6  ;;  %v3346_v28 = vld [vmem:[%s4104_s3 + $0x78] sm:$0xff]  }
   0xe   : > { %307 = vst [vmem:[#allocation2 + $0x40] sm:$0xf] %v3424_v3  ;;  %308 = vst [vmem:[#allocation2 + $0x44] sm:$0x1] %v3424_v3  ;;  %s2867_s12 = sshll.u32 %s4117_s19, 5  ;;  %vm430_vm1 = vcmask 1040384  }
   0xf   : > { %309 = vst [vmem:[#allocation2 + $0x48] sm:$0xf] %v3424_v3  ;;  %310 = vst [vmem:[#allocation2 + $0x4c] sm:$0x1] %v3424_v3  ;;  %3032 = vmatpush3.bf16.msra.mxu1 %v3336_v5  ;;  %s3511_s21 = scalar_lea.vmem %s4101_s0, %s2867_s12  ;;  %v3528_v17 = vld [vmem:[%s4103_s2] ss:$0 sm:$0xff]  ;;  %s231_s20 = scalar_lea.vmem %s4105_s4, %s2867_s12 }
  0x10   : > { %3128 = vmatpush3.bf16.msra.mxu0 %v3337_v6  ;;  %3033 = vmatprep.subr.bf16.mxu1 %v3338_v7  ;;  %v2878_v13 = vld [vmem:[%s3511_s21] sm:$0xff]   ;;  %v2913_v27 = vld [vmem:[%s3511_s21 + $0x8] sm:$0xff]   ;;  %vm425_vm2 = vsmask.f32 7938  ;;  %vm431_vm3 = vsmask.f32 256 }
  0x11   : > { %3129 = vmatprep.subr.bf16.mxu0 %v3339_v8  ;;  %v2879_v15 = vunpack.c.l.bf16 %v2878_v13  ;;  %v2880_v16 = vunpack.c.h.bf16 %v2878_v13  ;;  %v3530_v18 = vld [vmem:[#allocation2] sm:$0xf]  ;;  %v2883_v30 = vunpack.c.l.bf16 %v2913_v27  ;;  %v2884_v31 = vunpack.c.h.bf16 %v2913_v27  ;;  %v3347_v34 = vld [vmem:[%s4104_s3 + $0x138] sm:$0xff]   ;;  %v3555_v39 = vld [vmem:[#allocation2 + $0x4] sm:$0x1]  ;;  %s2594_s12 = sshll.u32 %s4117_s19, 1 }
  0x12   : > { %v514_v21 = vshrl.u32 %v3530_v18, 16  ;;  %v517_v25 = vshll.u32 %v3530_v18, 16  ;;  %v3560_v40 = vld [vmem:[%s4104_s3] sm:$0xff]   ;;  %v427_v46 = vld [vmem:[#allocation2 + $0x8] sm:$0xf]  ;;  %vm3571_vm6 = vmand %vm424_vm0, %vm425_vm2  ;;  %v523_v61 = vshll.u32 %v3555_v39, 16  ;;  %s235_s23 = scalar_lea.vmem %s4106_s5, %s2594_s12 }
  0x13   : > { %3034 = vmatpush3.bf16.msra.mxu1 %v3338_v7  ;;  %v261_v19 = vmul.f32 %v2879_v15, %v3519_v12  ;;  %v262_v22 = vmul.f32 %v2880_v16, %v3519_v12  ;;  %v263_v37 = vmul.f32 %v2883_v30, %v3519_v12  ;;  %v264_v38 = vmul.f32 %v2884_v31, %v3519_v12  ;;  %v3565_v44 = vld [vmem:[%s4104_s3 + $0x140] sm:$0xff]   ;;  %v433_v47 = vld [vmem:[#allocation2 + $0xc] sm:$0x1]  ;;  %v436_v53 = vld [vmem:[#allocation2 + $0x10] sm:$0xf] }
  0x14   : > { %3130 = vmatpush3.bf16.msra.mxu0 %v3339_v8  ;;  %3035 = vmatprep.subr.bf16.mxu1 %v3340_v9  ;;  %v3548_v32 = vrot.slane %v514_v21, 4  ;;  %v519_v36 = vrot.slane %v517_v25, 5  ;;  %vm510_vm4 = vsmask.f32 3328  ;;  %vm511_vm5 = vsmask.f32 7440  ;;  %vm3577_vm7 = vmand %vm430_vm1, %vm431_vm3 }
  0x15   : > { %3131 = vmatprep.subr.bf16.mxu0 %v3341_v10  ;;  %v275_v24 = vadd.f32 %v3528_v17, %v261_v19  ;;  %v276_v26 = vadd.f32 %v3528_v17, %v262_v22  ;;  %v277_v45 = vadd.f32 %v3528_v17, %v263_v37  ;;  %v278_v50 = vadd.f32 %v3528_v17, %v264_v38  ;;  %v439_v54 = vld [vmem:[#allocation2 + $0x14] sm:$0x1]  ;;  %v448_v16 = vld [vmem:[#allocation2 + $0x20] sm:$0xf]  ;;  %v451_v19 = vld [vmem:[#allocation2 + $0x24] sm:$0x1] }
  0x16   : > { %v520_v63 = vor.u32 %v519_v36, %v3548_v32  ;;  %vm3600_vm8 = vmor %vm510_vm4, %vm511_vm5  ;;  %v937_v32 = vrot.slane %v3555_v39, 5  ;;  %vm932_vm9 = vcmask 1042432   ;;  %vm933_vm10 = vcmask 1046532   ;;  %v3372_v39 = vld [vmem:[%s4104_s3 + $0x98] sm:$0xff]   ;;  %v3412_v27 = vld [vmem:[%s4104_s3 + $0x220] sm:$0xff]  }
  0x17   : > { %3036 = vmatpush3.bf16.msra.mxu1 %v3340_v9  ;;  %v283_v29 = vmax.f32 %v275_v24, 0.0  ;;  %v284_v33 = vmax.f32 %v276_v26, 0.0  ;;  %v285_v55 = vmax.f32 %v277_v45, 0.0  ;;  %v286_v58 = vmax.f32 %v278_v50, 0.0  ;;  %v442_v9 = vld [vmem:[#allocation2 + $0x18] sm:$0xf]  ;;  %vm3819_vm11 = vmor %vm932_vm9, %vm933_vm10 }
  0x18   : > { %3132 = vmatpush3.bf16.msra.mxu0 %v3341_v10  ;;  %3037 = vmatprep.subr.bf16.mxu1 %v3342_v11  ;;  %v445_v10 = vld [vmem:[#allocation2 + $0x1c] sm:$0x1]  ;;  %v3596_v24 = vrot.slane %v523_v61, 5 }
  0x19   : > { %3133 = vmatprep.subr.bf16.mxu0 %v3343_v14  ;;  %v2869_v35 = vpack.c.bf16 %v283_v29, %v283_v29  ;;  %v2870_v41 = vpack.c.bf16 %v284_v33, %v284_v33  ;;  %v2871_v62 = vpack.c.bf16 %v285_v55, %v285_v55  ;;  %v2872_v2 = vpack.c.bf16 %v286_v58, %v286_v58 }
  0x1b   : > { %3038 = vmatpush3.bf16.msra.mxu1 %v3342_v11  ;;  %v344_v42 = vshrl.u32 %v2869_v35, 16  ;;  %v347_v43 = vshll.u32 %v2869_v35, 16  ;;  %v352_v48 = vshrl.u32 %v2870_v41, 16  ;;  %v355_v49 = vshll.u32 %v2870_v41, 16  ;;  %v3614_v35 = vld [vmem:[%s3511_s21 + $0x18] sm:$0xff]  }
  0x1c   : > { %3134 = vmatpush3.bf16.msra.mxu0 %v3343_v14  ;;  %3039 = vmatprep.subr.bf16.mxu1 %v3344_v20  ;;  %v360_v5 = vshrl.u32 %v2871_v62, 16  ;;  %v363_v6 = vshll.u32 %v2871_v62, 16  ;;  %v368_v11 = vshrl.u32 %v2872_v2, 16  ;;  %v371_v13 = vshll.u32 %v2872_v2, 16 }
  0x1d   : > { %3135 = vmatprep.subr.bf16.mxu0 %v3345_v23  ;;  %v346_v51 = vrot.slane %v344_v42, 7  ;;  %v354_v57 = vrot.slane %v352_v48, 7  ;;  %v2891_v58 = vunpack.c.l.bf16 %v3614_v35 }
  0x1e   : > { %v362_v14 = vrot.slane %v360_v5, 7  ;;  %v370_v15 = vrot.slane %v368_v11, 7 }
  0x1f   : > { %3040 = vmatpush3.bf16.msra.mxu1 %v3344_v20  ;;  %v349_v59 = vor.u32 %v347_v43, %v346_v51  ;;  %v350_v60 = vrot.slane %v346_v51, 4  ;;  %v357_v0 = vor.u32 %v355_v49, %v354_v57  ;;  %v358_v1 = vrot.slane %v354_v57, 4  ;;  %v2914_v20 = vld [vmem:[%s3511_s21 + $0x10] sm:$0xff]  }
  0x20   : > { %3136 = vmatpush3.bf16.msra.mxu0 %v3345_v23  ;;  %3041 = vmatprep.subr.bf16.mxu1 %v3346_v28  ;;  %v365_v21 = vor.u32 %v363_v6, %v362_v14  ;;  %v366_v22 = vrot.slane %v362_v14, 4  ;;  %v3594_v23 = vrot.slane %v520_v63, 4  ;;  %v373_v25 = vor.u32 %v371_v13, %v370_v15 }
  0x21   : > { %3137 = vmatprep.subr.bf16.mxu0 %v3347_v34  ;;  %v428_v3 = vsel %vm3571_vm6, %v349_v59, %v427_v46  ;;  %v434_v4 = vsel %vm3577_vm7, %v350_v60, %v433_v47  ;;  %v437_v7 = vsel %vm3571_vm6, %v357_v0, %v436_v53  ;;  %v440_v8 = vsel %vm3577_vm7, %v358_v1, %v439_v54 }
  0x22   : > { %429 = vst [vmem:[#allocation2 + $0x8] sm:$0xf] %v428_v3  ;;  %435 = vst [vmem:[#allocation2 + $0xc] sm:$0x1] %v434_v4  ;;  %v374_v26 = vrot.slane %v370_v15, 4  ;;  %v446_v29 = vsel %vm3577_vm7, %v366_v22, %v445_v10  ;;  %v2887_v30 = vunpack.c.l.bf16 %v2914_v20  ;;  %v2888_v31 = vunpack.c.h.bf16 %v2914_v20 }
  0x23   : > { %3042 = vmatpush3.bf16.msra.mxu1 %v3346_v28  ;;  %438 = vst [vmem:[#allocation2 + $0x10] sm:$0xf] %v437_v7  ;;  %441 = vst [vmem:[#allocation2 + $0x14] sm:$0x1] %v440_v8  ;;  %v443_v28 = vsel %vm3571_vm6, %v365_v21, %v442_v9  ;;  %v449_v33 = vsel %vm3571_vm6, %v373_v25, %v448_v16  ;;  %v526_v41 = vsel %vm3600_vm8, %v3594_v23, %v3596_v24 }
  0x24   : > { %3138 = vmatpush3.bf16.msra.mxu0 %v3347_v34  ;;  %3051 = vmatprep.subr.bf16.mxu1 %v3560_v40  ;;  %444 = vst [vmem:[#allocation2 + $0x18] sm:$0xf] %v443_v28  ;;  %447 = vst [vmem:[#allocation2 + $0x1c] sm:$0x1] %v446_v29  ;;  %v452_v34 = vsel %vm3577_vm7, %v374_v26, %v451_v19  ;;  %v265_v51 = vmul.f32 %v2887_v30, %v3519_v12  ;;  %v2892_v4 = vunpack.c.h.bf16 %v3614_v35 }
  0x25   : > { %3147 = vmatprep.subr.bf16.mxu0 %v3565_v44  ;;  %450 = vst [vmem:[#allocation2 + $0x20] sm:$0xf] %v449_v33  ;;  %453 = vst [vmem:[#allocation2 + $0x24] sm:$0x1] %v452_v34  ;;  %v266_v53 = vmul.f32 %v2888_v31, %v3519_v12 }
  0x29   : > { %v3616_v36 = vld [vmem:[#allocation2 + $0x8] sm:$0xf]  ;;  %v3618_v37 = vld [vmem:[#allocation2 + $0xc] sm:$0x1] }
  0x2a   : > { %v1291_v38 = vld [vmem:[#allocation2 + $0x8] sm:$0xf]  ;;  %v528_v42 = vshrl.u32 %v3616_v36, 16  ;;  %v531_v43 = vshll.u32 %v3616_v36, 16  ;;  %v537_v45 = vshll.u32 %v3618_v37, 16 }
  0x2b   : > { %v3627_v46 = vld [vmem:[#allocation2 + $0xc] sm:$0x1]  ;;  %v1293_v47 = vld [vmem:[#allocation2 + $0x10] sm:$0xf]  ;;  %v3629_v48 = vld [vmem:[#allocation2 + $0x14] sm:$0x1] }
  0x2c   : > { %v1308_v49 = vshrl.u32 %v1291_v38, 16  ;;  %v1311_v50 = vshll.u32 %v1291_v38, 16  ;;  %v530_v54 = vrot.slane %v528_v42, 4  ;;  %v533_v55 = vrot.slane %v531_v43, 5  ;;  %v3635_v63 = vld [vmem:[#allocation2 + $0x10] sm:$0xf] }
  0x2d   : > { %v1317_v57 = vshll.u32 %v3627_v46, 16  ;;  %v1322_v61 = vshrl.u32 %v1293_v47, 16  ;;  %v1325_v62 = vshll.u32 %v1293_v47, 16  ;;  %v539_v1 = vrot.slane %v537_v45, 5  ;;  %v3638_v3 = vld [vmem:[#allocation2 + $0x14] sm:$0x1] }
  0x2e   : > { %v1310_v59 = vrot.slane %v1308_v49, 4  ;;  %v1313_v60 = vrot.slane %v1311_v50, 5  ;;  %v534_v0 = vor.u32 %v533_v55, %v530_v54  ;;  %v1331_v2 = vshll.u32 %v3629_v48, 16  ;;  %v3641_v9 = vld [vmem:[#allocation2 + $0x18] sm:$0xf] }
  0x2f   : > { %v1319_v6 = vrot.slane %v1317_v57, 5  ;;  %v1324_v7 = vrot.slane %v1322_v61, 4  ;;  %v1327_v8 = vrot.slane %v1325_v62, 5  ;;  %v542_v13 = vshrl.u32 %v3635_v63, 16  ;;  %v3645_v19 = vld [vmem:[#allocation2 + $0x1c] sm:$0x1] }
  0x30   : > { %v1314_v5 = vor.u32 %v1313_v60, %v1310_v59  ;;  %v535_v10 = vrot.slane %v534_v0, 4  ;;  %v1333_v11 = vrot.slane %v1331_v2, 5  ;;  %v545_v14 = vshll.u32 %v3635_v63, 16  ;;  %v1295_v26 = vld [vmem:[#allocation2 + $0x18] sm:$0xf] }
  0x31   : > { %v1328_v16 = vor.u32 %v1327_v8, %v1324_v7  ;;  %v551_v20 = vshll.u32 %v3638_v3, 16  ;;  %v556_v21 = vshrl.u32 %v3641_v9, 16  ;;  %v544_v23 = vrot.slane %v542_v13, 4  ;;  %v3654_v33 = vld [vmem:[#allocation2 + $0x1c] sm:$0x1] }
  0x32   : > { %v1315_v15 = vrot.slane %v1314_v5, 4  ;;  %v540_v22 = vsel %vm3600_vm8, %v535_v10, %v539_v1  ;;  %v547_v24 = vrot.slane %v545_v14, 5  ;;  %v559_v25 = vshll.u32 %v3641_v9, 16  ;;  %v1297_v43 = vld [vmem:[#allocation2 + $0x20] sm:$0xf] }
  0x33   : > { %v2621_v28 = vcombine.low %v526_v41, %v540_v22  ;;  %v1329_v30 = vrot.slane %v1328_v16, 4  ;;  %v553_v31 = vrot.slane %v551_v20, 5  ;;  %v558_v35 = vrot.slane %v556_v21, 4  ;;  %v3659_v47 = vld [vmem:[#allocation2 + $0x24] sm:$0x1]  ;;  %v3350_v21 = vld [vmem:[%s4104_s3 + $0x8] sm:$0xff]  }
  0x34   : > { %v1320_v29 = vsel %vm3600_vm8, %v1315_v15, %v1319_v6  ;;  %v548_v34 = vor.u32 %v547_v24, %v544_v23  ;;  %v561_v38 = vrot.slane %v559_v25, 5  ;;  %v565_v42 = vshll.u32 %v3645_v19, 16  ;;  %v3676_v23 = vld [vmem:[#allocation2 + $0x20] sm:$0xf] }
  0x35   : > { %3043 = vmatprep.mubr.bf16.mxu1 %v2621_v28  ;;  %v1334_v45 = vsel %vm3600_vm8, %v1329_v30, %v1333_v11  ;;  %v1336_v41 = vshrl.u32 %v1295_v26, 16  ;;  %v279_v49 = vadd.f32 %v3528_v17, %v265_v51  ;;  %v280_v50 = vadd.f32 %v3528_v17, %v266_v53 }
  0x36   : > { %v2725_v54 = vcombine.low %v1320_v29, %v1334_v45  ;;  %v549_v55 = vrot.slane %v548_v34, 4  ;;  %v562_v57 = vor.u32 %v561_v38, %v558_v35  ;;  %v567_v59 = vrot.slane %v565_v42, 5 }
  0x37   : > { %v1338_v60 = vrot.slane %v1336_v41, 4  ;;  %v1339_v61 = vshll.u32 %v1295_v26, 16  ;;  %v1345_v62 = vshll.u32 %v3654_v33, 16  ;;  %v1350_v0 = vshrl.u32 %v1297_v43, 16 }
  0x38   : > { %3139 = vmatprep.mubr.bf16.mxu0 %v2725_v54  ;;  %v554_v1 = vsel %vm3600_vm8, %v549_v55, %v553_v31  ;;  %v563_v2 = vrot.slane %v562_v57, 4  ;;  %v1353_v5 = vshll.u32 %v1297_v43, 16  ;;  %v1359_v6 = vshll.u32 %v3659_v47, 16  ;;  %v3682_v31 = vld [vmem:[#allocation2 + $0x24] sm:$0x1]  ;;  %v3352_v43 = vld [vmem:[%s4104_s3 + $0x10] sm:$0xff]  }
  0x39   : > { %v941_v51 = vrot.slane %v3618_v37, 5  ;;  %v1341_v53 = vrot.slane %v1339_v61, 5  ;;  %v1352_v7 = vrot.slane %v1350_v0, 4  ;;  %v267_v8 = vmul.f32 %v2891_v58, %v3519_v12  ;;  %v457_v54 = vld [vmem:[#allocation2 + $0x2c] sm:$0x1] }
  0x3a   : > { %v1599_v10 = vrot.slane %v3627_v46, 5  ;;  %v568_v11 = vsel %vm3600_vm8, %v563_v2, %v567_v59  ;;  %v1355_v13 = vrot.slane %v1353_v5, 5  ;;  %v268_v14 = vmul.f32 %v2892_v4, %v3519_v12  ;;  %v463_v0 = vld [vmem:[#allocation2 + $0x34] sm:$0x1] }
  0x3b   : > { %v2622_v15 = vcombine.low %v554_v1, %v568_v11  ;;  %v1342_v16 = vor.u32 %v1341_v53, %v1338_v60  ;;  %v1347_v20 = vrot.slane %v1345_v62, 5  ;;  %v287_v22 = vmax.f32 %v279_v49, 0.0  ;;  %v3351_v60 = vld [vmem:[%s4104_s3 + $0x148] sm:$0xff]   ;;  %v460_v62 = vld [vmem:[#allocation2 + $0x30] sm:$0xf]  ;;  %v3354_v11 = vld [vmem:[%s4104_s3 + $0x18] sm:$0xff]  }
  0x3c   : > { %v1603_v58 = vrot.slane %v3629_v48, 5  ;;  %v1356_v24 = vor.u32 %v1355_v13, %v1352_v7  ;;  %v1361_v25 = vrot.slane %v1359_v6, 5  ;;  %v288_v26 = vmax.f32 %v280_v50, 0.0  ;;  %v454_v50 = vld [vmem:[#allocation2 + $0x28] sm:$0xf] }
  0x3d   : > { %3044 = vmatmul.mubr.bf16.vlgmr.msra.gmra.mrb[0].mxu1 %v2622_v15  ;;  %v945_v28 = vrot.slane %v3638_v3, 5  ;;  %v1343_v29 = vrot.slane %v1342_v16, 4  ;;  %v2873_v12 = vpack.c.bf16 %v287_v22, %v287_v22  ;;  %v281_v4 = vadd.f32 %v3528_v17, %v267_v8  ;;  %v3353_v8 = vld [vmem:[%s4104_s3 + $0x150] sm:$0xff]  }
  0x3e   : > { %3052 = vmatpush3.bf16.msra.mxu1 %v3560_v40  ;;  %v1357_v30 = vrot.slane %v1356_v24, 4  ;;  %v570_v34 = vshrl.u32 %v3676_v23, 16  ;;  %v573_v35 = vshll.u32 %v3676_v23, 16  ;;  %v2874_v38 = vpack.c.bf16 %v288_v26, %v288_v26 }
  0x3f   : > { %v1348_v42 = vsel %vm3600_vm8, %v1343_v29, %v1347_v20  ;;  %3053 = vmatprep.subr.bf16.mxu1 %v3350_v21  ;;  %v376_v45 = vshrl.u32 %v2873_v12, 16  ;;  %v379_v41 = vshll.u32 %v2873_v12, 16  ;;  %v289_v49 = vmax.f32 %v281_v4, 0.0 }
  0x40   : > { %v1362_v40 = vsel %vm3600_vm8, %v1357_v30, %v1361_v25  ;;  %v384_v55 = vshrl.u32 %v2874_v38, 16  ;;  %v387_v57 = vshll.u32 %v2874_v38, 16  ;;  %v282_v2 = vadd.f32 %v3528_v17, %v268_v14  ;;  %v3356_v25 = vld [vmem:[%s4104_s3 + $0x20] sm:$0xff]  }
  0x41   : > { %v2726_v59 = vcombine.low %v1348_v42, %v1362_v40  ;;  %v378_v61 = vrot.slane %v376_v45, 7  ;;  %v2875_v1 = vpack.c.bf16 %v289_v49, %v289_v49  ;;  %v572_v5 = vrot.slane %v570_v34, 4  ;;  %v469_v34 = vld [vmem:[#allocation2 + $0x3c] sm:$0x1] }
  0x42   : > { %3054 = vmatpush3.bf16.msra.mxu1 %v3350_v21  ;;  %v575_v6 = vrot.slane %v573_v35, 5  ;;  %v579_v53 = vshll.u32 %v3682_v31, 16  ;;  %v386_v7 = vrot.slane %v384_v55, 7  ;;  %v466_v21 = vld [vmem:[#allocation2 + $0x38] sm:$0xf]  ;;  %v290_v22 = vmax.f32 %v282_v2, 0.0 }
  0x43   : > { %3140 = vmatmul.mubr.bf16.vlgmr.msra.gmra.mrb[0].mxu0 %v2726_v59  ;;  %3055 = vmatprep.subr.bf16.mxu1 %v3352_v43  ;;  %v381_v13 = vor.u32 %v379_v41, %v378_v61  ;;  %v382_v15 = vrot.slane %v378_v61, 4  ;;  %v392_v16 = vshrl.u32 %v2875_v1, 16  ;;  %v395_v17 = vshll.u32 %v2875_v1, 16  ;;  %v3355_v42 = vld [vmem:[%s4104_s3 + $0x158] sm:$0xff]   ;;  %v3721_v41 = vld [vmem:[#allocation2 + $0x8] sm:$0xe] }
  0x44   : > { %3148 = vmatpush3.bf16.msra.mxu0 %v3565_v44  ;;  %v389_v14 = vor.u32 %v387_v57, %v386_v7  ;;  %v390_v20 = vrot.slane %v386_v7, 4  ;;  %v949_v24 = vrot.slane %v3645_v19, 5  ;;  %v576_v44 = vor.u32 %v575_v6, %v572_v5  ;;  %v3358_v55 = vld [vmem:[%s4104_s3 + $0x28] sm:$0xff]   ;;  %v3357_v1 = vld [vmem:[%s4104_s3 + $0x160] sm:$0xff]  }
  0x45   : > { %3149 = vmatprep.subr.bf16.mxu0 %v3351_v60  ;;  %v455_v26 = vsel %vm3571_vm6, %v381_v13, %v454_v50  ;;  %v458_v29 = vsel %vm3577_vm7, %v382_v15, %v457_v54  ;;  %v394_v12 = vrot.slane %v392_v16, 7  ;;  %v2876_v35 = vpack.c.bf16 %v290_v22, %v290_v22 }
  0x46   : > { %3056 = vmatpush3.bf16.msra.mxu1 %v3352_v43  ;;  %456 = vst [vmem:[#allocation2 + $0x28] sm:$0xf] %v455_v26  ;;  %459 = vst [vmem:[#allocation2 + $0x2c] sm:$0x1] %v458_v29  ;;  %v461_v4 = vsel %vm3571_vm6, %v389_v14, %v460_v62  ;;  %v464_v30 = vsel %vm3577_vm7, %v390_v20, %v463_v0  ;;  %v1607_v38 = vrot.slane %v3654_v33, 5  ;;  %v1611_v49 = vrot.slane %v3659_v47, 5 }
  0x47   : > { %3057 = vmatprep.subr.bf16.mxu1 %v3354_v11  ;;  %462 = vst [vmem:[#allocation2 + $0x30] sm:$0xf] %v461_v4  ;;  %465 = vst [vmem:[#allocation2 + $0x34] sm:$0x1] %v464_v30  ;;  %v397_v43 = vor.u32 %v395_v17, %v394_v12  ;;  %v398_v45 = vrot.slane %v394_v12, 4  ;;  %v3724_v40 = vrot.slane %v579_v53, 5 }
  0x48   : > { %3150 = vmatpush3.bf16.msra.mxu0 %v3351_v60  ;;  %v400_v50 = vshrl.u32 %v2876_v35, 16  ;;  %v403_v54 = vshll.u32 %v2876_v35, 16  ;;  %v3733_v61 = vrot.slane %v576_v44, 4  ;;  %v472_v62 = vld [vmem:[#allocation2 + $0x40] sm:$0xf]  ;;  %v2737_v6 = vrot.slane %v3721_v41, 9 }
  0x49   : > { %3151 = vmatprep.subr.bf16.mxu0 %v3353_v8  ;;  %v467_v57 = vsel %vm3571_vm6, %v397_v43, %v466_v21  ;;  %v470_v59 = vsel %vm3577_vm7, %v398_v45, %v469_v34  ;;  %v475_v0 = vld [vmem:[#allocation2 + $0x44] sm:$0x1]  ;;  %v3359_v35 = vld [vmem:[%s4104_s3 + $0x168] sm:$0xff]   ;;  %v910_v41 = vld [vmem:[#allocation2 + $0x10] sm:$0xe] }
  0x4a   : > { %3058 = vmatpush3.bf16.msra.mxu1 %v3354_v11  ;;  %468 = vst [vmem:[#allocation2 + $0x38] sm:$0xf] %v467_v57  ;;  %471 = vst [vmem:[#allocation2 + $0x3c] sm:$0x1] %v470_v59  ;;  %v402_v60 = vrot.slane %v400_v50, 7  ;;  %v3360_v11 = vld [vmem:[%s4104_s3 + $0x30] sm:$0xff]   ;;  %v582_v56 = vsel %vm3600_vm8, %v3733_v61, %v3724_v40 }
  0x4b   : > { %3059 = vmatprep.subr.bf16.mxu1 %v3356_v25  ;;  %v3362_v40 = vld [vmem:[%s4104_s3 + $0x38] sm:$0xff]   ;;  %v3370_v33 = vld [vmem:[%s4104_s3 + $0x90] sm:$0xff]  }
  0x4c   : > { %3152 = vmatpush3.bf16.msra.mxu0 %v3353_v8  ;;  %v405_v2 = vor.u32 %v403_v54, %v402_v60  ;;  %v406_v5 = vrot.slane %v402_v60, 4 }
  0x4d   : > { %3153 = vmatprep.subr.bf16.mxu0 %v3355_v42  ;;  %v3739_v53 = vld [vmem:[#allocation2 + $0x28] sm:$0xf]  ;;  %v3741_v7 = vld [vmem:[#allocation2 + $0x2c] sm:$0x1] }
  0x4e   : > { %v1299_v13 = vld [vmem:[#allocation2 + $0x28] sm:$0xf]  ;;  %3060 = vmatpush3.bf16.msra.mxu1 %v3356_v25  ;;  %v584_v15 = vshrl.u32 %v3739_v53, 16  ;;  %v587_v16 = vshll.u32 %v3739_v53, 16  ;;  %v593_v8 = vshll.u32 %v3741_v7, 16  ;;  %v473_v29 = vsel %vm3571_vm6, %v405_v2, %v472_v62 }
  0x4f   : > { %v3749_v17 = vld [vmem:[#allocation2 + $0x2c] sm:$0x1]  ;;  %v1364_v14 = vshrl.u32 %v1299_v13, 16  ;;  %3061 = vmatprep.subr.bf16.mxu1 %v3358_v55  ;;  %v1301_v20 = vld [vmem:[#allocation2 + $0x30] sm:$0xf]  ;;  %v1367_v22 = vshll.u32 %v1299_v13, 16  ;;  %v476_v25 = vsel %vm3577_vm7, %v406_v5, %v475_v0 }
  0x50   : > { %v3751_v21 = vld [vmem:[#allocation2 + $0x34] sm:$0x1]  ;;  %v1373_v26 = vshll.u32 %v3749_v17, 16  ;;  %3154 = vmatpush3.bf16.msra.mxu0 %v3355_v42  ;;  %v586_v12 = vrot.slane %v584_v15, 4  ;;  %v589_v44 = vrot.slane %v587_v16, 5  ;;  %v595_v4 = vrot.slane %v593_v8, 5 }
  0x51   : > { %v1366_v30 = vrot.slane %v1364_v14, 4  ;;  %v3758_v34 = vld [vmem:[#allocation2 + $0x30] sm:$0xf]  ;;  %474 = vst [vmem:[#allocation2 + $0x40] sm:$0xf] %v473_v29  ;;  %3155 = vmatprep.subr.bf16.mxu0 %v3357_v1  ;;  %v1369_v43 = vrot.slane %v1367_v22, 5 }
  0x52   : > { %477 = vst [vmem:[#allocation2 + $0x44] sm:$0x1] %v476_v25  ;;  %v1375_v52 = vrot.slane %v1373_v26, 5  ;;  %v1378_v45 = vshrl.u32 %v1301_v20, 16  ;;  %v1381_v50 = vshll.u32 %v1301_v20, 16  ;;  %3062 = vmatpush3.bf16.msra.mxu1 %v3358_v55  ;;  %v590_v42 = vor.u32 %v589_v44, %v586_v12  ;;  %v3361_v20 = vld [vmem:[%s4104_s3 + $0x170] sm:$0xff]  }
  0x53   : > { %v1387_v54 = vshll.u32 %v3751_v21, 16  ;;  %v3768_v57 = vld [vmem:[#allocation2 + $0x38] sm:$0xf]  ;;  %v3770_v59 = vld [vmem:[#allocation2 + $0x34] sm:$0x1]  ;;  %v598_v60 = vshrl.u32 %v3758_v34, 16  ;;  %3063 = vmatprep.subr.bf16.mxu1 %v3360_v11  ;;  %v1370_v62 = vor.u32 %v1369_v43, %v1366_v30 }
  0x54   : > { %v1380_v0 = vrot.slane %v1378_v45, 4  ;;  %v1383_v55 = vrot.slane %v1381_v50, 5  ;;  %v3773_v2 = vld [vmem:[#allocation2 + $0x3c] sm:$0x1]  ;;  %v601_v5 = vshll.u32 %v3758_v34, 16  ;;  %3156 = vmatpush3.bf16.msra.mxu0 %v3357_v1  ;;  %v591_v61 = vrot.slane %v590_v42, 4 }
  0x55   : > { %v1389_v13 = vrot.slane %v1387_v54, 5  ;;  %v600_v15 = vrot.slane %v598_v60, 4  ;;  %v607_v16 = vshll.u32 %v3770_v59, 16  ;;  %3157 = vmatprep.subr.bf16.mxu0 %v3359_v35  ;;  %v1371_v8 = vrot.slane %v1370_v62, 4  ;;  %v1303_v29 = vld [vmem:[#allocation2 + $0x38] sm:$0xf] }
  0x56   : > { %v1384_v14 = vor.u32 %v1383_v55, %v1380_v0  ;;  %v603_v22 = vrot.slane %v601_v5, 5  ;;  %v612_v26 = vshrl.u32 %v3768_v57, 16  ;;  %v596_v25 = vsel %vm3600_vm8, %v591_v61, %v595_v4  ;;  %3064 = vmatpush3.bf16.msra.mxu1 %v3360_v11  ;;  %v3788_v30 = vld [vmem:[#allocation2 + $0x3c] sm:$0x1]  ;;  %v3795_v4 = vld [vmem:[%s4104_s3 + $0x80] sm:$0xff]  }
  0x57   : > { %v609_v1 = vrot.slane %v607_v16, 5  ;;  %v615_v12 = vshll.u32 %v3768_v57, 16  ;;  %v621_v44 = vshll.u32 %v3773_v2, 16  ;;  %v2623_v43 = vcombine.low %v582_v56, %v596_v25  ;;  %3065 = vmatprep.subr.bf16.mxu1 %v3362_v40  ;;  %v1574_v60 = vld [vmem:[#allocation2 + $0x10] sm:$0xe] }
  0x58   : > { %v1376_v45 = vsel %vm3600_vm8, %v1371_v8, %v1375_v52  ;;  %v1385_v50 = vrot.slane %v1384_v14, 4  ;;  %v604_v42 = vor.u32 %v603_v22, %v600_v15  ;;  %v1305_v54 = vld [vmem:[#allocation2 + $0x40] sm:$0xf]  ;;  %3158 = vmatpush3.bf16.msra.mxu0 %v3359_v35  ;;  %v614_v62 = vrot.slane %v612_v26, 4  ;;  %v3797_v5 = vld [vmem:[#allocation2 + $0x18] sm:$0xe] }
  0x59   : > { %v617_v0 = vrot.slane %v615_v12, 5  ;;  %v623_v11 = vrot.slane %v621_v44, 5  ;;  %v1392_v55 = vshrl.u32 %v1303_v29, 16  ;;  %3047 = vmatprep.mubr.bf16.mxu1 %v2623_v43  ;;  %3159 = vmatprep.subr.bf16.mxu0 %v3361_v20  ;;  %v3801_v61 = vld [vmem:[#allocation2 + $0x44] sm:$0x1]  ;;  %v1395_v15 = vshll.u32 %v1303_v29, 16 }
  0x5a   : > { %v1390_v52 = vsel %vm3600_vm8, %v1385_v50, %v1389_v13  ;;  %v605_v56 = vrot.slane %v604_v42, 4  ;;  %v1401_v16 = vshll.u32 %v3788_v30, 16  ;;  %v3363_v35 = vld [vmem:[%s4104_s3 + $0x178] sm:$0xff]   ;;  %v1406_v26 = vshrl.u32 %v1305_v54, 16  ;;  %3066 = vmatpush3.bf16.msra.mxu1 %v3362_v40  ;;  %v1576_v44 = vld [vmem:[#allocation2 + $0x20] sm:$0xe] }
  0x5b   : > { %v2727_v8 = vcombine.low %v1376_v45, %v1390_v52  ;;  %v618_v14 = vor.u32 %v617_v0, %v614_v62  ;;  %v1394_v22 = vrot.slane %v1392_v55, 4  ;;  %v1397_v25 = vrot.slane %v1395_v15, 5  ;;  %3075 = vmatprep.subr.bf16.mxu1 %v3795_v4  ;;  %v3815_v40 = vld [vmem:[%s4104_s3 + $0x180] sm:$0xff]   ;;  %v3827_v52 = vld [vmem:[#allocation2 + $0x38] sm:$0xe] }
  0x5c   : > { %v1409_v12 = vshll.u32 %v1305_v54, 16  ;;  %v2738_v13 = vrot.slane %v1574_v60, 9  ;;  %v2739_v43 = vrot.slane %v3797_v5, 9  ;;  %v610_v29 = vsel %vm3600_vm8, %v605_v56, %v609_v1  ;;  %3160 = vmatpush3.bf16.msra.mxu0 %v3361_v20  ;;  %v1577_v54 = vld [vmem:[#allocation2 + $0x28] sm:$0xe] }
  0x5d   : > { %3143 = vmatprep.mubr.bf16.mxu0 %v2727_v8  ;;  %v619_v50 = vrot.slane %v618_v14, 4  ;;  %v1408_v42 = vrot.slane %v1406_v26, 4  ;;  %v1415_v45 = vshll.u32 %v3801_v61, 16  ;;  %v1398_v62 = vor.u32 %v1397_v25, %v1394_v22  ;;  %3161 = vmatprep.subr.bf16.mxu0 %v3363_v35  ;;  %v1578_v1 = vld [vmem:[#allocation2 + $0x30] sm:$0xe] }
  0x5e   : > { %v1403_v60 = vrot.slane %v1401_v16, 5  ;;  %v1411_v0 = vrot.slane %v1409_v12, 5  ;;  %v2633_v5 = vcombine.low %v3530_v18, %v3616_v36  ;;  %v908_v14 = vld [vmem:[#allocation2] sm:$0xe]  ;;  %v1600_v22 = vsel %vm3819_vm11, %v2737_v6, %v1599_v10  ;;  %v909_v26 = vld [vmem:[#allocation2 + $0x8] sm:$0xe] }
  0x5f   : > { %v624_v20 = vsel %vm3600_vm8, %v619_v50, %v623_v11  ;;  %v1399_v15 = vrot.slane %v1398_v62, 4  ;;  %v1417_v8 = vrot.slane %v1415_v45, 5  ;;  %v1604_v18 = vsel %vm3819_vm11, %v2738_v13, %v1603_v58  ;;  %v911_v58 = vld [vmem:[#allocation2 + $0x18] sm:$0xe] }
  0x60   : > { %v2624_v56 = vcombine.low %v610_v29, %v624_v20  ;;  %v1412_v16 = vor.u32 %v1411_v0, %v1408_v42  ;;  %3162 = vmatpush3.bf16.msra.mxu0 %v3363_v35  ;;  %v2740_v36 = vrot.slane %v1576_v44, 9  ;;  %v2741_v11 = vrot.slane %v1577_v54, 9  ;;  %v3376_v20 = vld [vmem:[%s4104_s3 + $0xa8] sm:$0xff]  }
  0x61   : > { %v1404_v25 = vsel %vm3600_vm8, %v1399_v15, %v1403_v60  ;;  %3171 = vmatprep.subr.bf16.mxu0 %v3815_v40  ;;  %v1615_v46 = vrot.slane %v3749_v17, 5  ;;  %v2742_v10 = vrot.slane %v1578_v1, 9  ;;  %v1619_v48 = vrot.slane %v3751_v21, 5  ;;  %v3368_v21 = vld [vmem:[%s4104_s3 + $0x88] sm:$0xff]   ;;  %v3385_v1 = vld [vmem:[#allocation2 + $0x10] ss:$8 sps:$4 sm:$0xff]  }
  0x62   : > { %3048 = vmatmul.mubr.bf16.gmra.mrb[4].mxu1 %v2624_v56  ;;  %v1413_v35 = vrot.slane %v1412_v16, 4  ;;  %v2743_v6 = vrot.slane %v3827_v52, 9  ;;  %v2647_v12 = vrot.slane %v910_v41, 9  ;;  %v2761_v44 = vcombine.low %v1600_v22, %v1604_v18  ;;  %v3377_v52 = vld [vmem:[%s4104_s3 + $0x1a8] sm:$0xff]   ;;  %v3379_v56 = vld [vmem:[%s4104_s3 + $0xb0] sm:$0xff]   ;;  %v3382_v22 = vld [vmem:[%s4104_s3 + $0xb8] sm:$0xff]  }
  0x63   : > { %3067 = vmatprep.mubr.bf16.mxu1 %v2633_v5  ;;  %v1623_v29 = vrot.slane %v3788_v30, 5  ;;  %v2648_v50 = vrot.slane %v911_v58, 9  ;;  %v2645_v45 = vrot.slane %v908_v14, 9  ;;  %v2646_v54 = vrot.slane %v909_v26, 9  ;;  %v3375_v5 = vld [vmem:[%s4104_s3 + $0x1a0] sm:$0xff]  }
  0x64   : > { %v1418_v13 = vsel %vm3600_vm8, %v1413_v35, %v1417_v8  ;;  %v2634_v17 = vcombine.low %v3635_v63, %v3641_v9  ;;  %v3857_v62 = vsel %vm3819_vm11, %v2647_v12, %v945_v28  ;;  %v2635_v63 = vcombine.low %v3676_v23, %v3739_v53  ;;  %v1580_v9 = vld [vmem:[#allocation2 + $0x40] sm:$0xe]  ;;  %v913_v16 = vld [vmem:[#allocation2 + $0x28] sm:$0xe]  ;;  %v1954_v8 = vld [vmem:[#allocation2 + $0x10] sm:$0xf] }
  0x65   : > { %v2728_v42 = vcombine.low %v1404_v25, %v1418_v13  ;;  %v3863_v30 = vsel %vm3819_vm11, %v2648_v50, %v949_v24  ;;  %v1608_v3 = vsel %vm3819_vm11, %v2739_v43, %v1607_v38  ;;  %v1612_v19 = vsel %vm3819_vm11, %v2740_v36, %v1611_v49  ;;  %v912_v15 = vld [vmem:[#allocation2 + $0x20] sm:$0xe]  ;;  %v1956_v14 = vld [vmem:[#allocation2 + $0x18] sm:$0xf]  ;;  %v3380_v25 = vld [vmem:[%s4104_s3 + $0x1b0] sm:$0xff]  }
  0x66   : > { %v2670_v60 = vcombine.low %v3857_v62, %v3863_v30  ;;  %v1616_v28 = vsel %vm3819_vm11, %v2741_v11, %v1615_v46  ;;  %v1620_v23 = vsel %vm3819_vm11, %v2742_v10, %v1619_v48  ;;  %v2762_v24 = vcombine.low %v1608_v3, %v1612_v19  ;;  %v914_v35 = vld [vmem:[#allocation2 + $0x30] sm:$0xe]  ;;  %v915_v46 = vld [vmem:[#allocation2 + $0x38] sm:$0xe]  ;;  %v3388_v3 = vld [vmem:[%s4104_s3 + $0xc8] sm:$0xff]  }
  0x67   : > { %3144 = vmatmul.mubr.bf16.gmra.mrb[4].mxu0 %v2728_v42  ;;  %v2744_v47 = vrot.slane %v1580_v9, 9  ;;  %v1627_v38 = vrot.slane %v3801_v61, 5  ;;  %v938_v49 = vsel %vm3819_vm11, %v2645_v45, %v937_v32  ;;  %v942_v53 = vsel %vm3819_vm11, %v2646_v54, %v941_v51  ;;  %v3371_v51 = vld [vmem:[%s4104_s3 + $0x190] sm:$0xff]   ;;  %v3383_v12 = vld [vmem:[%s4104_s3 + $0x1b8] sm:$0xff]  }
  0x68   : > { %3163 = vmatprep.mubr.bf16.mxu0 %v2761_v44  ;;  %v2763_v43 = vcombine.low %v1616_v28, %v1620_v23  ;;  %v2636_v0 = vcombine.low %v3758_v34, %v3768_v57  ;;  %v2669_v61 = vcombine.low %v938_v49, %v942_v53  ;;  %v1624_v32 = vsel %vm3819_vm11, %v2743_v6, %v1623_v29  ;;  %v3374_v57 = vld [vmem:[%s4104_s3 + $0xa0] sm:$0xff]   ;;  %v3950_v9 = vld [vmem:[#allocation2 + $0x1c] sm:$0x1]  ;;  %v3390_v49 = vld [vmem:[%s4104_s3 + $0xd0] sm:$0xff]  }
  0x69   : > { %v1628_v37 = vsel %vm3819_vm11, %v2744_v47, %v1627_v38  ;;  %v2649_v18 = vrot.slane %v912_v15, 9  ;;  %v953_v36 = vrot.slane %v3682_v31, 5  ;;  %v2650_v11 = vrot.slane %v913_v16, 9  ;;  %v3384_v31 = vld [vmem:[%s4104_s3 + $0xc0] sm:$0xff]   ;;  %v3389_v38 = vld [vmem:[%s4104_s3 + $0x1c8] sm:$0xff]  }
  0x6a   : > { %3068 = vmatmul.mubr.bf16.vlgmr.msra.gmra.mrb[0].mxu1 %v2634_v17  ;;  %v2764_v34 = vcombine.low %v1624_v32, %v1628_v37  ;;  %v957_v26 = vrot.slane %v3741_v7, 5  ;;  %v1971_v41 = vshrl.u32 %v1954_v8, 16  ;;  %v1974_v10 = vshll.u32 %v1954_v8, 16  ;;  %v3398_v62 = vld [vmem:[#allocation2 + $0x30] ss:$8 sps:$4 sm:$0xff]  }
  0x6b   : > { %3076 = vmatpush3.bf16.msra.mxu1 %v3795_v4  ;;  %3071 = vmatprep.mubr.bf16.mxu1 %v2635_v63  ;;  %v3369_v4 = vld [vmem:[%s4104_s3 + $0x188] sm:$0xff]   ;;  %v1985_v48 = vshrl.u32 %v1956_v14, 16  ;;  %v1988_v6 = vshll.u32 %v1956_v14, 16  ;;  %v954_v7 = vsel %vm3819_vm11, %v2649_v18, %v953_v36  ;;  %v2651_v13 = vrot.slane %v914_v35, 9  ;;  %v3948_v63 = vld [vmem:[#allocation2 + $0x14] sm:$0x1] }
  0x6c   : > { %3077 = vmatprep.subr.bf16.mxu1 %v3368_v21  ;;  %v958_v58 = vsel %vm3819_vm11, %v2650_v11, %v957_v26  ;;  %v961_v44 = vrot.slane %v3770_v59, 5  ;;  %v2652_v29 = vrot.slane %v915_v46, 9  ;;  %v965_v50 = vrot.slane %v3773_v2, 5  ;;  %v3386_v59 = vld [vmem:[%s4104_s3 + $0x1c0] sm:$0xff]   ;;  %v3396_v26 = vld [vmem:[%s4104_s3 + $0xe8] sm:$0xff]  }
  0x6d   : > { %v1973_v42 = vrot.slane %v1971_v41, 4  ;;  %v1976_v45 = vrot.slane %v1974_v10, 5  ;;  %v1987_v54 = vrot.slane %v1985_v48, 4  ;;  %v1990_v17 = vrot.slane %v1988_v6, 5  ;;  %v3387_v2 = vld [vmem:[#allocation2 + $0x20] ss:$8 sps:$4 sm:$0xff]  }
  0x6e   : > { %v962_v19 = vsel %vm3819_vm11, %v2651_v13, %v961_v44  ;;  %v966_v28 = vsel %vm3819_vm11, %v2652_v29, %v965_v50  ;;  %v1994_v47 = vshll.u32 %v3950_v9, 16  ;;  %v1958_v32 = vld [vmem:[#allocation2 + $0x20] sm:$0xf]  ;;  %v3997_v48 = vld [vmem:[#allocation2 + $0x2c] sm:$0x1]  ;;  %v3399_v44 = vld [vmem:[%s4104_s3 + $0xf0] sm:$0xff]  }
  0x6f   : > { %3164 = vmatmul.mubr.bf16.vlgmr.msra.gmra.mrb[0].mxu0 %v2762_v24  ;;  %3078 = vmatpush3.bf16.msra.mxu1 %v3368_v21  ;;  %v2671_v21 = vcombine.low %v954_v7, %v958_v58  ;;  %v1977_v23 = vor.u32 %v1976_v45, %v1973_v42  ;;  %v1980_v24 = vshll.u32 %v3948_v63, 16  ;;  %v2672_v30 = vcombine.low %v962_v19, %v966_v28  ;;  %v3395_v11 = vld [vmem:[%s4104_s3 + $0x1e0] sm:$0xff]   ;;  %v4001_v13 = vld [vmem:[#allocation2 + $0x3c] sm:$0x1]  ;;  %v1968_v50 = vld [vmem:[#allocation2 + $0x48] sm:$0xf] }
  0x70   : > { %3172 = vmatpush3.bf16.msra.mxu0 %v3815_v40  ;;  %3079 = vmatprep.subr.bf16.mxu1 %v3370_v33  ;;  %v3373_v40 = vld [vmem:[%s4104_s3 + $0x198] sm:$0xff]   ;;  %v2002_v15 = vshll.u32 %v1958_v32, 16  ;;  %v1966_v29 = vld [vmem:[#allocation2 + $0x40] sm:$0xf]  ;;  %v3397_v42 = vld [vmem:[%s4104_s3 + $0x1e8] sm:$0xff]   ;;  %v2050_v19 = vshll.u32 %v4001_v13, 16 }
  0x71   : > { %3173 = vmatprep.subr.bf16.mxu0 %v3369_v4  ;;  %3167 = vmatprep.mubr.bf16.mxu0 %v2763_v43  ;;  %v1982_v53 = vrot.slane %v1980_v24, 5  ;;  %v1996_v43 = vrot.slane %v1994_v47, 5  ;;  %v2055_v28 = vshrl.u32 %v1966_v29, 16  ;;  %v2069_v24 = vshrl.u32 %v1968_v50, 16  ;;  %v3402_v47 = vld [vmem:[%s4104_s3 + $0xf8] sm:$0xff]  }
  0x72   : > { %3072 = vmatmul.mubr.bf16.gmra.mrb[4].mxu1 %v2636_v0  ;;  %v3404_v0 = vld [vmem:[#allocation2 + $0x8] ss:$8 sps:$4 sm:$0xff]   ;;  %v2004_v46 = vrot.slane %v2002_v15, 5 }
  0x73   : > { %3080 = vmatpush3.bf16.msra.mxu1 %v3370_v33  ;;  %3091 = vmatprep.mubr.bf16.mxu1 %v2669_v61  ;;  %v1991_v33 = vor.u32 %v1990_v17, %v1987_v54  ;;  %v3392_v61 = vld [vmem:[%s4104_s3 + $0xd8] sm:$0xff]  }
  0x74   : > { %3174 = vmatpush3.bf16.msra.mxu0 %v3369_v4  ;;  %3081 = vmatprep.subr.bf16.mxu1 %v3372_v39 }
  0x75   : > { %3175 = vmatprep.subr.bf16.mxu0 %v3371_v51  ;;  %v1992_v4 = vrot.slane %v1991_v33, 4  ;;  %v2072_v33 = vshll.u32 %v1968_v50, 16 }
  0x77   : > { %3082 = vmatpush3.bf16.msra.mxu1 %v3372_v39  ;;  %3168 = vmatmul.mubr.bf16.gmra.mrb[4].mxu0 %v2764_v34  ;;  %v3391_v39 = vld [vmem:[%s4104_s3 + $0x1d0] sm:$0xff]   ;;  %v1960_v34 = vld [vmem:[#allocation2 + $0x28] sm:$0xf] }
  0x78   : > { %3176 = vmatpush3.bf16.msra.mxu0 %v3371_v51  ;;  %3083 = vmatprep.subr.bf16.mxu1 %v3374_v57  ;;  %v1997_v51 = vsel %vm3600_vm8, %v1992_v4, %v1996_v43  ;;  %v2013_v16 = vshrl.u32 %v1960_v34, 16  ;;  %v2016_v8 = vshll.u32 %v1960_v34, 16  ;;  %v2074_v34 = vrot.slane %v2072_v33, 5  ;;  %v3413_v33 = vld [vmem:[%s4104_s3 + $0x228] sm:$0xff]  }
  0x79   : > { %3177 = vmatprep.subr.bf16.mxu0 %v3373_v40  ;;  %3187 = vmatprep.mubr.bf16.mxu0 %v3385_v1  ;;  %v1964_v1 = vld [vmem:[#allocation2 + $0x38] sm:$0xf] }
  0x7a   : > { %v2041_v18 = vshrl.u32 %v1964_v1, 16  ;;  %v2044_v36 = vshll.u32 %v1964_v1, 16  ;;  %v2015_v41 = vrot.slane %v2013_v16, 4  ;;  %v2018_v10 = vrot.slane %v2016_v8, 5  ;;  %v2240_v1 = vld [vmem:[#allocation2 + $0x30] sm:$0xe] }
  0x7b   : > { %3084 = vmatpush3.bf16.msra.mxu1 %v3374_v57  ;;  %v3400_v57 = vld [vmem:[#allocation2 + $0x40] ss:$8 sps:$4 sm:$0xff]  }
  0x7c   : > { %3178 = vmatpush3.bf16.msra.mxu0 %v3373_v40  ;;  %3085 = vmatprep.subr.bf16.mxu1 %v3376_v20  ;;  %v1962_v40 = vld [vmem:[#allocation2 + $0x30] sm:$0xf]  ;;  %v2043_v7 = vrot.slane %v2041_v18, 4  ;;  %v2046_v58 = vrot.slane %v2044_v36, 5  ;;  %v2019_v17 = vor.u32 %v2018_v10, %v2015_v41  ;;  %v2282_v41 = vrot.slane %v4001_v13, 5 }
  0x7d   : > { %3179 = vmatprep.subr.bf16.mxu0 %v3375_v5  ;;  %v2027_v14 = vshrl.u32 %v1962_v40, 16  ;;  %v3408_v8 = vld [vmem:[#allocation2 + $0x28] ss:$8 sps:$4 sm:$0xff]  }
  0x7f   : > { %3086 = vmatpush3.bf16.msra.mxu1 %v3376_v20  ;;  %v3394_v20 = vld [vmem:[%s4104_s3 + $0xe0] sm:$0xff]   ;;  %v2029_v6 = vrot.slane %v2027_v14, 4 }
  0x80   : > { %3180 = vmatpush3.bf16.msra.mxu0 %v3375_v5  ;;  %3087 = vmatprep.subr.bf16.mxu1 %v3379_v56  ;;  %v1999_v5 = vshrl.u32 %v1958_v32, 16  ;;  %v2057_v32 = vrot.slane %v2055_v28, 4  ;;  %v3411_v28 = vld [vmem:[%s4104_s3 + $0x218] sm:$0xff]  }
  0x81   : > { %3181 = vmatprep.subr.bf16.mxu0 %v3377_v52 }
  0x82   : > { %v2001_v35 = vrot.slane %v1999_v5, 4  ;;  %v3405_v5 = vld [vmem:[#allocation2 + $0x18] ss:$8 sps:$4 sm:$0xff]  }
  0x83   : > { %3088 = vmatpush3.bf16.msra.mxu1 %v3379_v56 }
  0x84   : > { %3182 = vmatpush3.bf16.msra.mxu0 %v3377_v52  ;;  %3089 = vmatprep.subr.bf16.mxu1 %v3382_v22  ;;  %v3393_v52 = vld [vmem:[%s4104_s3 + $0x1d8] sm:$0xff]   ;;  %v2005_v45 = vor.u32 %v2004_v46, %v2001_v35 }
  0x85   : > { %3183 = vmatprep.subr.bf16.mxu0 %v3380_v25 }
  0x87   : > { %3090 = vmatpush3.bf16.msra.mxu1 %v3382_v22  ;;  %v2030_v22 = vshll.u32 %v1962_v40, 16  ;;  %v3403_v40 = vld [vmem:[%s4104_s3 + $0x1f8] sm:$0xff]  }
  0x88   : > { %3184 = vmatpush3.bf16.msra.mxu0 %v3380_v25  ;;  %3099 = vmatprep.subr.bf16.mxu1 %v3384_v31  ;;  %v3995_v25 = vld [vmem:[#allocation2 + $0x24] sm:$0x1] }
  0x89   : > { %3185 = vmatprep.subr.bf16.mxu0 %v3383_v12  ;;  %v2008_v54 = vshll.u32 %v3995_v25, 16 }
  0x8a   : > { %3092 = vmatmul.mubr.bf16.vlgmr.msra.gmra.mrb[0].mxu1 %v2670_v60  ;;  %v1978_v60 = vrot.slane %v1977_v23, 4  ;;  %v2058_v23 = vshll.u32 %v1966_v29, 16 }
  0x8b   : > { %3100 = vmatpush3.bf16.msra.mxu1 %v3384_v31  ;;  %3095 = vmatprep.mubr.bf16.mxu1 %v2671_v21  ;;  %v2032_v31 = vrot.slane %v2030_v22, 5  ;;  %v2022_v21 = vshll.u32 %v3997_v48, 16 }
  0x8c   : > { %3186 = vmatpush3.bf16.msra.mxu0 %v3383_v12  ;;  %3101 = vmatprep.subr.bf16.mxu1 %v3388_v3  ;;  %v1983_v37 = vsel %vm3600_vm8, %v1978_v60, %v1982_v53  ;;  %v3999_v12 = vld [vmem:[#allocation2 + $0x34] sm:$0x1] }
  0x8d   : > { %3195 = vmatprep.subr.bf16.mxu0 %v3386_v59  ;;  %v2817_v56 = vcombine.low %v1983_v37, %v1997_v51  ;;  %v2024_v60 = vrot.slane %v2022_v21, 5  ;;  %v2060_v37 = vrot.slane %v2058_v23, 5  ;;  %v2071_v51 = vrot.slane %v2069_v24, 4 }
  0x8e   : > { %v2278_v35 = vrot.slane %v3999_v12, 5 }
  0x8f   : > { %3188 = vmatmul.mubr.bf16.vlgmr.msra.gmra.mrb[0].mxu0 %v3387_v2  ;;  %3102 = vmatpush3.bf16.msra.mxu1 %v3388_v3  ;;  %v2033_v3 = vor.u32 %v2032_v31, %v2029_v6  ;;  %v2047_v2 = vor.u32 %v2046_v58, %v2043_v7  ;;  %v2061_v18 = vor.u32 %v2060_v37, %v2057_v32  ;;  %v2236_v58 = vld [vmem:[#allocation2 + $0x10] sm:$0xe]  ;;  %v2270_v37 = vrot.slane %v3995_v25, 5 }
  0x90   : > { %3196 = vmatpush3.bf16.msra.mxu0 %v3386_v59  ;;  %3103 = vmatprep.subr.bf16.mxu1 %v3390_v49  ;;  %v2036_v59 = vshll.u32 %v3999_v12, 16  ;;  %v2075_v36 = vor.u32 %v2074_v34, %v2071_v51  ;;  %v2274_v34 = vrot.slane %v3997_v48, 5 }
  0x91   : > { %3197 = vmatprep.subr.bf16.mxu0 %v3389_v38  ;;  %3191 = vmatprep.mubr.bf16.mxu0 %v3398_v62  ;;  %v2010_v62 = vrot.slane %v2008_v54, 5  ;;  %v2034_v53 = vrot.slane %v2033_v3, 4  ;;  %v2048_v43 = vrot.slane %v2047_v2, 4  ;;  %v2062_v29 = vrot.slane %v2061_v18, 4 }
  0x92   : > { %3096 = vmatmul.mubr.bf16.gmra.mrb[4].mxu1 %v2672_v30  ;;  %v2020_v30 = vrot.slane %v2019_v17, 4  ;;  %v2038_v4 = vrot.slane %v2036_v59, 5  ;;  %v2076_v50 = vrot.slane %v2075_v36, 4  ;;  %v2829_v54 = vrot.slane %v2236_v58, 9 }
  0x93   : > { %3104 = vmatpush3.bf16.msra.mxu1 %v3390_v49  ;;  %3115 = vmatprep.mubr.bf16.mxu1 %v3404_v0  ;;  %v2006_v49 = vrot.slane %v2005_v45, 4  ;;  %v2052_v0 = vrot.slane %v2050_v19, 5  ;;  %v3409_v45 = vld [vmem:[#allocation2 + $0x38] ss:$8 sps:$4 sm:$0xff]   ;;  %v2262_v17 = vrot.slane %v3948_v63, 5  ;;  %v2266_v3 = vrot.slane %v3950_v9, 5 }
  0x94   : > { %3198 = vmatpush3.bf16.msra.mxu0 %v3389_v38  ;;  %3105 = vmatprep.subr.bf16.mxu1 %v3392_v61  ;;  %v3401_v38 = vld [vmem:[%s4104_s3 + $0x1f0] sm:$0xff]   ;;  %v2039_v14 = vsel %vm3600_vm8, %v2034_v53, %v2038_v4  ;;  %v3415_v4 = vld [vmem:[%s4104_s3 + $0x238] sm:$0xff]  }
  0x95   : > { %3199 = vmatprep.subr.bf16.mxu0 %v3391_v39  ;;  %v2053_v22 = vsel %vm3600_vm8, %v2048_v43, %v2052_v0  ;;  %v2263_v63 = vsel %vm3819_vm11, %v2829_v54, %v2262_v17  ;;  %v2238_v43 = vld [vmem:[#allocation2 + $0x20] sm:$0xe]  ;;  %v2239_v0 = vld [vmem:[#allocation2 + $0x28] sm:$0xe] }
  0x96   : > { %v2819_v6 = vcombine.low %v2039_v14, %v2053_v22  ;;  %v2832_v51 = vrot.slane %v2239_v0, 9 }
  0x97   : > { %3106 = vmatpush3.bf16.msra.mxu1 %v3392_v61  ;;  %3192 = vmatmul.mubr.bf16.gmra.mrb[4].mxu0 %v3400_v57  ;;  %v4019_v61 = vld [vmem:[#allocation2 + $0x44] sm:$0x1] }
  0x98   : > { %3200 = vmatpush3.bf16.msra.mxu0 %v3391_v39  ;;  %3107 = vmatprep.subr.bf16.mxu1 %v3394_v20  ;;  %v4021_v39 = vld [vmem:[#allocation2 + $0x4c] sm:$0x1]  ;;  %v3406_v57 = vld [vmem:[%s4104_s3 + $0x200] sm:$0xff]   ;;  %v2064_v15 = vshll.u32 %v4019_v61, 16 }
  0x99   : > { %3201 = vmatprep.subr.bf16.mxu0 %v3393_v52  ;;  %3211 = vmatprep.mubr.bf16.mxu0 %v2817_v56  ;;  %v2025_v56 = vsel %vm3600_vm8, %v2020_v30, %v2024_v60  ;;  %v2078_v16 = vshll.u32 %v4021_v39, 16  ;;  %v2290_v30 = vrot.slane %v4021_v39, 5  ;;  %v2831_v39 = vrot.slane %v2238_v43, 9 }
  0x9a   : > { %v2066_v31 = vrot.slane %v2064_v15, 5 }
  0x9b   : > { %3108 = vmatpush3.bf16.msra.mxu1 %v3394_v20  ;;  %v2241_v20 = vld [vmem:[#allocation2 + $0x38] sm:$0xe]  ;;  %v2080_v7 = vrot.slane %v2078_v16, 5 }
  0x9c   : > { %3202 = vmatpush3.bf16.msra.mxu0 %v3393_v52  ;;  %3109 = vmatprep.subr.bf16.mxu1 %v3396_v26  ;;  %v2011_v52 = vsel %vm3600_vm8, %v2006_v49, %v2010_v62  ;;  %v2834_v46 = vrot.slane %v2241_v20, 9  ;;  %v2067_v2 = vsel %vm3600_vm8, %v2062_v29, %v2066_v31  ;;  %v2243_v49 = vld [vmem:[#allocation2 + $0x48] sm:$0xe]  ;;  %v2286_v62 = vrot.slane %v4019_v61, 5 }
  0x9d   : > { %3203 = vmatprep.subr.bf16.mxu0 %v3395_v11  ;;  %v2818_v10 = vcombine.low %v2011_v52, %v2025_v56  ;;  %v2081_v19 = vsel %vm3600_vm8, %v2076_v50, %v2080_v7  ;;  %v2836_v53 = vrot.slane %v2243_v49, 9 }
  0x9e   : > { %v2283_v13 = vsel %vm3819_vm11, %v2834_v46, %v2282_v41  ;;  %v2820_v23 = vcombine.low %v2067_v2, %v2081_v19 }
  0x9f   : > { %3110 = vmatpush3.bf16.msra.mxu1 %v3396_v26  ;;  %v2833_v26 = vrot.slane %v2240_v1, 9  ;;  %v2291_v61 = vsel %vm3819_vm11, %v2836_v53, %v2290_v30  ;;  %v2275_v1 = vsel %vm3819_vm11, %v2832_v51, %v2274_v34 }
  0xa0   : > { %3204 = vmatpush3.bf16.msra.mxu0 %v3395_v11  ;;  %3111 = vmatprep.subr.bf16.mxu1 %v3399_v44  ;;  %v3407_v11 = vld [vmem:[%s4104_s3 + $0x208] sm:$0xff]  }
  0xa1   : > { %3205 = vmatprep.subr.bf16.mxu0 %v3397_v42  ;;  %v2279_v12 = vsel %vm3819_vm11, %v2833_v26, %v2278_v35 }
  0xa2   : > { %v2855_v59 = vcombine.low %v2279_v12, %v2283_v13 }
  0xa3   : > { %3112 = vmatpush3.bf16.msra.mxu1 %v3399_v44  ;;  %v2237_v44 = vld [vmem:[#allocation2 + $0x18] sm:$0xe] }
  0xa4   : > { %3206 = vmatpush3.bf16.msra.mxu0 %v3397_v42  ;;  %3113 = vmatprep.subr.bf16.mxu1 %v3402_v47  ;;  %v3410_v42 = vld [vmem:[%s4104_s3 + $0x210] sm:$0xff]   ;;  %v2830_v21 = vrot.slane %v2237_v44, 9 }
  0xa5   : > { %3207 = vmatprep.subr.bf16.mxu0 %v3401_v38 }
  0xa6   : > { %v2267_v9 = vsel %vm3819_vm11, %v2830_v21, %v2266_v3 }
  0xa7   : > { %3114 = vmatpush3.bf16.msra.mxu1 %v3402_v47  ;;  %v2853_v24 = vcombine.low %v2263_v63, %v2267_v9  ;;  %v3414_v47 = vld [vmem:[%s4104_s3 + $0x230] sm:$0xff]  }
  0xa8   : > { %3208 = vmatpush3.bf16.msra.mxu0 %v3401_v38  ;;  %3243 = vmatprep.subr.bf16.mxu1 %v3406_v57  ;;  %v2242_v38 = vld [vmem:[#allocation2 + $0x40] sm:$0xe] }
  0xa9   : > { %3209 = vmatprep.subr.bf16.mxu0 %v3403_v40  ;;  %v2835_v60 = vrot.slane %v2242_v38, 9 }
  0xaa   : > { %3116 = vmatmul.mubr.bf16.vlgmr.msra.gmra.mrb[0].mxu1 %v3405_v5 }
  0xab   : > { %3251 = vmatpush3.bf16.msra.mxu1 %v3406_v57  ;;  %3119 = vmatprep.mubr.bf16.mxu1 %v3408_v8  ;;  %v2287_v32 = vsel %vm3819_vm11, %v2835_v60, %v2286_v62 }
  0xac   : > { %3210 = vmatpush3.bf16.msra.mxu0 %v3403_v40  ;;  %3244 = vmatprep.subr.bf16.mxu1 %v3407_v11  ;;  %v2271_v40 = vsel %vm3819_vm11, %v2831_v39, %v2270_v37 }
  0xad   : > { %3219 = vmatprep.subr.bf16.mxu0 %v3406_v57  ;;  %v2854_v20 = vcombine.low %v2271_v40, %v2275_v1 }
  0xaf   : > { %3212 = vmatmul.mubr.bf16.vlgmr.msra.gmra.mrb[0].mxu0 %v2818_v10  ;;  %3252 = vmatpush3.bf16.msra.mxu1 %v3407_v11 }
  0xb0   : > { %3220 = vmatpush3.bf16.msra.mxu0 %v3406_v57  ;;  %3215 = vmatprep.mubr.bf16.mxu0 %v2819_v6  ;;  %v2856_v57 = vcombine.low %v2287_v32, %v2291_v61 }
  0xb1   : > { %3221 = vmatprep.subr.bf16.mxu0 %v3407_v11  ;;  %3245 = vmatprep.subr.bf16.mxu1 %v3410_v42 }
  0xb2   : > { %3120 = vmatmul.mubr.bf16.gmra.mrb[4].mxu1 %v3409_v45 }
  0xb3   : > { %3253 = vmatpush3.bf16.msra.mxu1 %v3410_v42  ;;  %3239 = vmatprep.mubr.bf16.mxu1 %v2855_v59 }
  0xb4   : > { %3222 = vmatpush3.bf16.msra.mxu0 %v3407_v11  ;;  %3246 = vmatprep.subr.bf16.mxu1 %v3411_v28 }
  0xb5   : > { %3223 = vmatprep.subr.bf16.mxu0 %v3410_v42 }
  0xb7   : > { %3216 = vmatmul.mubr.bf16.gmra.mrb[4].mxu0 %v2820_v23  ;;  %3254 = vmatpush3.bf16.msra.mxu1 %v3411_v28 }
  0xb8   : > { %3224 = vmatpush3.bf16.msra.mxu0 %v3410_v42  ;;  %3247 = vmatprep.subr.bf16.mxu1 %v3412_v27 }
  0xb9   : > { %3225 = vmatprep.subr.bf16.mxu0 %v3411_v28  ;;  %3235 = vmatprep.mubr.bf16.mxu0 %v2853_v24 }
  0xbb   : > { %3255 = vmatpush3.bf16.msra.mxu1 %v3412_v27 }
  0xbc   : > { %3226 = vmatpush3.bf16.msra.mxu0 %v3411_v28  ;;  %3248 = vmatprep.subr.bf16.mxu1 %v3413_v33 }
  0xbd   : > { %3227 = vmatprep.subr.bf16.mxu0 %v3412_v27 }
  0xbf   : > { %3256 = vmatpush3.bf16.msra.mxu1 %v3413_v33 }
  0xc0   : > { %3228 = vmatpush3.bf16.msra.mxu0 %v3412_v27  ;;  %3249 = vmatprep.subr.bf16.mxu1 %v3414_v47 }
  0xc1   : > { %3229 = vmatprep.subr.bf16.mxu0 %v3413_v33 }
  0xc3   : > { %3257 = vmatpush3.bf16.msra.mxu1 %v3414_v47 }
  0xc4   : > { %3230 = vmatpush3.bf16.msra.mxu0 %v3413_v33  ;;  %3250 = vmatprep.subr.bf16.mxu1 %v3415_v4 }
  0xc5   : > { %3231 = vmatprep.subr.bf16.mxu0 %v3414_v47 }
  0xc7   : > { %3258 = vmatpush3.bf16.msra.mxu1 %v3415_v4 }
  0xc8   : > { %3232 = vmatpush3.bf16.msra.mxu0 %v3414_v47 }
  0xc9   : > { %3233 = vmatprep.subr.bf16.mxu0 %v3415_v4 }
  0xca   : > { %3240 = vmatmul.mubr.bf16.vlgmr.msra.gmra.mrb[8].mxu1 %v2856_v57 }
  0xcc   : > { %3234 = vmatpush3.bf16.msra.mxu0 %v3415_v4 }
  0xcf   : > { %3236 = vmatmul.mubr.bf16.vlgmr.msra.gmra.mrb[0].mxu0 %v2854_v20 }
 0x17d   : > { %v3117_v5 = vpop.f32.mrb[0].mxu1 }
 0x17e   : > { %v1252_v25 = vpop.f32.mrb[1].mxu1 }
 0x17f   : > { %v3118_v52 = vpop.f32.mrb[2].mxu1 }
 0x180   : > { %v1255_v56 = vpop.f32.mrb[3].mxu1 }
 0x185   : > { %v3121_v48 = vpop.f32.mrb[4].mxu1 }
 0x186   : > { %v1268_v15 = vpop.f32.mrb[5].mxu1 }
 0x187   : > { %v3122_v16 = vpop.f32.mrb[6].mxu1 }
 0x188   : > { %v1271_v8 = vpop.f32.mrb[7].mxu1 }
 0x18a   : > { %v3217_v14 = vpop.f32.mrb[4].mxu0 }
 0x18b   : > { %v3263_v22 = vadd.f32 %v3217_v14, %v3121_v48  ;;  %v2213_v18 = vpop.f32.mrb[5].mxu0 }
 0x18c   : > { %v3265_v36 = vadd.f32 %v2213_v18, %v1268_v15  ;;  %v3218_v55 = vpop.f32.mrb[6].mxu0 }
 0x18d   : > { %v3267_v11 = vadd.f32 %v3218_v55, %v3122_v16  ;;  %v2216_v26 = vpop.f32.mrb[7].mxu0 }
 0x18e   : > { %v3269_v35 = vadd.f32 %v2216_v26, %v1271_v8 }
 0x19d   : > { %v3241_v46 = vpop.f32.mrb[8].mxu1 }
 0x19e   : > { %v3264_v41 = vadd.f32 %v3263_v22, %v3241_v46  ;;  %v2423_v10 = vpop.f32.mrb[9].mxu1 }
 0x19f   : > { %v3266_v6 = vadd.f32 %v3265_v36, %v2423_v10  ;;  %v3242_v31 = vpop.f32.mrb[10].mxu1 }
 0x1a0   : > { %v3268_v7 = vadd.f32 %v3267_v11, %v3242_v31  ;;  %v2426_v58 = vpop.f32.mrb[11].mxu1  ;;  %v2481_v4 = vmul.f32 %v3264_v41, %v3264_v41 }
 0x1a1   : > { %v3270_v44 = vadd.f32 %v3269_v35, %v2426_v58  ;;  %v2479_v38 = vmul.f32 %v3266_v6, %v3266_v6 }
 0x1a2   : > { %v3237_v29 = vpop.f32.mrb[0].mxu0  ;;  %v2911_v50 = vpack.c.bf16 %v3268_v7, %v3264_v41  ;;  %v2482_v32 = vmul.f32 %v3268_v7, %v3268_v7 }
 0x1a3   : > { %v3259_v12 = vadd.f32 %v3237_v29, %v3117_v5  ;;  %v2407_v13 = vpop.f32.mrb[1].mxu0  ;;  %v2906_v42 = vpack.c.bf16 %v3270_v44, %v3266_v6  ;;  %v2480_v60 = vmul.f32 %v3270_v44, %v3270_v44 }
 0x1a4   : > { %v3260_v45 = vadd.f32 %v2407_v13, %v1252_v25  ;;  %v3238_v54 = vpop.f32.mrb[2].mxu0  ;;  %2918 = vst [vmem:[%s231_s20 + $0x18] sm:$0xff] %v2911_v50  }
 0x1a5   : > { %v3261_v17 = vadd.f32 %v3238_v54, %v3118_v52  ;;  %v2410_v21 = vpop.f32.mrb[3].mxu0  ;;  %2917 = vst [vmem:[%s231_s20 + $0x10] sm:$0xff] %v2906_v42   ;;  %v2477_v9 = vmul.f32 %v3259_v12, %v3259_v12 }
 0x1a6   : > { %v3262_v3 = vadd.f32 %v2410_v21, %v1255_v56  ;;  %v2475_v2 = vmul.f32 %v3260_v45, %v3260_v45 }
 0x1a7   : > { %v2901_v59 = vpack.c.bf16 %v3261_v17, %v3259_v12  ;;  %v2478_v24 = vmul.f32 %v3261_v17, %v3261_v17 }
 0x1a8   : > { %v2896_v19 = vpack.c.bf16 %v3262_v3, %v3260_v45  ;;  %v2462_v28 = vadd.f32 %v3262_v3, %v3260_v45  ;;  %v2476_v63 = vmul.f32 %v3262_v3, %v3262_v3 }
 0x1a9   : > { %2916 = vst [vmem:[%s231_s20 + $0x8] sm:$0xff] %v2901_v59  }
 0x1aa   : > { %2897 = vst [vmem:[%s231_s20] sm:$0xff] %v2896_v19   ;;  %v2463_v23 = vadd.f32 %v3259_v12, %v2462_v28  ;;  %v2483_v27 = vadd.f32 %v2476_v63, %v2475_v2 }
 0x1ac   : > { %v2484_v33 = vadd.f32 %v2483_v27, %v2477_v9  ;;  %v2464_v47 = vadd.f32 %v3261_v17, %v2463_v23 }
 0x1ae   : > { %v2465_v49 = vadd.f32 %v3266_v6, %v2464_v47  ;;  %v2485_v62 = vadd.f32 %v2484_v33, %v2478_v24 }
 0x1b0   : > { %v2466_v30 = vadd.f32 %v3270_v44, %v2465_v49  ;;  %v2486_v53 = vadd.f32 %v2485_v62, %v2479_v38 }
 0x1b2   : > { %v2467_v43 = vadd.f32 %v3264_v41, %v2466_v30  ;;  %v2487_v0 = vadd.f32 %v2486_v53, %v2480_v60 }
 0x1b4   : > { %v2468_v61 = vadd.f32 %v3268_v7, %v2467_v43  ;;  %v2488_v39 = vadd.f32 %v2487_v0, %v2481_v4 }
 0x1b6   : > { %v2469_v37 = vrot.slane %v2468_v61, 4  ;;  %v2489_v51 = vadd.f32 %v2488_v39, %v2482_v32 }
 0x1b8   : > { %v2470_v34 = vadd.f32 %v2469_v37, %v2468_v61  ;;  %v2490_v57 = vrot.slane %v2489_v51, 4 }
 0x1ba   : > { %v2471_v40 = vrot.slane %v2470_v34, 2  ;;  %v2491_v1 = vadd.f32 %v2490_v57, %v2489_v51 }
 0x1bc   : > { %v2472_v20 = vadd.f32 %v2471_v40, %v2470_v34  ;;  %v2492_v5 = vrot.slane %v2491_v1, 2 }
 0x1be   : > { %v2473_v25 = vrot.slane %v2472_v20, 1  ;;  %v2493_v52 = vadd.f32 %v2492_v5, %v2491_v1 }
 0x1c0   : > { %v2494_v56 = vrot.slane %v2493_v52, 1  ;;  %v2474_v48 = vadd.f32 %v2473_v25, %v2472_v20 }
 0x1c2   : > { %v2495_v15 = vadd.f32 %v2494_v56, %v2493_v52 }
 0x1c4   : > { %v2497_v16 = vsel %vm430_vm1, %v2474_v48, %v2495_v15 }
 0x1c5   : > { %2498 = vst [vmem:[%s235_s23] sm:$0x3] %v2497_v16 }
 0x1c6 PF: > { %s16_s18 = sadd.s32 1, %s3422_s18  }
 0x1c7   : > { %p13_p4 = scmp.ge.s32.totalorder %s16_s18, 4  }
 0x1c9   :  { %15 = sbr.rel (!%p13_p4) target bundleno = 1 (0x1), region = 88 }

</bundles_post_ra>
